<compile_context>
chip_gen: v7x
topology: tpu7x:2x2x1
jax: 0.10.0
libtpu: 0.0.40
codegen_flags: <defaults>
</compile_context>

<pallas_src>
import math
import functools
import numpy as np

import jax
import jax.numpy as jnp
from jax.experimental import pallas as pl
from jax.experimental.pallas import tpu as pltpu

# ----------------------- small, synthetic configuration -----------------------
N_BATCH = 2
IMG_H, IMG_W = 32, 64
NUM_CLASSES = 10          # CharsetMapper.num_classes (synthetic)
NULL_LABEL = 0            # CharsetMapper.null_label
D_MODEL = 32              # stand-in for 512
NHEAD = 4                 # stand-in for 8
D_INNER = 64              # stand-in for 2048
NUM_LAYERS = 4            # BCNLanguage transformer decoder depth
MAX_LENGTH = 8            # dataset_max_length (7) + 1
FEAT_H, FEAT_W = 8, 16    # backbone feature map (stand-in for 8 x 32)
NUM_CHANNELS = 8          # PositionAttention num_channels (stand-in for 64)
NEG_INF = -1e30           # single combined mask / pad value (never doubled)


def _round_up(x, m):
    return (x + m - 1) // m * m


# ================================ Pallas kernels ===============================
# ---- tiled matmul with fused bias / ReLU epilogue -----------------------------
def _mm_kernel(a_ref, b_ref, bias_ref, o_ref, *, relu):
    # single-K-step specialization: no scratch, no pl.when
    y = jnp.dot(a_ref[...], b_ref[...], preferred_element_type=jnp.float32)
    y = y + bias_ref[...]
    if relu:
        y = jnp.maximum(y, 0.0)
    o_ref[...] = y.astype(o_ref.dtype)


def _mm_kernel_acc(a_ref, b_ref, bias_ref, o_ref, acc_ref, *, relu):
    k = pl.program_id(2)
    part = jnp.dot(a_ref[...], b_ref[...], preferred_element_type=jnp.float32)

    @pl.when(k == 0)
    def _init():                       # init with the first partial product
        acc_ref[...] = part

    @pl.when(k != 0)
    def _acc():
        acc_ref[...] += part

    @pl.when(k == pl.num_programs(2) - 1)
    def _finalize():
        y = acc_ref[...] + bias_ref[...]
        if relu:
            y = jnp.maximum(y, 0.0)
        o_ref[...] = y.astype(o_ref.dtype)


def pallas_linear(a, w, bias=None, relu=False, out_dtype=jnp.float32,
                  use_bf16=True):
    """out = act(a @ w + bias); a:(M,K), w:(K,N), bias:(N,).

    K and N are lane-padded to 128 multiples (after the bf16 cast, not before);
    all matmuls in this model have a single K step, which skips the scratch
    accumulator and the pl.when init/finalize entirely.  On v6e/v7x at
    production shapes the tiles would be raised to 256 to fill the MXU."""
    M, K = a.shape
    N = w.shape[1]
    tm = min(256, _round_up(M, 8))
    tn, tk = 128, 128
    Mp, Kp, Np = _round_up(M, tm), _round_up(K, tk), _round_up(N, tn)

    cdt = jnp.bfloat16 if use_bf16 else jnp.float32
    a_p = jnp.pad(a.astype(cdt), ((0, Mp - M), (0, Kp - K)))
    w_p = jnp.pad(w.astype(cdt), ((0, Kp - K), (0, Np - N)))
    if bias is None:
        b_p = jnp.zeros((1, Np), jnp.float32)
    else:
        b_p = jnp.pad(bias.reshape(1, N).astype(jnp.float32),
                      ((0, 0), (0, Np - N)))

    nk = Kp // tk
    if nk == 1:
        out = pl.pallas_call(
            functools.partial(_mm_kernel, relu=relu),
            out_shape=jax.ShapeDtypeStruct((Mp, Np), out_dtype),
            grid_spec=pltpu.PrefetchScalarGridSpec(
                num_scalar_prefetch=0,
                grid=(Mp // tm, Np // tn),
                in_specs=[pl.BlockSpec((tm, tk), lambda i, j: (i, 0)),
                          pl.BlockSpec((tk, tn), lambda i, j: (0, j)),
                          pl.BlockSpec((1, tn), lambda i, j: (0, j))],
                out_specs=pl.BlockSpec((tm, tn), lambda i, j: (i, j))),
            compiler_params=pltpu.CompilerParams(
                dimension_semantics=("parallel", "parallel")),
        )(a_p, w_p, b_p)
    else:
        out = pl.pallas_call(
            functools.partial(_mm_kernel_acc, relu=relu),
            out_shape=jax.ShapeDtypeStruct((Mp, Np), out_dtype),
            grid_spec=pltpu.PrefetchScalarGridSpec(
                num_scalar_prefetch=0,
                grid=(Mp // tm, Np // tn, nk),
                in_specs=[pl.BlockSpec((tm, tk), lambda i, j, k: (i, k)),
                          pl.BlockSpec((tk, tn), lambda i, j, k: (k, j)),
                          pl.BlockSpec((1, tn), lambda i, j, k: (0, j))],
                out_specs=pl.BlockSpec((tm, tn), lambda i, j, k: (i, j)),
                scratch_shapes=[pltpu.VMEM((tm, tn), jnp.float32)]),
            compiler_params=pltpu.CompilerParams(
                dimension_semantics=("parallel", "parallel", "arbitrary")),
        )(a_p, w_p, b_p)
    return out[:M, :N]


# ---- NHWC conv (patch matmul) + folded BN + bias + ReLU ------------------------
def _conv_mm_kernel(x_ref, w_ref, b_ref, o_ref, *, relu):
    y = jnp.dot(x_ref[0], w_ref[...], preferred_element_type=jnp.float32)
    y = y + b_ref[...]
    if relu:
        y = jnp.maximum(y, 0.0)
    o_ref[0] = y


def pallas_conv_mm(patches, w_mat, bias, relu=True):
    """patches: (N, OH*OW, 9*Cin) bf16, w_mat: (9*Cin, Cout), bias: (1, Cout).

    Grid over batch ("parallel" -> megacore); output written directly as the
    NHWC-flat (N, OH*OW, Cout) tensor, no 128-lane padding of K / Cout in HBM."""
    N, M, K = patches.shape
    Cout = w_mat.shape[1]
    return pl.pallas_call(
        functools.partial(_conv_mm_kernel, relu=relu),
        out_shape=jax.ShapeDtypeStruct((N, M, Cout), jnp.float32),
        grid_spec=pltpu.PrefetchScalarGridSpec(
            num_scalar_prefetch=0,
            grid=(N,),
            in_specs=[pl.BlockSpec((1, M, K), lambda n: (n, 0, 0)),
                      pl.BlockSpec((K, Cout), lambda n: (0, 0)),
                      pl.BlockSpec((1, Cout), lambda n: (0, 0))],
            out_specs=pl.BlockSpec((1, M, Cout), lambda n: (n, 0, 0))),
        compiler_params=pltpu.CompilerParams(
            dimension_semantics=("parallel",)),
    )(patches, w_mat, bias)


# ---- vision PositionAttention + fused exact bicubic x2 upsample ----------------
def _pos_attn_kernel(q_ref, k_ref, v_ref, up_ref, o_ref, map_ref, *, scale):
    q = q_ref[...]                     # (T, E)  -- same query for every batch
    k = k_ref[0]                       # (HW, E)
    s = jax.lax.dot_general(q, k, (((1,), (1,)), ((), ())),
                            preferred_element_type=jnp.float32) * scale
    m = jnp.max(s, axis=-1, keepdims=True)
    e = jnp.exp(s - m)
    p = e / jnp.sum(e, axis=-1, keepdims=True)          # exact softmax
    o_ref[0] = jnp.dot(p, v_ref[0], preferred_element_type=jnp.float32)
    # bicubic x2 (align_corners=True) fused as one lane-dense matmul
    map_ref[0] = jnp.dot(p, up_ref[...], preferred_element_type=jnp.float32)


def pallas_pos_attention(q, k, v, up_mat, scale):
    T, E = q.shape
    N, HW, _ = k.shape
    UP = up_mat.shape[1]
    const = lambda s: pl.BlockSpec(s, lambda n: tuple(0 for _ in s))
    blk = lambda s: pl.BlockSpec(s, lambda n: (n,) + (0,) * (len(s) - 1))
    return pl.pallas_call(
        functools.partial(_pos_attn_kernel, scale=scale),
        out_shape=(jax.ShapeDtypeStruct((N, T, E), jnp.float32),
                   jax.ShapeDtypeStruct((N, T, UP), jnp.float32)),
        grid_spec=pltpu.PrefetchScalarGridSpec(
            num_scalar_prefetch=0,
            grid=(N,),
            in_specs=[const((T, E)), blk((1, HW, E)), blk((1, HW, E)),
                      const((HW, UP))],
            out_specs=(blk((1, T, E)), blk((1, T, UP)))),
        compiler_params=pltpu.CompilerParams(
            dimension_semantics=("parallel",)),
    )(q, k, v, up_mat)


# ---- fused token softmax + embedding projection + positional encoding ----------
def _token_embed_kernel(logits_ref, w_ref, pe_ref, o_ref):
    x = logits_ref[0]                  # (T, Cp) padded with NEG_INF -> exact
    m = jnp.max(x, axis=-1, keepdims=True)
    e = jnp.exp(x - m)
    p = e / jnp.sum(e, axis=-1, keepdims=True)
    o_ref[0] = jnp.dot(p, w_ref[...],
                       preferred_element_type=jnp.float32) + pe_ref[...]


def pallas_token_embed(logits_p, w_p, pe):
    N, T, Cp = logits_p.shape
    E = w_p.shape[1]
    return pl.pallas_call(
        _token_embed_kernel,
        out_shape=jax.ShapeDtypeStruct((N, T, E), jnp.float32),
        grid_spec=pltpu.PrefetchScalarGridSpec(
            num_scalar_prefetch=0,
            grid=(N,),
            in_specs=[pl.BlockSpec((1, T, Cp), lambda n: (n, 0, 0)),
                      pl.BlockSpec((Cp, E), lambda n: (0, 0)),
                      pl.BlockSpec((T, E), lambda n: (0, 0))],
            out_specs=pl.BlockSpec((1, T, E), lambda n: (n, 0, 0))),
        compiler_params=pltpu.CompilerParams(
            dimension_semantics=("parallel",)),
    )(logits_p, w_p, pe)


# ---- fully fused BCN decoder layer ---------------------------------------------
def _bcn_layer_kernel(lens_ref, tgt_ref, mem_ref, wqkv_ref, bqkv_ref, wo_ref,
                      bo_ref, ln2_ref, w1_ref, b1_ref, w2_ref, b2_ref, ln3_ref,
                      o_ref, *, nhead, scale):
    n = pl.program_id(0)
    length = lens_ref[n]
    tgt = tgt_ref[0]                   # (T, E)
    mem = mem_ref[0]                   # (T, E)  fixed memory (token embedding)
    t_sz, e_sz = tgt.shape
    hd = e_sz // nhead

    q = jnp.dot(tgt, wqkv_ref[0], preferred_element_type=jnp.float32) + bqkv_ref[0]
    k = jnp.dot(mem, wqkv_ref[1], preferred_element_type=jnp.float32) + bqkv_ref[1]
    v = jnp.dot(mem, wqkv_ref[2], preferred_element_type=jnp.float32) + bqkv_ref[2]

    # combined location (diagonal) + key-padding mask, shared by every head.
    t_idx = jax.lax.broadcasted_iota(jnp.int32, (t_sz, t_sz), 0)
    s_idx = jax.lax.broadcasted_iota(jnp.int32, (t_sz, t_sz), 1)
    masked = (s_idx == t_idx) | (s_idx >= length)

    head_outs = []
    for h in range(nhead):             # heads via static lane slices (no HBM split)
        qh = q[:, h * hd:(h + 1) * hd]
        kh = k[:, h * hd:(h + 1) * hd]
        vh = v[:, h * hd:(h + 1) * hd]
        s = jax.lax.dot_general(qh, kh, (((1,), (1,)), ((), ())),
                                preferred_element_type=jnp.float32) * scale
        s = jnp.where(masked, NEG_INF, s)
        m = jnp.max(s, axis=-1, keepdims=True)
        e = jnp.exp(s - m)             # lengths are clipped >= 2 -> never all-masked
        p = e / jnp.sum(e, axis=-1, keepdims=True)
        head_outs.append(jnp.dot(p, vh, preferred_element_type=jnp.float32))
    attn = jnp.concatenate(head_outs, axis=-1)          # (T, E)

    # out-proj + residual + LayerNorm
    y = jnp.dot(attn, wo_ref[...], preferred_element_type=jnp.float32)
    y = y + bo_ref[...] + tgt
    mu = jnp.mean(y, axis=-1, keepdims=True)
    var = jnp.mean(jnp.square(y - mu), axis=-1, keepdims=True)
    y = (y - mu) * jax.lax.rsqrt(var + 1e-5) * ln2_ref[0] + ln2_ref[1]

    # FFN + residual + LayerNorm
    h1 = jnp.dot(y, w1_ref[...], preferred_element_type=jnp.float32) + b1_ref[...]
    h1 = jnp.maximum(h1, 0.0)
    y2 = jnp.dot(h1, w2_ref[...], preferred_element_type=jnp.float32) + b2_ref[...]
    y2 = y2 + y
    mu = jnp.mean(y2, axis=-1, keepdims=True)
    var = jnp.mean(jnp.square(y2 - mu), axis=-1, keepdims=True)
    o_ref[0] = (y2 - mu) * jax.lax.rsqrt(var + 1e-5) * ln3_ref[0] + ln3_ref[1]


def pallas_bcn_layer(tgt, mem, lengths, lp, nhead):
    """One full BCN decoder layer in a single launch, gridded over batch."""
    N, T, E = tgt.shape
    F = lp['ff1_w'].shape[1]
    wqkv = jnp.stack([lp['wq'], lp['wk'], lp['wv']])               # (3, E, E)
    bqkv = jnp.stack([lp['bq'], lp['bk'], lp['bv']]).reshape(3, 1, E)
    ln2 = jnp.stack([lp['ln2_g'], lp['ln2_b']]).reshape(2, 1, E)
    ln3 = jnp.stack([lp['ln3_g'], lp['ln3_b']]).reshape(2, 1, E)

    const = lambda s: pl.BlockSpec(s, lambda n, lens: tuple(0 for _ in s))
    blk = lambda s: pl.BlockSpec(s, lambda n, lens: (n,) + (0,) * (len(s) - 1))
    return pl.pallas_call(
        functools.partial(_bcn_layer_kernel, nhead=nhead,
                          scale=1.0 / math.sqrt(E // nhead)),
        out_shape=jax.ShapeDtypeStruct((N, T, E), jnp.float32),
        grid_spec=pltpu.PrefetchScalarGridSpec(
            num_scalar_prefetch=1,           # per-batch lengths (SMEM)
            grid=(N,),
            in_specs=[blk((1, T, E)), blk((1, T, E)),
                      const((3, E, E)), const((3, 1, E)),
                      const((E, E)), const((1, E)), const((2, 1, E)),
                      const((E, F)), const((1, F)),
                      const((F, E)), const((1, E)), const((2, 1, E))],
            out_specs=blk((1, T, E))),
        compiler_params=pltpu.CompilerParams(
            dimension_semantics=("parallel",)),
    )(lengths, tgt, mem, wqkv, bqkv, lp['wo'], lp['bo'].reshape(1, E), ln2,
      lp['ff1_w'], lp['ff1_b'].reshape(1, F), lp['ff2_w'],
      lp['ff2_b'].reshape(1, E), ln3)


# ================================ JAX glue helpers =============================
def positional_encoding(max_len, d_model):
    pos = np.arange(max_len, dtype=np.float32)[:, None]
    div = np.exp(np.arange(0, d_model, 2, dtype=np.float32) *
                 (-math.log(10000.0) / d_model))
    pe = np.zeros((max_len, d_model), np.float32)
    pe[:, 0::2] = np.sin(pos * div)
    pe[:, 1::2] = np.cos(pos * div)
    return jnp.asarray(pe)


def _extract_patches_nhwc(x, stride, padding, pad_value=None):
    """x: (N, H, W, C) -> (N, OH*OW, 9*C) tap-major patches (XLA slices only)."""
    N, H, W, C = x.shape
    sh, sw = stride
    Hp, Wp = H + 2 * padding, W + 2 * padding
    if pad_value is None:
        xp = jnp.pad(x, ((0, 0), (padding, padding), (padding, padding), (0, 0)))
    else:
        xp = jnp.broadcast_to(pad_value.reshape(1, 1, 1, C).astype(x.dtype),
                              (N, Hp, Wp, C))
        xp = xp.at[:, padding:padding + H, padding:padding + W, :].set(x)
    OH = (H + 2 * padding - 3) // sh + 1
    OW = (W + 2 * padding - 3) // sw + 1
    taps = []
    for ki in range(3):
        for kj in range(3):
            taps.append(xp[:, ki:ki + sh * (OH - 1) + 1:sh,
                           kj:kj + sw * (OW - 1) + 1:sw, :])
    patches = jnp.concatenate(taps, axis=-1)             # (N, OH, OW, 9C)
    return patches.reshape(N, OH * OW, 9 * C), OH, OW


def conv_bn_relu(x, p, stride, input_mean=None, input_std=None):
    """NHWC Conv2d(k=3, p=1) + BatchNorm2d (eval stats folded) + ReLU.

    If input_mean/std are given, the per-channel image normalization
    (x - mean) / std is folded exactly into the conv (weights divided per input
    channel, bias adjusted, border padded with the channel mean)."""
    w, b = p['w'], p['b']                                 # torch layout (Cout,Cin,3,3)
    pad_value = None
    if input_mean is not None:
        w = w / input_std[None, :, None, None]
        b = b - jnp.sum(w * input_mean[None, :, None, None], axis=(1, 2, 3))
        pad_value = input_mean
    eps = 1e-5
    bn_scale = p['gamma'] / jnp.sqrt(p['rv'] + eps)
    w_f = w * bn_scale[:, None, None, None]
    b_f = p['beta'] + (b - p['rm']) * bn_scale

    Cout, Cin = w.shape[0], w.shape[1]
    # rows ordered (ki, kj, cin) to match the tap-major patch concatenation
    w_mat = w_f.transpose(2, 3, 1, 0).reshape(9 * Cin, Cout)

    patches, OH, OW = _extract_patches_nhwc(x.astype(jnp.bfloat16), stride, 1,
                                            pad_value)
    out = pallas_conv_mm(patches, w_mat.astype(jnp.bfloat16),
                         b_f.reshape(1, Cout).astype(jnp.float32), relu=True)
    return out.reshape(x.shape[0], OH, OW, Cout)


def upsample_nearest(x, scale=None, size=None):
    N, H, W, C = x.shape
    OH, OW = (H * scale, W * scale) if size is None else size
    hi = (jnp.arange(OH) * H) // OH
    wi = (jnp.arange(OW) * W) // OW
    x = jnp.take(x, hi, axis=1)
    x = jnp.take(x, wi, axis=2)
    return x


def _cubic_coeffs(t, A=-0.75):
    c0 = ((A * (t + 1) - 5 * A) * (t + 1) + 8 * A) * (t + 1) - 4 * A
    c1 = ((A + 2) * t - (A + 3)) * t * t + 1
    c2 = ((A + 2) * (1 - t) - (A + 3)) * (1 - t) * (1 - t) + 1
    c3 = 1.0 - c0 - c1 - c2
    return (c0, c1, c2, c3)


def _bicubic_matrix(in_size, out_size):
    """1-D bicubic interpolation matrix (align_corners=True, a=-0.75)."""
    M = np.zeros((out_size, in_size), np.float32)
    for o in range(out_size):
        src = o * (in_size - 1) / (out_size - 1) if out_size > 1 else 0.0
        x0 = int(math.floor(src))
        t = src - x0
        for kk, c in enumerate(_cubic_coeffs(t)):
            idx = min(max(x0 - 1 + kk, 0), in_size - 1)
            M[o, idx] += c
    return M


def bicubic_x2_matrix(h, w):
    """(HW, 4HW) flat interpolation matrix: up(p) = p_flat @ M (exact kron)."""
    Mh = _bicubic_matrix(h, 2 * h)                        # (2H, H)
    Mw = _bicubic_matrix(w, 2 * w)                        # (2W, W)
    return jnp.asarray(np.kron(Mh, Mw).T)                 # (H*W, 2H*2W)


def _get_length(logits):
    """Greedy decoder for sequence length (Model._get_length)."""
    T = logits.shape[1]
    is_null = jnp.argmax(logits, axis=-1) == NULL_LABEL          # (N, T)
    abn = jnp.any(is_null, axis=-1)
    hit = (jnp.cumsum(is_null.astype(jnp.int32), axis=-1) == 1) & is_null
    first = jnp.argmax(hit.astype(jnp.int32), axis=-1)
    out = first + 1
    return jnp.where(abn, out, T).astype(jnp.int32)


# =============================== model components ==============================
def vision_forward(images_nhwc, p, img_mean=None, img_std=None):
    """BaseVision: backbone -> PositionAttention -> cls (NHWC end-to-end)."""
    # TODO(synk): resnet45 / ResTranformer backbone reduced to a single strided
    # conv+BN+ReLU producing (N, FEAT_H, FEAT_W, D_MODEL).
    feat = conv_bn_relu(images_nhwc, p['backbone'], stride=(4, 4),
                        input_mean=img_mean, input_std=img_std)
    N, H, W, E = feat.shape

    # --- PositionAttention.k_encoder / k_decoder (mini U-Net) ---
    k = feat
    features = []
    for i, cp in enumerate(p['k_enc']):
        k = conv_bn_relu(k, cp, stride=(1, 2) if i == 0 else (2, 2))
        features.append(k)
    for i, cp in enumerate(p['k_dec']):
        if i == len(p['k_dec']) - 1:
            k = upsample_nearest(k, size=(H, W))
        else:
            k = upsample_nearest(k, scale=2)
        k = conv_bn_relu(k, cp, stride=(1, 1))
        if i < len(p['k_dec']) - 1:
            k = k + features[len(p['k_dec']) - 2 - i]

    # --- query from positional encoding of zeros (same for every batch) ---
    T = MAX_LENGTH
    q = pallas_linear(p['pe'], p['proj_w'], p['proj_b'])          # (T, E)

    k_flat = k.reshape(N, H * W, E)                               # NHWC -> (N, HW, E)
    v_flat = feat.reshape(N, H * W, E)

    up_mat = bicubic_x2_matrix(H, W)                              # (HW, 4HW)
    attn_vecs, attn_map_flat = pallas_pos_attention(q, k_flat, v_flat, up_mat,
                                                    1.0 / math.sqrt(E))
    attn_map = attn_map_flat.reshape(N, T, 2 * H, 2 * W)

    logits = pallas_linear(attn_vecs.reshape(N * T, E), p['cls_w'],
                           p['cls_b']).reshape(N, T, NUM_CLASSES)
    pt_lengths = _get_length(logits)
    return attn_vecs, logits, pt_lengths, attn_map


def language_forward(v_logits, lengths, p):
    """BCNLanguage (use_self_attn=False, eval: dropout off)."""
    N, T, C = v_logits.shape
    E = D_MODEL
    Cp = _round_up(C, 128)

    # token softmax + Linear(num_classes, d_model, bias=False) + token_encoder PE
    logits_p = jnp.pad(v_logits, ((0, 0), (0, 0), (0, Cp - C)),
                       constant_values=NEG_INF)
    w_p = jnp.pad(p['proj_w'], ((0, Cp - C), (0, 0)))
    embed = pallas_token_embed(logits_p, w_p, p['pe'])            # (N, T, E)

    # query = pos_encoder(zeros); batch-first layout throughout
    tgt = jnp.broadcast_to(p['pe'][None, :, :], (N, T, E))
    lens = lengths.astype(jnp.int32)

    for layer in p['layers']:
        tgt = pallas_bcn_layer(tgt, embed, lens, layer, NHEAD)

    logits = pallas_linear(tgt.reshape(N * T, E), p['cls_w'],
                           p['cls_b']).reshape(N, T, NUM_CLASSES)
    pt_lengths = _get_length(logits)
    return tgt, logits, pt_lengths


def position_aware_forward(images, params, normalize=True):
    mean = jnp.array([0.485, 0.456, 0.406], jnp.float32)
    std = jnp.array([0.229, 0.224, 0.225], jnp.float32)
    img_mean, img_std = (mean, std) if normalize else (None, None)

    images_nhwc = jnp.transpose(images, (0, 2, 3, 1))    # single NCHW->NHWC transpose
    _, v_logits, v_lengths, attn_map = vision_forward(images_nhwc,
                                                      params['vision'],
                                                      img_mean, img_std)

    lengths = jnp.clip(v_lengths, 2, MAX_LENGTH)
    _, l_logits, l_lengths = language_forward(v_logits, lengths,
                                              params['language'])
    l_lengths = jnp.clip(l_lengths, 2, MAX_LENGTH)

    return {'attn_map': attn_map,
            'img_logits': v_logits,
            'text_logits': l_logits,
            'pt_lengths': l_lengths}


# ================================ parameter init ===============================
def init_params(key):
    keys = iter(jax.random.split(key, 512))

    def nrm(shape, scale=0.1):
        return scale * jax.random.normal(next(keys), shape, jnp.float32)

    def conv_block(cin, cout):
        return dict(w=nrm((cout, cin, 3, 3)), b=nrm((cout,)),
                    gamma=jnp.ones((cout,), jnp.float32),
                    beta=jnp.zeros((cout,), jnp.float32),
                    rm=jnp.zeros((cout,), jnp.float32),   # BN running_mean (eval)
                    rv=jnp.ones((cout,), jnp.float32))    # BN running_var (eval)

    vision = dict(
        backbone=conv_block(3, D_MODEL),
        k_enc=[conv_block(D_MODEL, NUM_CHANNELS)] +
              [conv_block(NUM_CHANNELS, NUM_CHANNELS) for _ in range(3)],
        k_dec=[conv_block(NUM_CHANNELS, NUM_CHANNELS) for _ in range(3)] +
              [conv_block(NUM_CHANNELS, D_MODEL)],
        pe=positional_encoding(MAX_LENGTH, D_MODEL),
        proj_w=nrm((D_MODEL, D_MODEL)), proj_b=nrm((D_MODEL,)),
        cls_w=nrm((D_MODEL, NUM_CLASSES)), cls_b=nrm((NUM_CLASSES,)),
    )

    def dec_layer():
        return dict(
            wq=nrm((D_MODEL, D_MODEL)), wk=nrm((D_MODEL, D_MODEL)),
            wv=nrm((D_MODEL, D_MODEL)),
            bq=jnp.zeros((D_MODEL,), jnp.float32),
            bk=jnp.zeros((D_MODEL,), jnp.float32),
            bv=jnp.zeros((D_MODEL,), jnp.float32),
            wo=nrm((D_MODEL, D_MODEL)), bo=jnp.zeros((D_MODEL,), jnp.float32),
            ln2_g=jnp.ones((D_MODEL,), jnp.float32),
            ln2_b=jnp.zeros((D_MODEL,), jnp.float32),
            ln3_g=jnp.ones((D_MODEL,), jnp.float32),
            ln3_b=jnp.zeros((D_MODEL,), jnp.float32),
            ff1_w=nrm((D_MODEL, D_INNER)), ff1_b=jnp.zeros((D_INNER,), jnp.float32),
            ff2_w=nrm((D_INNER, D_MODEL)), ff2_b=jnp.zeros((D_MODEL,), jnp.float32),
        )

    language = dict(
        proj_w=nrm((NUM_CLASSES, D_MODEL)),   # nn.Linear(num_classes, d_model, bias=False)
        pe=positional_encoding(MAX_LENGTH, D_MODEL),
        layers=[dec_layer() for _ in range(NUM_LAYERS)],
        cls_w=nrm((D_MODEL, NUM_CLASSES)), cls_b=nrm((NUM_CLASSES,)),
    )
    return dict(vision=vision, language=language)


# ===================================== main ====================================
if __name__ == "__main__":
    root = jax.random.PRNGKey(0)
    pkey, ikey = jax.random.split(root)
    params = init_params(pkey)
    images = jax.random.uniform(ikey, (N_BATCH, 3, IMG_H, IMG_W), jnp.float32)

    fwd = jax.jit(functools.partial(position_aware_forward, params=params))
    out = fwd(images)
    jax.block_until_ready(out)

    assert out['attn_map'].shape == (N_BATCH, MAX_LENGTH, 2 * FEAT_H, 2 * FEAT_W)
    assert out['img_logits'].shape == (N_BATCH, MAX_LENGTH, NUM_CLASSES)
    assert out['text_logits'].shape == (N_BATCH, MAX_LENGTH, NUM_CLASSES)
    assert out['pt_lengths'].shape == (N_BATCH,)
    assert bool(jnp.all(jnp.isfinite(out['attn_map'])))
    assert bool(jnp.all(jnp.isfinite(out['img_logits'])))
    assert bool(jnp.all(jnp.isfinite(out['text_logits'])))
    print("KERNEL_OK")
</pallas_src>

<mosaic_0001>
module attributes {stable_mosaic.version = 11 : i64} {
  func.func @_conv_mm_kernel(%arg0: i32, %arg1: memref<1x128x27xbf16, #tpu.memory_space<vmem>>, %arg2: memref<27x32xbf16, #tpu.memory_space<vmem>>, %arg3: memref<1x32xf32, #tpu.memory_space<vmem>>, %arg4: memref<1x128x32xf32, #tpu.memory_space<vmem>>) attributes {dimension_semantics = [#tpu.dimension_semantics<parallel>], iteration_bounds = array<i64: 2>, scalar_prefetch = 0 : i64, scratch_operands = 0 : i64, tpu.core_type = #tpu.core_type<tc>, window_params = [{transform_indices = @transform_0, window_bounds = array<i64: 1, 128, 27>}, {pipeline_mode = #tpu.pipeline_mode<synchronous>, transform_indices = @transform_1, window_bounds = array<i64: 27, 32>}, {pipeline_mode = #tpu.pipeline_mode<synchronous>, transform_indices = @transform_2, window_bounds = array<i64: 1, 32>}, {transform_indices = @transform_3, window_bounds = array<i64: 1, 128, 32>}]} {
    %c0 = arith.constant 0 : index
    %c0_0 = arith.constant 0 : index
    %c0_1 = arith.constant 0 : index
    %0 = vector.load %arg1[%c0, %c0_0, %c0_1] : memref<1x128x27xbf16, #tpu.memory_space<vmem>>, vector<1x128x27xbf16>
    %1 = vector.shape_cast %0 : vector<1x128x27xbf16> to vector<128x27xbf16>
    %c0_2 = arith.constant 0 : index
    %c0_3 = arith.constant 0 : index
    %2 = vector.load %arg2[%c0_2, %c0_3] : memref<27x32xbf16, #tpu.memory_space<vmem>>, vector<27x32xbf16>
    %cst = arith.constant dense<0.000000e+00> : vector<128x32xf32>
    %3 = tpu.matmul %1, %2, %cst {dimension_numbers = #tpu.dot_dimension_numbers<[1], [0], [0], [1], [0, 0, 1, 1], [], []>} : vector<128x27xbf16>, vector<27x32xbf16>, vector<128x32xf32> -> vector<128x32xf32>
    %c0_4 = arith.constant 0 : index
    %c0_5 = arith.constant 0 : index
    %4 = vector.load %arg3[%c0_4, %c0_5] : memref<1x32xf32, #tpu.memory_space<vmem>>, vector<1x32xf32>
    %5 = vector.broadcast %4 : vector<1x32xf32> to vector<128x32xf32>
    %6 = arith.addf %3, %5 : vector<128x32xf32>
    %cst_6 = arith.constant 0.000000e+00 : f32
    %7 = vector.broadcast %cst_6 : f32 to vector<128x32xf32>
    %8 = arith.maximumf %6, %7 : vector<128x32xf32>
    %c0_7 = arith.constant 0 : index
    %c0_8 = arith.constant 0 : index
    %c0_9 = arith.constant 0 : index
    %9 = vector.load %arg4[%c0_7, %c0_8, %c0_9] : memref<1x128x32xf32, #tpu.memory_space<vmem>>, vector<1x128x32xf32>
    %10 = vector.shape_cast %9 : vector<1x128x32xf32> to vector<128x32xf32>
    %11 = vector.shape_cast %8 : vector<128x32xf32> to vector<1x128x32xf32>
    tpu.vector_store %arg4[%c0_7, %c0_8, %c0_9], %11 {strides = array<i32>} : memref<1x128x32xf32, #tpu.memory_space<vmem>>, vector<1x128x32xf32>,
    return
  }
  func.func @transform_0(%arg0: i32) -> (i32, i32, i32) {
    %c0_i32 = arith.constant 0 : i32
    %c0_i32_0 = arith.constant 0 : i32
    %c0_i32_1 = arith.constant 0 : i32
    return %arg0, %c0_i32, %c0_i32_0 : i32, i32, i32
  }
  func.func @transform_1(%arg0: i32) -> (i32, i32) {
    %c0_i32 = arith.constant 0 : i32
    %c0_i32_0 = arith.constant 0 : i32
    %c0_i32_1 = arith.constant 0 : i32
    return %c0_i32, %c0_i32_0 : i32, i32
  }
  func.func @transform_2(%arg0: i32) -> (i32, i32) {
    %c0_i32 = arith.constant 0 : i32
    %c0_i32_0 = arith.constant 0 : i32
    %c0_i32_1 = arith.constant 0 : i32
    return %c0_i32, %c0_i32_0 : i32, i32
  }
  func.func @transform_3(%arg0: i32) -> (i32, i32, i32) {
    %c0_i32 = arith.constant 0 : i32
    %c0_i32_0 = arith.constant 0 : i32
    %c0_i32_1 = arith.constant 0 : i32
    return %arg0, %c0_i32, %c0_i32_0 : i32, i32, i32
  }
}

module attributes {stable_mosaic.version = 11 : i64} {
  func.func @_conv_mm_kernel(%arg0: i32, %arg1: memref<1x64x288xbf16, #tpu.memory_space<vmem>>, %arg2: memref<288x8xbf16, #tpu.memory_space<vmem>>, %arg3: memref<1x8xf32, #tpu.memory_space<vmem>>, %arg4: memref<1x64x8xf32, #tpu.memory_space<vmem>>) attributes {dimension_semantics = [#tpu.dimension_semantics<parallel>], iteration_bounds = array<i64: 2>, scalar_prefetch = 0 : i64, scratch_operands = 0 : i64, tpu.core_type = #tpu.core_type<tc>, window_params = [{transform_indices = @transform_0, window_bounds = array<i64: 1, 64, 288>}, {pipeline_mode = #tpu.pipeline_mode<synchronous>, transform_indices = @transform_1, window_bounds = array<i64: 288, 8>}, {pipeline_mode = #tpu.pipeline_mode<synchronous>, transform_indices = @transform_2, window_bounds = array<i64: 1, 8>}, {transform_indices = @transform_3, window_bounds = array<i64: 1, 64, 8>}]} {
    %c0 = arith.constant 0 : index
    %c0_0 = arith.constant 0 : index
    %c0_1 = arith.constant 0 : index
    %0 = vector.load %arg1[%c0, %c0_0, %c0_1] : memref<1x64x288xbf16, #tpu.memory_space<vmem>>, vector<1x64x288xbf16>
    %1 = vector.shape_cast %0 : vector<1x64x288xbf16> to vector<64x288xbf16>
    %c0_2 = arith.constant 0 : index
    %c0_3 = arith.constant 0 : index
    %2 = vector.load %arg2[%c0_2, %c0_3] : memref<288x8xbf16, #tpu.memory_space<vmem>>, vector<288x8xbf16>
    %cst = arith.constant dense<0.000000e+00> : vector<64x8xf32>
    %3 = tpu.matmul %1, %2, %cst {dimension_numbers = #tpu.dot_dimension_numbers<[1], [0], [0], [1], [0, 0, 1, 1], [], []>} : vector<64x288xbf16>, vector<288x8xbf16>, vector<64x8xf32> -> vector<64x8xf32>
    %c0_4 = arith.constant 0 : index
    %c0_5 = arith.constant 0 : index
    %4 = vector.load %arg3[%c0_4, %c0_5] : memref<1x8xf32, #tpu.memory_space<vmem>>, vector<1x8xf32>
    %5 = vector.broadcast %4 : vector<1x8xf32> to vector<64x8xf32>
    %6 = arith.addf %3, %5 : vector<64x8xf32>
    %cst_6 = arith.constant 0.000000e+00 : f32
    %7 = vector.broadcast %cst_6 : f32 to vector<64x8xf32>
    %8 = arith.maximumf %6, %7 : vector<64x8xf32>
    %c0_7 = arith.constant 0 : index
    %c0_8 = arith.constant 0 : index
    %c0_9 = arith.constant 0 : index
    %9 = vector.load %arg4[%c0_7, %c0_8, %c0_9] : memref<1x64x8xf32, #tpu.memory_space<vmem>>, vector<1x64x8xf32>
    %10 = vector.shape_cast %9 : vector<1x64x8xf32> to vector<64x8xf32>
    %11 = vector.shape_cast %8 : vector<64x8xf32> to vector<1x64x8xf32>
    tpu.vector_store %arg4[%c0_7, %c0_8, %c0_9], %11 {strides = array<i32>} : memref<1x64x8xf32, #tpu.memory_space<vmem>>, vector<1x64x8xf32>,
    return
  }
  func.func @transform_0(%arg0: i32) -> (i32, i32, i32) {
    %c0_i32 = arith.constant 0 : i32
    %c0_i32_0 = arith.constant 0 : i32
    %c0_i32_1 = arith.constant 0 : i32
    return %arg0, %c0_i32, %c0_i32_0 : i32, i32, i32
  }
  func.func @transform_1(%arg0: i32) -> (i32, i32) {
    %c0_i32 = arith.constant 0 : i32
    %c0_i32_0 = arith.constant 0 : i32
    %c0_i32_1 = arith.constant 0 : i32
    return %c0_i32, %c0_i32_0 : i32, i32
  }
  func.func @transform_2(%arg0: i32) -> (i32, i32) {
    %c0_i32 = arith.constant 0 : i32
    %c0_i32_0 = arith.constant 0 : i32
    %c0_i32_1 = arith.constant 0 : i32
    return %c0_i32, %c0_i32_0 : i32, i32
  }
  func.func @transform_3(%arg0: i32) -> (i32, i32, i32) {
    %c0_i32 = arith.constant 0 : i32
    %c0_i32_0 = arith.constant 0 : i32
    %c0_i32_1 = arith.constant 0 : i32
    return %arg0, %c0_i32, %c0_i32_0 : i32, i32, i32
  }
}

module attributes {stable_mosaic.version = 11 : i64} {
  func.func @_conv_mm_kernel(%arg0: i32, %arg1: memref<1x16x72xbf16, #tpu.memory_space<vmem>>, %arg2: memref<72x8xbf16, #tpu.memory_space<vmem>>, %arg3: memref<1x8xf32, #tpu.memory_space<vmem>>, %arg4: memref<1x16x8xf32, #tpu.memory_space<vmem>>) attributes {dimension_semantics = [#tpu.dimension_semantics<parallel>], iteration_bounds = array<i64: 2>, scalar_prefetch = 0 : i64, scratch_operands = 0 : i64, tpu.core_type = #tpu.core_type<tc>, window_params = [{transform_indices = @transform_0, window_bounds = array<i64: 1, 16, 72>}, {pipeline_mode = #tpu.pipeline_mode<synchronous>, transform_indices = @transform_1, window_bounds = array<i64: 72, 8>}, {pipeline_mode = #tpu.pipeline_mode<synchronous>, transform_indices = @transform_2, window_bounds = array<i64: 1, 8>}, {transform_indices = @transform_3, window_bounds = array<i64: 1, 16, 8>}]} {
    %c0 = arith.constant 0 : index
    %c0_0 = arith.constant 0 : index
    %c0_1 = arith.constant 0 : index
    %0 = vector.load %arg1[%c0, %c0_0, %c0_1] : memref<1x16x72xbf16, #tpu.memory_space<vmem>>, vector<1x16x72xbf16>
    %1 = vector.shape_cast %0 : vector<1x16x72xbf16> to vector<16x72xbf16>
    %c0_2 = arith.constant 0 : index
    %c0_3 = arith.constant 0 : index
    %2 = vector.load %arg2[%c0_2, %c0_3] : memref<72x8xbf16, #tpu.memory_space<vmem>>, vector<72x8xbf16>
    %cst = arith.constant dense<0.000000e+00> : vector<16x8xf32>
    %3 = tpu.matmul %1, %2, %cst {dimension_numbers = #tpu.dot_dimension_numbers<[1], [0], [0], [1], [0, 0, 1, 1], [], []>} : vector<16x72xbf16>, vector<72x8xbf16>, vector<16x8xf32> -> vector<16x8xf32>
    %c0_4 = arith.constant 0 : index
    %c0_5 = arith.constant 0 : index
    %4 = vector.load %arg3[%c0_4, %c0_5] : memref<1x8xf32, #tpu.memory_space<vmem>>, vector<1x8xf32>
    %5 = vector.broadcast %4 : vector<1x8xf32> to vector<16x8xf32>
    %6 = arith.addf %3, %5 : vector<16x8xf32>
    %cst_6 = arith.constant 0.000000e+00 : f32
    %7 = vector.broadcast %cst_6 : f32 to vector<16x8xf32>
    %8 = arith.maximumf %6, %7 : vector<16x8xf32>
    %c0_7 = arith.constant 0 : index
    %c0_8 = arith.constant 0 : index
    %c0_9 = arith.constant 0 : index
    %9 = vector.load %arg4[%c0_7, %c0_8, %c0_9] : memref<1x16x8xf32, #tpu.memory_space<vmem>>, vector<1x16x8xf32>
    %10 = vector.shape_cast %9 : vector<1x16x8xf32> to vector<16x8xf32>
    %11 = vector.shape_cast %8 : vector<16x8xf32> to vector<1x16x8xf32>
    tpu.vector_store %arg4[%c0_7, %c0_8, %c0_9], %11 {strides = array<i32>} : memref<1x16x8xf32, #tpu.memory_space<vmem>>, vector<1x16x8xf32>,
    return
  }
  func.func @transform_0(%arg0: i32) -> (i32, i32, i32) {
    %c0_i32 = arith.constant 0 : i32
    %c0_i32_0 = arith.constant 0 : i32
    %c0_i32_1 = arith.constant 0 : i32
    return %arg0, %c0_i32, %c0_i32_0 : i32, i32, i32
  }
  func.func @transform_1(%arg0: i32) -> (i32, i32) {
    %c0_i32 = arith.constant 0 : i32
    %c0_i32_0 = arith.constant 0 : i32
    %c0_i32_1 = arith.constant 0 : i32
    return %c0_i32, %c0_i32_0 : i32, i32
  }
  func.func @transform_2(%arg0: i32) -> (i32, i32) {
    %c0_i32 = arith.constant 0 : i32
    %c0_i32_0 = arith.constant 0 : i32
    %c0_i32_1 = arith.constant 0 : i32
    return %c0_i32, %c0_i32_0 : i32, i32
  }
  func.func @transform_3(%arg0: i32) -> (i32, i32, i32) {
    %c0_i32 = arith.constant 0 : i32
    %c0_i32_0 = arith.constant 0 : i32
    %c0_i32_1 = arith.constant 0 : i32
    return %arg0, %c0_i32, %c0_i32_0 : i32, i32, i32
  }
}

module attributes {stable_mosaic.version = 11 : i64} {
  func.func @_conv_mm_kernel(%arg0: i32, %arg1: memref<1x4x72xbf16, #tpu.memory_space<vmem>>, %arg2: memref<72x8xbf16, #tpu.memory_space<vmem>>, %arg3: memref<1x8xf32, #tpu.memory_space<vmem>>, %arg4: memref<1x4x8xf32, #tpu.memory_space<vmem>>) attributes {dimension_semantics = [#tpu.dimension_semantics<parallel>], iteration_bounds = array<i64: 2>, scalar_prefetch = 0 : i64, scratch_operands = 0 : i64, tpu.core_type = #tpu.core_type<tc>, window_params = [{transform_indices = @transform_0, window_bounds = array<i64: 1, 4, 72>}, {pipeline_mode = #tpu.pipeline_mode<synchronous>, transform_indices = @transform_1, window_bounds = array<i64: 72, 8>}, {pipeline_mode = #tpu.pipeline_mode<synchronous>, transform_indices = @transform_2, window_bounds = array<i64: 1, 8>}, {transform_indices = @transform_3, window_bounds = array<i64: 1, 4, 8>}]} {
    %c0 = arith.constant 0 : index
    %c0_0 = arith.constant 0 : index
    %c0_1 = arith.constant 0 : index
    %0 = vector.load %arg1[%c0, %c0_0, %c0_1] : memref<1x4x72xbf16, #tpu.memory_space<vmem>>, vector<1x4x72xbf16>
    %1 = vector.shape_cast %0 : vector<1x4x72xbf16> to vector<4x72xbf16>
    %c0_2 = arith.constant 0 : index
    %c0_3 = arith.constant 0 : index
    %2 = vector.load %arg2[%c0_2, %c0_3] : memref<72x8xbf16, #tpu.memory_space<vmem>>, vector<72x8xbf16>
    %cst = arith.constant dense<0.000000e+00> : vector<4x8xf32>
    %3 = tpu.matmul %1, %2, %cst {dimension_numbers = #tpu.dot_dimension_numbers<[1], [0], [0], [1], [0, 0, 1, 1], [], []>} : vector<4x72xbf16>, vector<72x8xbf16>, vector<4x8xf32> -> vector<4x8xf32>
    %c0_4 = arith.constant 0 : index
    %c0_5 = arith.constant 0 : index
    %4 = vector.load %arg3[%c0_4, %c0_5] : memref<1x8xf32, #tpu.memory_space<vmem>>, vector<1x8xf32>
    %5 = vector.broadcast %4 : vector<1x8xf32> to vector<4x8xf32>
    %6 = arith.addf %3, %5 : vector<4x8xf32>
    %cst_6 = arith.constant 0.000000e+00 : f32
    %7 = vector.broadcast %cst_6 : f32 to vector<4x8xf32>
    %8 = arith.maximumf %6, %7 : vector<4x8xf32>
    %c0_7 = arith.constant 0 : index
    %c0_8 = arith.constant 0 : index
    %c0_9 = arith.constant 0 : index
    %9 = vector.load %arg4[%c0_7, %c0_8, %c0_9] : memref<1x4x8xf32, #tpu.memory_space<vmem>>, vector<1x4x8xf32>
    %10 = vector.shape_cast %9 : vector<1x4x8xf32> to vector<4x8xf32>
    %11 = vector.shape_cast %8 : vector<4x8xf32> to vector<1x4x8xf32>
    tpu.vector_store %arg4[%c0_7, %c0_8, %c0_9], %11 {strides = array<i32>} : memref<1x4x8xf32, #tpu.memory_space<vmem>>, vector<1x4x8xf32>,
    return
  }
  func.func @transform_0(%arg0: i32) -> (i32, i32, i32) {
    %c0_i32 = arith.constant 0 : i32
    %c0_i32_0 = arith.constant 0 : i32
    %c0_i32_1 = arith.constant 0 : i32
    return %arg0, %c0_i32, %c0_i32_0 : i32, i32, i32
  }
  func.func @transform_1(%arg0: i32) -> (i32, i32) {
    %c0_i32 = arith.constant 0 : i32
    %c0_i32_0 = arith.constant 0 : i32
    %c0_i32_1 = arith.constant 0 : i32
    return %c0_i32, %c0_i32_0 : i32, i32
  }
  func.func @transform_2(%arg0: i32) -> (i32, i32) {
    %c0_i32 = arith.constant 0 : i32
    %c0_i32_0 = arith.constant 0 : i32
    %c0_i32_1 = arith.constant 0 : i32
    return %c0_i32, %c0_i32_0 : i32, i32
  }
  func.func @transform_3(%arg0: i32) -> (i32, i32, i32) {
    %c0_i32 = arith.constant 0 : i32
    %c0_i32_0 = arith.constant 0 : i32
    %c0_i32_1 = arith.constant 0 : i32
    return %arg0, %c0_i32, %c0_i32_0 : i32, i32, i32
  }
}

module attributes {stable_mosaic.version = 11 : i64} {
  func.func @_conv_mm_kernel(%arg0: i32, %arg1: memref<1x1x72xbf16, #tpu.memory_space<vmem>>, %arg2: memref<72x8xbf16, #tpu.memory_space<vmem>>, %arg3: memref<1x8xf32, #tpu.memory_space<vmem>>, %arg4: memref<1x1x8xf32, #tpu.memory_space<vmem>>) attributes {dimension_semantics = [#tpu.dimension_semantics<parallel>], iteration_bounds = array<i64: 2>, scalar_prefetch = 0 : i64, scratch_operands = 0 : i64, tpu.core_type = #tpu.core_type<tc>, window_params = [{transform_indices = @transform_0, window_bounds = array<i64: 1, 1, 72>}, {pipeline_mode = #tpu.pipeline_mode<synchronous>, transform_indices = @transform_1, window_bounds = array<i64: 72, 8>}, {pipeline_mode = #tpu.pipeline_mode<synchronous>, transform_indices = @transform_2, window_bounds = array<i64: 1, 8>}, {transform_indices = @transform_3, window_bounds = array<i64: 1, 1, 8>}]} {
    %c0 = arith.constant 0 : index
    %c0_0 = arith.constant 0 : index
    %c0_1 = arith.constant 0 : index
    %0 = vector.load %arg1[%c0, %c0_0, %c0_1] : memref<1x1x72xbf16, #tpu.memory_space<vmem>>, vector<1x1x72xbf16>
    %1 = vector.shape_cast %0 : vector<1x1x72xbf16> to vector<1x72xbf16>
    %c0_2 = arith.constant 0 : index
    %c0_3 = arith.constant 0 : index
    %2 = vector.load %arg2[%c0_2, %c0_3] : memref<72x8xbf16, #tpu.memory_space<vmem>>, vector<72x8xbf16>
    %cst = arith.constant dense<0.000000e+00> : vector<1x8xf32>
    %3 = tpu.matmul %1, %2, %cst {dimension_numbers = #tpu.dot_dimension_numbers<[1], [0], [0], [1], [0, 0, 1, 1], [], []>} : vector<1x72xbf16>, vector<72x8xbf16>, vector<1x8xf32> -> vector<1x8xf32>
    %c0_4 = arith.constant 0 : index
    %c0_5 = arith.constant 0 : index
    %4 = vector.load %arg3[%c0_4, %c0_5] : memref<1x8xf32, #tpu.memory_space<vmem>>, vector<1x8xf32>
    %5 = arith.addf %3, %4 : vector<1x8xf32>
    %cst_6 = arith.constant 0.000000e+00 : f32
    %6 = vector.broadcast %cst_6 : f32 to vector<1x8xf32>
    %7 = arith.maximumf %5, %6 : vector<1x8xf32>
    %c0_7 = arith.constant 0 : index
    %c0_8 = arith.constant 0 : index
    %c0_9 = arith.constant 0 : index
    %8 = vector.load %arg4[%c0_7, %c0_8, %c0_9] : memref<1x1x8xf32, #tpu.memory_space<vmem>>, vector<1x1x8xf32>
    %9 = vector.shape_cast %8 : vector<1x1x8xf32> to vector<1x8xf32>
    %10 = vector.shape_cast %7 : vector<1x8xf32> to vector<1x1x8xf32>
    tpu.vector_store %arg4[%c0_7, %c0_8, %c0_9], %10 {strides = array<i32>} : memref<1x1x8xf32, #tpu.memory_space<vmem>>, vector<1x1x8xf32>,
    return
  }
  func.func @transform_0(%arg0: i32) -> (i32, i32, i32) {
    %c0_i32 = arith.constant 0 : i32
    %c0_i32_0 = arith.constant 0 : i32
    %c0_i32_1 = arith.constant 0 : i32
    return %arg0, %c0_i32, %c0_i32_0 : i32, i32, i32
  }
  func.func @transform_1(%arg0: i32) -> (i32, i32) {
    %c0_i32 = arith.constant 0 : i32
    %c0_i32_0 = arith.constant 0 : i32
    %c0_i32_1 = arith.constant 0 : i32
    return %c0_i32, %c0_i32_0 : i32, i32
  }
  func.func @transform_2(%arg0: i32) -> (i32, i32) {
    %c0_i32 = arith.constant 0 : i32
    %c0_i32_0 = arith.constant 0 : i32
    %c0_i32_1 = arith.constant 0 : i32
    return %c0_i32, %c0_i32_0 : i32, i32
  }
  func.func @transform_3(%arg0: i32) -> (i32, i32, i32) {
    %c0_i32 = arith.constant 0 : i32
    %c0_i32_0 = arith.constant 0 : i32
    %c0_i32_1 = arith.constant 0 : i32
    return %arg0, %c0_i32, %c0_i32_0 : i32, i32, i32
  }
}

module attributes {stable_mosaic.version = 11 : i64} {
  func.func @_conv_mm_kernel(%arg0: i32, %arg1: memref<1x64x72xbf16, #tpu.memory_space<vmem>>, %arg2: memref<72x8xbf16, #tpu.memory_space<vmem>>, %arg3: memref<1x8xf32, #tpu.memory_space<vmem>>, %arg4: memref<1x64x8xf32, #tpu.memory_space<vmem>>) attributes {dimension_semantics = [#tpu.dimension_semantics<parallel>], iteration_bounds = array<i64: 2>, scalar_prefetch = 0 : i64, scratch_operands = 0 : i64, tpu.core_type = #tpu.core_type<tc>, window_params = [{transform_indices = @transform_0, window_bounds = array<i64: 1, 64, 72>}, {pipeline_mode = #tpu.pipeline_mode<synchronous>, transform_indices = @transform_1, window_bounds = array<i64: 72, 8>}, {pipeline_mode = #tpu.pipeline_mode<synchronous>, transform_indices = @transform_2, window_bounds = array<i64: 1, 8>}, {transform_indices = @transform_3, window_bounds = array<i64: 1, 64, 8>}]} {
    %c0 = arith.constant 0 : index
    %c0_0 = arith.constant 0 : index
    %c0_1 = arith.constant 0 : index
    %0 = vector.load %arg1[%c0, %c0_0, %c0_1] : memref<1x64x72xbf16, #tpu.memory_space<vmem>>, vector<1x64x72xbf16>
    %1 = vector.shape_cast %0 : vector<1x64x72xbf16> to vector<64x72xbf16>
    %c0_2 = arith.constant 0 : index
    %c0_3 = arith.constant 0 : index
    %2 = vector.load %arg2[%c0_2, %c0_3] : memref<72x8xbf16, #tpu.memory_space<vmem>>, vector<72x8xbf16>
    %cst = arith.constant dense<0.000000e+00> : vector<64x8xf32>
    %3 = tpu.matmul %1, %2, %cst {dimension_numbers = #tpu.dot_dimension_numbers<[1], [0], [0], [1], [0, 0, 1, 1], [], []>} : vector<64x72xbf16>, vector<72x8xbf16>, vector<64x8xf32> -> vector<64x8xf32>
    %c0_4 = arith.constant 0 : index
    %c0_5 = arith.constant 0 : index
    %4 = vector.load %arg3[%c0_4, %c0_5] : memref<1x8xf32, #tpu.memory_space<vmem>>, vector<1x8xf32>
    %5 = vector.broadcast %4 : vector<1x8xf32> to vector<64x8xf32>
    %6 = arith.addf %3, %5 : vector<64x8xf32>
    %cst_6 = arith.constant 0.000000e+00 : f32
    %7 = vector.broadcast %cst_6 : f32 to vector<64x8xf32>
    %8 = arith.maximumf %6, %7 : vector<64x8xf32>
    %c0_7 = arith.constant 0 : index
    %c0_8 = arith.constant 0 : index
    %c0_9 = arith.constant 0 : index
    %9 = vector.load %arg4[%c0_7, %c0_8, %c0_9] : memref<1x64x8xf32, #tpu.memory_space<vmem>>, vector<1x64x8xf32>
    %10 = vector.shape_cast %9 : vector<1x64x8xf32> to vector<64x8xf32>
    %11 = vector.shape_cast %8 : vector<64x8xf32> to vector<1x64x8xf32>
    tpu.vector_store %arg4[%c0_7, %c0_8, %c0_9], %11 {strides = array<i32>} : memref<1x64x8xf32, #tpu.memory_space<vmem>>, vector<1x64x8xf32>,
    return
  }
  func.func @transform_0(%arg0: i32) -> (i32, i32, i32) {
    %c0_i32 = arith.constant 0 : i32
    %c0_i32_0 = arith.constant 0 : i32
    %c0_i32_1 = arith.constant 0 : i32
    return %arg0, %c0_i32, %c0_i32_0 : i32, i32, i32
  }
  func.func @transform_1(%arg0: i32) -> (i32, i32) {
    %c0_i32 = arith.constant 0 : i32
    %c0_i32_0 = arith.constant 0 : i32
    %c0_i32_1 = arith.constant 0 : i32
    return %c0_i32, %c0_i32_0 : i32, i32
  }
  func.func @transform_2(%arg0: i32) -> (i32, i32) {
    %c0_i32 = arith.constant 0 : i32
    %c0_i32_0 = arith.constant 0 : i32
    %c0_i32_1 = arith.constant 0 : i32
    return %c0_i32, %c0_i32_0 : i32, i32
  }
  func.func @transform_3(%arg0: i32) -> (i32, i32, i32) {
    %c0_i32 = arith.constant 0 : i32
    %c0_i32_0 = arith.constant 0 : i32
    %c0_i32_1 = arith.constant 0 : i32
    return %arg0, %c0_i32, %c0_i32_0 : i32, i32, i32
  }
}

module attributes {stable_mosaic.version = 11 : i64} {
  func.func @_mm_kernel(%arg0: i32, %arg1: i32, %arg2: memref<8x128xbf16, #tpu.memory_space<vmem>>, %arg3: memref<128x128xbf16, #tpu.memory_space<vmem>>, %arg4: memref<1x128xf32, #tpu.memory_space<vmem>>, %arg5: memref<8x128xf32, #tpu.memory_space<vmem>>) attributes {dimension_semantics = [#tpu.dimension_semantics<parallel>, #tpu.dimension_semantics<parallel>], iteration_bounds = array<i64: 1, 1>, scalar_prefetch = 0 : i64, scratch_operands = 0 : i64, tpu.core_type = #tpu.core_type<tc>, window_params = [{transform_indices = @transform_0, window_bounds = array<i64: 8, 128>}, {transform_indices = @transform_1, window_bounds = array<i64: 128, 128>}, {transform_indices = @transform_2, window_bounds = array<i64: 1, 128>}, {transform_indices = @transform_3, window_bounds = array<i64: 8, 128>}]} {
    %c0 = arith.constant 0 : index
    %c0_0 = arith.constant 0 : index
    %0 = vector.load %arg2[%c0, %c0_0] : memref<8x128xbf16, #tpu.memory_space<vmem>>, vector<8x128xbf16>
    %c0_1 = arith.constant 0 : index
    %c0_2 = arith.constant 0 : index
    %1 = vector.load %arg3[%c0_1, %c0_2] : memref<128x128xbf16, #tpu.memory_space<vmem>>, vector<128x128xbf16>
    %cst = arith.constant dense<0.000000e+00> : vector<8x128xf32>
    %2 = tpu.matmul %0, %1, %cst {dimension_numbers = #tpu.dot_dimension_numbers<[1], [0], [0], [1], [0, 0, 1, 1], [], []>} : vector<8x128xbf16>, vector<128x128xbf16>, vector<8x128xf32> -> vector<8x128xf32>
    %c0_3 = arith.constant 0 : index
    %c0_4 = arith.constant 0 : index
    %3 = vector.load %arg4[%c0_3, %c0_4] : memref<1x128xf32, #tpu.memory_space<vmem>>, vector<1x128xf32>
    %4 = vector.broadcast %3 : vector<1x128xf32> to vector<8x128xf32>
    %5 = arith.addf %2, %4 : vector<8x128xf32>
    %c0_5 = arith.constant 0 : index
    %c0_6 = arith.constant 0 : index
    %6 = vector.load %arg5[%c0_5, %c0_6] : memref<8x128xf32, #tpu.memory_space<vmem>>, vector<8x128xf32>
    tpu.vector_store %arg5[%c0_5, %c0_6], %5 {strides = array<i32>} : memref<8x128xf32, #tpu.memory_space<vmem>>, vector<8x128xf32>,
    return
  }
  func.func @transform_0(%arg0: i32, %arg1: i32) -> (i32, i32) {
    %c0_i32 = arith.constant 0 : i32
    %c0_i32_0 = arith.constant 0 : i32
    return %arg0, %c0_i32 : i32, i32
  }
  func.func @transform_1(%arg0: i32, %arg1: i32) -> (i32, i32) {
    %c0_i32 = arith.constant 0 : i32
    %c0_i32_0 = arith.constant 0 : i32
    return %c0_i32, %arg1 : i32, i32
  }
  func.func @transform_2(%arg0: i32, %arg1: i32) -> (i32, i32) {
    %c0_i32 = arith.constant 0 : i32
    %c0_i32_0 = arith.constant 0 : i32
    return %c0_i32, %arg1 : i32, i32
  }
  func.func @transform_3(%arg0: i32, %arg1: i32) -> (i32, i32) {
    %c0_i32 = arith.constant 0 : i32
    return %arg0, %arg1 : i32, i32
  }
}

module attributes {stable_mosaic.version = 11 : i64} {
  func.func @_conv_mm_kernel(%arg0: i32, %arg1: memref<1x128x72xbf16, #tpu.memory_space<vmem>>, %arg2: memref<72x32xbf16, #tpu.memory_space<vmem>>, %arg3: memref<1x32xf32, #tpu.memory_space<vmem>>, %arg4: memref<1x128x32xf32, #tpu.memory_space<vmem>>) attributes {dimension_semantics = [#tpu.dimension_semantics<parallel>], iteration_bounds = array<i64: 2>, scalar_prefetch = 0 : i64, scratch_operands = 0 : i64, tpu.core_type = #tpu.core_type<tc>, window_params = [{transform_indices = @transform_0, window_bounds = array<i64: 1, 128, 72>}, {pipeline_mode = #tpu.pipeline_mode<synchronous>, transform_indices = @transform_1, window_bounds = array<i64: 72, 32>}, {pipeline_mode = #tpu.pipeline_mode<synchronous>, transform_indices = @transform_2, window_bounds = array<i64: 1, 32>}, {transform_indices = @transform_3, window_bounds = array<i64: 1, 128, 32>}]} {
    %c0 = arith.constant 0 : index
    %c0_0 = arith.constant 0 : index
    %c0_1 = arith.constant 0 : index
    %0 = vector.load %arg1[%c0, %c0_0, %c0_1] : memref<1x128x72xbf16, #tpu.memory_space<vmem>>, vector<1x128x72xbf16>
    %1 = vector.shape_cast %0 : vector<1x128x72xbf16> to vector<128x72xbf16>
    %c0_2 = arith.constant 0 : index
    %c0_3 = arith.constant 0 : index
    %2 = vector.load %arg2[%c0_2, %c0_3] : memref<72x32xbf16, #tpu.memory_space<vmem>>, vector<72x32xbf16>
    %cst = arith.constant dense<0.000000e+00> : vector<128x32xf32>
    %3 = tpu.matmul %1, %2, %cst {dimension_numbers = #tpu.dot_dimension_numbers<[1], [0], [0], [1], [0, 0, 1, 1], [], []>} : vector<128x72xbf16>, vector<72x32xbf16>, vector<128x32xf32> -> vector<128x32xf32>
    %c0_4 = arith.constant 0 : index
    %c0_5 = arith.constant 0 : index
    %4 = vector.load %arg3[%c0_4, %c0_5] : memref<1x32xf32, #tpu.memory_space<vmem>>, vector<1x32xf32>
    %5 = vector.broadcast %4 : vector<1x32xf32> to vector<128x32xf32>
    %6 = arith.addf %3, %5 : vector<128x32xf32>
    %cst_6 = arith.constant 0.000000e+00 : f32
    %7 = vector.broadcast %cst_6 : f32 to vector<128x32xf32>
    %8 = arith.maximumf %6, %7 : vector<128x32xf32>
    %c0_7 = arith.constant 0 : index
    %c0_8 = arith.constant 0 : index
    %c0_9 = arith.constant 0 : index
    %9 = vector.load %arg4[%c0_7, %c0_8, %c0_9] : memref<1x128x32xf32, #tpu.memory_space<vmem>>, vector<1x128x32xf32>
    %10 = vector.shape_cast %9 : vector<1x128x32xf32> to vector<128x32xf32>
    %11 = vector.shape_cast %8 : vector<128x32xf32> to vector<1x128x32xf32>
    tpu.vector_store %arg4[%c0_7, %c0_8, %c0_9], %11 {strides = array<i32>} : memref<1x128x32xf32, #tpu.memory_space<vmem>>, vector<1x128x32xf32>,
    return
  }
  func.func @transform_0(%arg0: i32) -> (i32, i32, i32) {
    %c0_i32 = arith.constant 0 : i32
    %c0_i32_0 = arith.constant 0 : i32
    %c0_i32_1 = arith.constant 0 : i32
    return %arg0, %c0_i32, %c0_i32_0 : i32, i32, i32
  }
  func.func @transform_1(%arg0: i32) -> (i32, i32) {
    %c0_i32 = arith.constant 0 : i32
    %c0_i32_0 = arith.constant 0 : i32
    %c0_i32_1 = arith.constant 0 : i32
    return %c0_i32, %c0_i32_0 : i32, i32
  }
  func.func @transform_2(%arg0: i32) -> (i32, i32) {
    %c0_i32 = arith.constant 0 : i32
    %c0_i32_0 = arith.constant 0 : i32
    %c0_i32_1 = arith.constant 0 : i32
    return %c0_i32, %c0_i32_0 : i32, i32
  }
  func.func @transform_3(%arg0: i32) -> (i32, i32, i32) {
    %c0_i32 = arith.constant 0 : i32
    %c0_i32_0 = arith.constant 0 : i32
    %c0_i32_1 = arith.constant 0 : i32
    return %arg0, %c0_i32, %c0_i32_0 : i32, i32, i32
  }
}

module attributes {stable_mosaic.version = 11 : i64} {
  func.func @_pos_attn_kernel(%arg0: i32, %arg1: memref<8x32xf32, #tpu.memory_space<vmem>>, %arg2: memref<1x128x32xf32, #tpu.memory_space<vmem>>, %arg3: memref<1x128x32xf32, #tpu.memory_space<vmem>>, %arg4: memref<128x512xf32, #tpu.memory_space<vmem>>, %arg5: memref<1x8x32xf32, #tpu.memory_space<vmem>>, %arg6: memref<1x8x512xf32, #tpu.memory_space<vmem>>) attributes {dimension_semantics = [#tpu.dimension_semantics<parallel>], iteration_bounds = array<i64: 2>, scalar_prefetch = 0 : i64, scratch_operands = 0 : i64, tpu.core_type = #tpu.core_type<tc>, window_params = [{pipeline_mode = #tpu.pipeline_mode<synchronous>, transform_indices = @transform_0, window_bounds = array<i64: 8, 32>}, {transform_indices = @transform_1, window_bounds = array<i64: 1, 128, 32>}, {transform_indices = @transform_2, window_bounds = array<i64: 1, 128, 32>}, {pipeline_mode = #tpu.pipeline_mode<synchronous>, transform_indices = @transform_3, window_bounds = array<i64: 128, 512>}, {transform_indices = @transform_4, window_bounds = array<i64: 1, 8, 32>}, {transform_indices = @transform_5, window_bounds = array<i64: 1, 8, 512>}]} {
    %c0 = arith.constant 0 : index
    %c0_0 = arith.constant 0 : index
    %0 = vector.load %arg1[%c0, %c0_0] : memref<8x32xf32, #tpu.memory_space<vmem>>, vector<8x32xf32>
    %c0_1 = arith.constant 0 : index
    %c0_2 = arith.constant 0 : index
    %c0_3 = arith.constant 0 : index
    %1 = vector.load %arg2[%c0_1, %c0_2, %c0_3] : memref<1x128x32xf32, #tpu.memory_space<vmem>>, vector<1x128x32xf32>
    %2 = vector.shape_cast %1 : vector<1x128x32xf32> to vector<128x32xf32>
    %cst = arith.constant dense<0.000000e+00> : vector<8x128xf32>
    %3 = tpu.matmul %0, %2, %cst {dimension_numbers = #tpu.dot_dimension_numbers<[1], [1], [0], [0], [0, 0, 1, 0], [], []>} : vector<8x32xf32>, vector<128x32xf32>, vector<8x128xf32> -> vector<8x128xf32>
    %cst_4 = arith.constant 0.176776692 : f32
    %4 = vector.broadcast %cst_4 : f32 to vector<8x128xf32>
    %5 = arith.mulf %3, %4 : vector<8x128xf32>
    %cst_5 = arith.constant dense<0xFF800000> : vector<8xf32>
    %6 = vector.multi_reduction <maximumf>, %5, %cst_5 [1] : vector<8x128xf32> to vector<8xf32>
    %7 = vector.shape_cast %6 : vector<8xf32> to vector<8x1xf32>
    %8 = vector.broadcast %7 : vector<8x1xf32> to vector<8x128xf32>
    %9 = arith.subf %5, %8 : vector<8x128xf32>
    %10 = math.exp %9 : vector<8x128xf32>
    %cst_6 = arith.constant dense<0.000000e+00> : vector<8xf32>
    %11 = vector.multi_reduction <add>, %10, %cst_6 [1] : vector<8x128xf32> to vector<8xf32>
    %12 = vector.shape_cast %11 : vector<8xf32> to vector<8x1xf32>
    %13 = vector.broadcast %12 : vector<8x1xf32> to vector<8x128xf32>
    %14 = arith.divf %10, %13 : vector<8x128xf32>
    %c0_7 = arith.constant 0 : index
    %c0_8 = arith.constant 0 : index
    %c0_9 = arith.constant 0 : index
    %15 = vector.load %arg3[%c0_7, %c0_8, %c0_9] : memref<1x128x32xf32, #tpu.memory_space<vmem>>, vector<1x128x32xf32>
    %16 = vector.shape_cast %15 : vector<1x128x32xf32> to vector<128x32xf32>
    %cst_10 = arith.constant dense<0.000000e+00> : vector<8x32xf32>
    %17 = tpu.matmul %14, %16, %cst_10 {dimension_numbers = #tpu.dot_dimension_numbers<[1], [0], [0], [1], [0, 0, 1, 1], [], []>} : vector<8x128xf32>, vector<128x32xf32>, vector<8x32xf32> -> vector<8x32xf32>
    %c0_11 = arith.constant 0 : index
    %c0_12 = arith.constant 0 : index
    %c0_13 = arith.constant 0 : index
    %18 = vector.load %arg5[%c0_11, %c0_12, %c0_13] : memref<1x8x32xf32, #tpu.memory_space<vmem>>, vector<1x8x32xf32>
    %19 = vector.shape_cast %18 : vector<1x8x32xf32> to vector<8x32xf32>
    %20 = vector.shape_cast %17 : vector<8x32xf32> to vector<1x8x32xf32>
    tpu.vector_store %arg5[%c0_11, %c0_12, %c0_13], %20 {strides = array<i32>} : memref<1x8x32xf32, #tpu.memory_space<vmem>>, vector<1x8x32xf32>,
    %c0_14 = arith.constant 0 : index
    %c0_15 = arith.constant 0 : index
    %21 = vector.load %arg4[%c0_14, %c0_15] : memref<128x512xf32, #tpu.memory_space<vmem>>, vector<128x512xf32>
    %cst_16 = arith.constant dense<0.000000e+00> : vector<8x512xf32>
    %22 = tpu.matmul %14, %21, %cst_16 {dimension_numbers = #tpu.dot_dimension_numbers<[1], [0], [0], [1], [0, 0, 1, 1], [], []>} : vector<8x128xf32>, vector<128x512xf32>, vector<8x512xf32> -> vector<8x512xf32>
    %c0_17 = arith.constant 0 : index
    %c0_18 = arith.constant 0 : index
    %c0_19 = arith.constant 0 : index
    %23 = vector.load %arg6[%c0_17, %c0_18, %c0_19] : memref<1x8x512xf32, #tpu.memory_space<vmem>>, vector<1x8x512xf32>
    %24 = vector.shape_cast %23 : vector<1x8x512xf32> to vector<8x512xf32>
    %25 = vector.shape_cast %22 : vector<8x512xf32> to vector<1x8x512xf32>
    tpu.vector_store %arg6[%c0_17, %c0_18, %c0_19], %25 {strides = array<i32>} : memref<1x8x512xf32, #tpu.memory_space<vmem>>, vector<1x8x512xf32>,
    return
  }
  func.func @transform_0(%arg0: i32) -> (i32, i32) {
    %c0_i32 = arith.constant 0 : i32
    %c0_i32_0 = arith.constant 0 : i32
    %c0_i32_1 = arith.constant 0 : i32
    return %c0_i32, %c0_i32_0 : i32, i32
  }
  func.func @transform_1(%arg0: i32) -> (i32, i32, i32) {
    %c0_i32 = arith.constant 0 : i32
    %c0_i32_0 = arith.constant 0 : i32
    %c0_i32_1 = arith.constant 0 : i32
    return %arg0, %c0_i32, %c0_i32_0 : i32, i32, i32
  }
  func.func @transform_2(%arg0: i32) -> (i32, i32, i32) {
    %c0_i32 = arith.constant 0 : i32
    %c0_i32_0 = arith.constant 0 : i32
    %c0_i32_1 = arith.constant 0 : i32
    return %arg0, %c0_i32, %c0_i32_0 : i32, i32, i32
  }
  func.func @transform_3(%arg0: i32) -> (i32, i32) {
    %c0_i32 = arith.constant 0 : i32
    %c0_i32_0 = arith.constant 0 : i32
    %c0_i32_1 = arith.constant 0 : i32
    return %c0_i32, %c0_i32_0 : i32, i32
  }
  func.func @transform_4(%arg0: i32) -> (i32, i32, i32) {
    %c0_i32 = arith.constant 0 : i32
    %c0_i32_0 = arith.constant 0 : i32
    %c0_i32_1 = arith.constant 0 : i32
    return %arg0, %c0_i32, %c0_i32_0 : i32, i32, i32
  }
  func.func @transform_5(%arg0: i32) -> (i32, i32, i32) {
    %c0_i32 = arith.constant 0 : i32
    %c0_i32_0 = arith.constant 0 : i32
    %c0_i32_1 = arith.constant 0 : i32
    return %arg0, %c0_i32, %c0_i32_0 : i32, i32, i32
  }
}

module attributes {stable_mosaic.version = 11 : i64} {
  func.func @_mm_kernel(%arg0: i32, %arg1: i32, %arg2: memref<16x128xbf16, #tpu.memory_space<vmem>>, %arg3: memref<128x128xbf16, #tpu.memory_space<vmem>>, %arg4: memref<1x128xf32, #tpu.memory_space<vmem>>, %arg5: memref<16x128xf32, #tpu.memory_space<vmem>>) attributes {dimension_semantics = [#tpu.dimension_semantics<parallel>, #tpu.dimension_semantics<parallel>], iteration_bounds = array<i64: 1, 1>, scalar_prefetch = 0 : i64, scratch_operands = 0 : i64, tpu.core_type = #tpu.core_type<tc>, window_params = [{transform_indices = @transform_0, window_bounds = array<i64: 16, 128>}, {transform_indices = @transform_1, window_bounds = array<i64: 128, 128>}, {transform_indices = @transform_2, window_bounds = array<i64: 1, 128>}, {transform_indices = @transform_3, window_bounds = array<i64: 16, 128>}]} {
    %c0 = arith.constant 0 : index
    %c0_0 = arith.constant 0 : index
    %0 = vector.load %arg2[%c0, %c0_0] : memref<16x128xbf16, #tpu.memory_space<vmem>>, vector<16x128xbf16>
    %c0_1 = arith.constant 0 : index
    %c0_2 = arith.constant 0 : index
    %1 = vector.load %arg3[%c0_1, %c0_2] : memref<128x128xbf16, #tpu.memory_space<vmem>>, vector<128x128xbf16>
    %cst = arith.constant dense<0.000000e+00> : vector<16x128xf32>
    %2 = tpu.matmul %0, %1, %cst {dimension_numbers = #tpu.dot_dimension_numbers<[1], [0], [0], [1], [0, 0, 1, 1], [], []>} : vector<16x128xbf16>, vector<128x128xbf16>, vector<16x128xf32> -> vector<16x128xf32>
    %c0_3 = arith.constant 0 : index
    %c0_4 = arith.constant 0 : index
    %3 = vector.load %arg4[%c0_3, %c0_4] : memref<1x128xf32, #tpu.memory_space<vmem>>, vector<1x128xf32>
    %4 = vector.broadcast %3 : vector<1x128xf32> to vector<16x128xf32>
    %5 = arith.addf %2, %4 : vector<16x128xf32>
    %c0_5 = arith.constant 0 : index
    %c0_6 = arith.constant 0 : index
    %6 = vector.load %arg5[%c0_5, %c0_6] : memref<16x128xf32, #tpu.memory_space<vmem>>, vector<16x128xf32>
    tpu.vector_store %arg5[%c0_5, %c0_6], %5 {strides = array<i32>} : memref<16x128xf32, #tpu.memory_space<vmem>>, vector<16x128xf32>,
    return
  }
  func.func @transform_0(%arg0: i32, %arg1: i32) -> (i32, i32) {
    %c0_i32 = arith.constant 0 : i32
    %c0_i32_0 = arith.constant 0 : i32
    return %arg0, %c0_i32 : i32, i32
  }
  func.func @transform_1(%arg0: i32, %arg1: i32) -> (i32, i32) {
    %c0_i32 = arith.constant 0 : i32
    %c0_i32_0 = arith.constant 0 : i32
    return %c0_i32, %arg1 : i32, i32
  }
  func.func @transform_2(%arg0: i32, %arg1: i32) -> (i32, i32) {
    %c0_i32 = arith.constant 0 : i32
    %c0_i32_0 = arith.constant 0 : i32
    return %c0_i32, %arg1 : i32, i32
  }
  func.func @transform_3(%arg0: i32, %arg1: i32) -> (i32, i32) {
    %c0_i32 = arith.constant 0 : i32
    return %arg0, %arg1 : i32, i32
  }
}

module attributes {stable_mosaic.version = 11 : i64} {
  func.func @_token_embed_kernel(%arg0: i32, %arg1: memref<1x8x128xf32, #tpu.memory_space<vmem>>, %arg2: memref<128x32xf32, #tpu.memory_space<vmem>>, %arg3: memref<8x32xf32, #tpu.memory_space<vmem>>, %arg4: memref<1x8x32xf32, #tpu.memory_space<vmem>>) attributes {dimension_semantics = [#tpu.dimension_semantics<parallel>], iteration_bounds = array<i64: 2>, scalar_prefetch = 0 : i64, scratch_operands = 0 : i64, tpu.core_type = #tpu.core_type<tc>, window_params = [{transform_indices = @transform_0, window_bounds = array<i64: 1, 8, 128>}, {pipeline_mode = #tpu.pipeline_mode<synchronous>, transform_indices = @transform_1, window_bounds = array<i64: 128, 32>}, {pipeline_mode = #tpu.pipeline_mode<synchronous>, transform_indices = @transform_2, window_bounds = array<i64: 8, 32>}, {transform_indices = @transform_3, window_bounds = array<i64: 1, 8, 32>}]} {
    %c0 = arith.constant 0 : index
    %c0_0 = arith.constant 0 : index
    %c0_1 = arith.constant 0 : index
    %0 = vector.load %arg1[%c0, %c0_0, %c0_1] : memref<1x8x128xf32, #tpu.memory_space<vmem>>, vector<1x8x128xf32>
    %1 = vector.shape_cast %0 : vector<1x8x128xf32> to vector<8x128xf32>
    %cst = arith.constant dense<0xFF800000> : vector<8xf32>
    %2 = vector.multi_reduction <maximumf>, %1, %cst [1] : vector<8x128xf32> to vector<8xf32>
    %3 = vector.shape_cast %2 : vector<8xf32> to vector<8x1xf32>
    %4 = vector.broadcast %3 : vector<8x1xf32> to vector<8x128xf32>
    %5 = arith.subf %1, %4 : vector<8x128xf32>
    %6 = math.exp %5 : vector<8x128xf32>
    %cst_2 = arith.constant dense<0.000000e+00> : vector<8xf32>
    %7 = vector.multi_reduction <add>, %6, %cst_2 [1] : vector<8x128xf32> to vector<8xf32>
    %8 = vector.shape_cast %7 : vector<8xf32> to vector<8x1xf32>
    %9 = vector.broadcast %8 : vector<8x1xf32> to vector<8x128xf32>
    %10 = arith.divf %6, %9 : vector<8x128xf32>
    %c0_3 = arith.constant 0 : index
    %c0_4 = arith.constant 0 : index
    %11 = vector.load %arg2[%c0_3, %c0_4] : memref<128x32xf32, #tpu.memory_space<vmem>>, vector<128x32xf32>
    %cst_5 = arith.constant dense<0.000000e+00> : vector<8x32xf32>
    %12 = tpu.matmul %10, %11, %cst_5 {dimension_numbers = #tpu.dot_dimension_numbers<[1], [0], [0], [1], [0, 0, 1, 1], [], []>} : vector<8x128xf32>, vector<128x32xf32>, vector<8x32xf32> -> vector<8x32xf32>
    %c0_6 = arith.constant 0 : index
    %c0_7 = arith.constant 0 : index
    %13 = vector.load %arg3[%c0_6, %c0_7] : memref<8x32xf32, #tpu.memory_space<vmem>>, vector<8x32xf32>
    %14 = arith.addf %12, %13 : vector<8x32xf32>
    %c0_8 = arith.constant 0 : index
    %c0_9 = arith.constant 0 : index
    %c0_10 = arith.constant 0 : index
    %15 = vector.load %arg4[%c0_8, %c0_9, %c0_10] : memref<1x8x32xf32, #tpu.memory_space<vmem>>, vector<1x8x32xf32>
    %16 = vector.shape_cast %15 : vector<1x8x32xf32> to vector<8x32xf32>
    %17 = vector.shape_cast %14 : vector<8x32xf32> to vector<1x8x32xf32>
    tpu.vector_store %arg4[%c0_8, %c0_9, %c0_10], %17 {strides = array<i32>} : memref<1x8x32xf32, #tpu.memory_space<vmem>>, vector<1x8x32xf32>,
    return
  }
  func.func @transform_0(%arg0: i32) -> (i32, i32, i32) {
    %c0_i32 = arith.constant 0 : i32
    %c0_i32_0 = arith.constant 0 : i32
    %c0_i32_1 = arith.constant 0 : i32
    return %arg0, %c0_i32, %c0_i32_0 : i32, i32, i32
  }
  func.func @transform_1(%arg0: i32) -> (i32, i32) {
    %c0_i32 = arith.constant 0 : i32
    %c0_i32_0 = arith.constant 0 : i32
    %c0_i32_1 = arith.constant 0 : i32
    return %c0_i32, %c0_i32_0 : i32, i32
  }
  func.func @transform_2(%arg0: i32) -> (i32, i32) {
    %c0_i32 = arith.constant 0 : i32
    %c0_i32_0 = arith.constant 0 : i32
    %c0_i32_1 = arith.constant 0 : i32
    return %c0_i32, %c0_i32_0 : i32, i32
  }
  func.func @transform_3(%arg0: i32) -> (i32, i32, i32) {
    %c0_i32 = arith.constant 0 : i32
    %c0_i32_0 = arith.constant 0 : i32
    %c0_i32_1 = arith.constant 0 : i32
    return %arg0, %c0_i32, %c0_i32_0 : i32, i32, i32
  }
}

module attributes {stable_mosaic.version = 11 : i64} {
  func.func @_bcn_layer_kernel(%arg0: i32, %arg1: memref<2xi32, #tpu.memory_space<smem>>, %arg2: memref<1x8x32xf32, #tpu.memory_space<vmem>>, %arg3: memref<1x8x32xf32, #tpu.memory_space<vmem>>, %arg4: memref<3x32x32xf32, #tpu.memory_space<vmem>>, %arg5: memref<3x1x32xf32, #tpu.memory_space<vmem>>, %arg6: memref<32x32xf32, #tpu.memory_space<vmem>>, %arg7: memref<1x32xf32, #tpu.memory_space<vmem>>, %arg8: memref<2x1x32xf32, #tpu.memory_space<vmem>>, %arg9: memref<32x64xf32, #tpu.memory_space<vmem>>, %arg10: memref<1x64xf32, #tpu.memory_space<vmem>>, %arg11: memref<64x32xf32, #tpu.memory_space<vmem>>, %arg12: memref<1x32xf32, #tpu.memory_space<vmem>>, %arg13: memref<2x1x32xf32, #tpu.memory_space<vmem>>, %arg14: memref<1x8x32xf32, #tpu.memory_space<vmem>>) attributes {dimension_semantics = [#tpu.dimension_semantics<parallel>], iteration_bounds = array<i64: 2>, scalar_prefetch = 1 : i64, scratch_operands = 0 : i64, tpu.core_type = #tpu.core_type<tc>, window_params = [{transform_indices = @transform_0, window_bounds = array<i64: 1, 8, 32>}, {transform_indices = @transform_1, window_bounds = array<i64: 1, 8, 32>}, {pipeline_mode = #tpu.pipeline_mode<synchronous>, transform_indices = @transform_2, window_bounds = array<i64: 3, 32, 32>}, {pipeline_mode = #tpu.pipeline_mode<synchronous>, transform_indices = @transform_3, window_bounds = array<i64: 3, 1, 32>}, {pipeline_mode = #tpu.pipeline_mode<synchronous>, transform_indices = @transform_4, window_bounds = array<i64: 32, 32>}, {pipeline_mode = #tpu.pipeline_mode<synchronous>, transform_indices = @transform_5, window_bounds = array<i64: 1, 32>}, {pipeline_mode = #tpu.pipeline_mode<synchronous>, transform_indices = @transform_6, window_bounds = array<i64: 2, 1, 32>}, {pipeline_mode = #tpu.pipeline_mode<synchronous>, transform_indices = @transform_7, window_bounds = array<i64: 32, 64>}, {pipeline_mode = #tpu.pipeline_mode<synchronous>, transform_indices = @transform_8, window_bounds = array<i64: 1, 64>}, {pipeline_mode = #tpu.pipeline_mode<synchronous>, transform_indices = @transform_9, window_bounds = array<i64: 64, 32>}, {pipeline_mode = #tpu.pipeline_mode<synchronous>, transform_indices = @transform_10, window_bounds = array<i64: 1, 32>}, {pipeline_mode = #tpu.pipeline_mode<synchronous>, transform_indices = @transform_11, window_bounds = array<i64: 2, 1, 32>}, {transform_indices = @transform_12, window_bounds = array<i64: 1, 8, 32>}]} {
    %0 = arith.index_cast %arg0 : i32 to index
    %1 = memref.load %arg1[%0] : memref<2xi32, #tpu.memory_space<smem>>
    %c0 = arith.constant 0 : index
    %c0_0 = arith.constant 0 : index
    %c0_1 = arith.constant 0 : index
    %2 = vector.load %arg2[%c0, %c0_0, %c0_1] : memref<1x8x32xf32, #tpu.memory_space<vmem>>, vector<1x8x32xf32>
    %3 = vector.shape_cast %2 : vector<1x8x32xf32> to vector<8x32xf32>
    %c0_2 = arith.constant 0 : index
    %c0_3 = arith.constant 0 : index
    %c0_4 = arith.constant 0 : index
    %4 = vector.load %arg3[%c0_2, %c0_3, %c0_4] : memref<1x8x32xf32, #tpu.memory_space<vmem>>, vector<1x8x32xf32>
    %5 = vector.shape_cast %4 : vector<1x8x32xf32> to vector<8x32xf32>
    %c0_5 = arith.constant 0 : index
    %c0_6 = arith.constant 0 : index
    %c0_7 = arith.constant 0 : index
    %6 = vector.load %arg4[%c0_5, %c0_6, %c0_7] : memref<3x32x32xf32, #tpu.memory_space<vmem>>, vector<1x32x32xf32>
    %7 = vector.shape_cast %6 : vector<1x32x32xf32> to vector<32x32xf32>
    %cst = arith.constant dense<0.000000e+00> : vector<8x32xf32>
    %8 = tpu.matmul %3, %7, %cst {dimension_numbers = #tpu.dot_dimension_numbers<[1], [0], [0], [1], [0, 0, 1, 1], [], []>} : vector<8x32xf32>, vector<32x32xf32>, vector<8x32xf32> -> vector<8x32xf32>
    %c0_8 = arith.constant 0 : index
    %c0_9 = arith.constant 0 : index
    %c0_10 = arith.constant 0 : index
    %9 = vector.load %arg5[%c0_8, %c0_9, %c0_10] : memref<3x1x32xf32, #tpu.memory_space<vmem>>, vector<1x1x32xf32>
    %10 = vector.shape_cast %9 : vector<1x1x32xf32> to vector<1x32xf32>
    %11 = vector.broadcast %10 : vector<1x32xf32> to vector<8x32xf32>
    %12 = arith.addf %8, %11 : vector<8x32xf32>
    %c1 = arith.constant 1 : index
    %c0_11 = arith.constant 0 : index
    %c0_12 = arith.constant 0 : index
    %13 = vector.load %arg4[%c1, %c0_11, %c0_12] : memref<3x32x32xf32, #tpu.memory_space<vmem>>, vector<1x32x32xf32>
    %14 = vector.shape_cast %13 : vector<1x32x32xf32> to vector<32x32xf32>
    %cst_13 = arith.constant dense<0.000000e+00> : vector<8x32xf32>
    %15 = tpu.matmul %5, %14, %cst_13 {dimension_numbers = #tpu.dot_dimension_numbers<[1], [0], [0], [1], [0, 0, 1, 1], [], []>} : vector<8x32xf32>, vector<32x32xf32>, vector<8x32xf32> -> vector<8x32xf32>
    %c1_14 = arith.constant 1 : index
    %c0_15 = arith.constant 0 : index
    %c0_16 = arith.constant 0 : index
    %16 = vector.load %arg5[%c1_14, %c0_15, %c0_16] : memref<3x1x32xf32, #tpu.memory_space<vmem>>, vector<1x1x32xf32>
    %17 = vector.shape_cast %16 : vector<1x1x32xf32> to vector<1x32xf32>
    %18 = vector.broadcast %17 : vector<1x32xf32> to vector<8x32xf32>
    %19 = arith.addf %15, %18 : vector<8x32xf32>
    %c2 = arith.constant 2 : index
    %c0_17 = arith.constant 0 : index
    %c0_18 = arith.constant 0 : index
    %20 = vector.load %arg4[%c2, %c0_17, %c0_18] : memref<3x32x32xf32, #tpu.memory_space<vmem>>, vector<1x32x32xf32>
    %21 = vector.shape_cast %20 : vector<1x32x32xf32> to vector<32x32xf32>
    %cst_19 = arith.constant dense<0.000000e+00> : vector<8x32xf32>
    %22 = tpu.matmul %5, %21, %cst_19 {dimension_numbers = #tpu.dot_dimension_numbers<[1], [0], [0], [1], [0, 0, 1, 1], [], []>} : vector<8x32xf32>, vector<32x32xf32>, vector<8x32xf32> -> vector<8x32xf32>
    %c2_20 = arith.constant 2 : index
    %c0_21 = arith.constant 0 : index
    %c0_22 = arith.constant 0 : index
    %23 = vector.load %arg5[%c2_20, %c0_21, %c0_22] : memref<3x1x32xf32, #tpu.memory_space<vmem>>, vector<1x1x32xf32>
    %24 = vector.shape_cast %23 : vector<1x1x32xf32> to vector<1x32xf32>
    %25 = vector.broadcast %24 : vector<1x32xf32> to vector<8x32xf32>
    %26 = arith.addf %22, %25 : vector<8x32xf32>
    %27 = tpu.iota {dimensions = array<i32: 0>} : vector<8x8xi32>
    %28 = tpu.iota {dimensions = array<i32: 1>} : vector<8x8xi32>
    %29 = arith.cmpi eq, %28, %27 : vector<8x8xi32>
    %30 = vector.broadcast %1 : i32 to vector<8x8xi32>
    %31 = arith.cmpi sge, %28, %30 : vector<8x8xi32>
    %32 = arith.ori %29, %31 : vector<8x8xi1>
    %33 = vector.extract_strided_slice %12 {offsets = [0, 0], sizes = [8, 8], strides = [1, 1]} : vector<8x32xf32> to vector<8x8xf32>
    %34 = vector.extract_strided_slice %19 {offsets = [0, 0], sizes = [8, 8], strides = [1, 1]} : vector<8x32xf32> to vector<8x8xf32>
    %35 = vector.extract_strided_slice %26 {offsets = [0, 0], sizes = [8, 8], strides = [1, 1]} : vector<8x32xf32> to vector<8x8xf32>
    %cst_23 = arith.constant dense<0.000000e+00> : vector<8x8xf32>
    %36 = tpu.matmul %33, %34, %cst_23 {dimension_numbers = #tpu.dot_dimension_numbers<[1], [1], [0], [0], [0, 0, 1, 0], [], []>} : vector<8x8xf32>, vector<8x8xf32>, vector<8x8xf32> -> vector<8x8xf32>
    %cst_24 = arith.constant 0.353553385 : f32
    %37 = vector.broadcast %cst_24 : f32 to vector<8x8xf32>
    %38 = arith.mulf %36, %37 : vector<8x8xf32>
    %cst_25 = arith.constant -1.000000e+30 : f32
    %39 = vector.broadcast %cst_25 : f32 to vector<8x8xf32>
    %40 = arith.select %32, %39, %38 : vector<8x8xi1>, vector<8x8xf32>
    %cst_26 = arith.constant dense<0xFF800000> : vector<8xf32>
    %41 = vector.multi_reduction <maximumf>, %40, %cst_26 [1] : vector<8x8xf32> to vector<8xf32>
    %42 = vector.shape_cast %41 : vector<8xf32> to vector<8x1xf32>
    %43 = vector.broadcast %42 : vector<8x1xf32> to vector<8x8xf32>
    %44 = arith.subf %40, %43 : vector<8x8xf32>
    %45 = math.exp %44 : vector<8x8xf32>
    %cst_27 = arith.constant dense<0.000000e+00> : vector<8xf32>
    %46 = vector.multi_reduction <add>, %45, %cst_27 [1] : vector<8x8xf32> to vector<8xf32>
    %47 = vector.shape_cast %46 : vector<8xf32> to vector<8x1xf32>
    %48 = vector.broadcast %47 : vector<8x1xf32> to vector<8x8xf32>
    %49 = arith.divf %45, %48 : vector<8x8xf32>
    %cst_28 = arith.constant dense<0.000000e+00> : vector<8x8xf32>
    %50 = tpu.matmul %49, %35, %cst_28 {dimension_numbers = #tpu.dot_dimension_numbers<[1], [0], [0], [1], [0, 0, 1, 1], [], []>} : vector<8x8xf32>, vector<8x8xf32>, vector<8x8xf32> -> vector<8x8xf32>
    %51 = vector.extract_strided_slice %12 {offsets = [0, 8], sizes = [8, 8], strides = [1, 1]} : vector<8x32xf32> to vector<8x8xf32>
    %52 = vector.extract_strided_slice %19 {offsets = [0, 8], sizes = [8, 8], strides = [1, 1]} : vector<8x32xf32> to vector<8x8xf32>
    %53 = vector.extract_strided_slice %26 {offsets = [0, 8], sizes = [8, 8], strides = [1, 1]} : vector<8x32xf32> to vector<8x8xf32>
    %cst_29 = arith.constant dense<0.000000e+00> : vector<8x8xf32>
    %54 = tpu.matmul %51, %52, %cst_29 {dimension_numbers = #tpu.dot_dimension_numbers<[1], [1], [0], [0], [0, 0, 1, 0], [], []>} : vector<8x8xf32>, vector<8x8xf32>, vector<8x8xf32> -> vector<8x8xf32>
    %cst_30 = arith.constant 0.353553385 : f32
    %55 = vector.broadcast %cst_30 : f32 to vector<8x8xf32>
    %56 = arith.mulf %54, %55 : vector<8x8xf32>
    %cst_31 = arith.constant -1.000000e+30 : f32
    %57 = vector.broadcast %cst_31 : f32 to vector<8x8xf32>
    %58 = arith.select %32, %57, %56 : vector<8x8xi1>, vector<8x8xf32>
    %cst_32 = arith.constant dense<0xFF800000> : vector<8xf32>
    %59 = vector.multi_reduction <maximumf>, %58, %cst_32 [1] : vector<8x8xf32> to vector<8xf32>
    %60 = vector.shape_cast %59 : vector<8xf32> to vector<8x1xf32>
    %61 = vector.broadcast %60 : vector<8x1xf32> to vector<8x8xf32>
    %62 = arith.subf %58, %61 : vector<8x8xf32>
    %63 = math.exp %62 : vector<8x8xf32>
    %cst_33 = arith.constant dense<0.000000e+00> : vector<8xf32>
    %64 = vector.multi_reduction <add>, %63, %cst_33 [1] : vector<8x8xf32> to vector<8xf32>
    %65 = vector.shape_cast %64 : vector<8xf32> to vector<8x1xf32>
    %66 = vector.broadcast %65 : vector<8x1xf32> to vector<8x8xf32>
    %67 = arith.divf %63, %66 : vector<8x8xf32>
    %cst_34 = arith.constant dense<0.000000e+00> : vector<8x8xf32>
    %68 = tpu.matmul %67, %53, %cst_34 {dimension_numbers = #tpu.dot_dimension_numbers<[1], [0], [0], [1], [0, 0, 1, 1], [], []>} : vector<8x8xf32>, vector<8x8xf32>, vector<8x8xf32> -> vector<8x8xf32>
    %69 = vector.extract_strided_slice %12 {offsets = [0, 16], sizes = [8, 8], strides = [1, 1]} : vector<8x32xf32> to vector<8x8xf32>
    %70 = vector.extract_strided_slice %19 {offsets = [0, 16], sizes = [8, 8], strides = [1, 1]} : vector<8x32xf32> to vector<8x8xf32>
    %71 = vector.extract_strided_slice %26 {offsets = [0, 16], sizes = [8, 8], strides = [1, 1]} : vector<8x32xf32> to vector<8x8xf32>
    %cst_35 = arith.constant dense<0.000000e+00> : vector<8x8xf32>
    %72 = tpu.matmul %69, %70, %cst_35 {dimension_numbers = #tpu.dot_dimension_numbers<[1], [1], [0], [0], [0, 0, 1, 0], [], []>} : vector<8x8xf32>, vector<8x8xf32>, vector<8x8xf32> -> vector<8x8xf32>
    %cst_36 = arith.constant 0.353553385 : f32
    %73 = vector.broadcast %cst_36 : f32 to vector<8x8xf32>
    %74 = arith.mulf %72, %73 : vector<8x8xf32>
    %cst_37 = arith.constant -1.000000e+30 : f32
    %75 = vector.broadcast %cst_37 : f32 to vector<8x8xf32>
    %76 = arith.select %32, %75, %74 : vector<8x8xi1>, vector<8x8xf32>
    %cst_38 = arith.constant dense<0xFF800000> : vector<8xf32>
    %77 = vector.multi_reduction <maximumf>, %76, %cst_38 [1] : vector<8x8xf32> to vector<8xf32>
    %78 = vector.shape_cast %77 : vector<8xf32> to vector<8x1xf32>
    %79 = vector.broadcast %78 : vector<8x1xf32> to vector<8x8xf32>
    %80 = arith.subf %76, %79 : vector<8x8xf32>
    %81 = math.exp %80 : vector<8x8xf32>
    %cst_39 = arith.constant dense<0.000000e+00> : vector<8xf32>
    %82 = vector.multi_reduction <add>, %81, %cst_39 [1] : vector<8x8xf32> to vector<8xf32>
    %83 = vector.shape_cast %82 : vector<8xf32> to vector<8x1xf32>
    %84 = vector.broadcast %83 : vector<8x1xf32> to vector<8x8xf32>
    %85 = arith.divf %81, %84 : vector<8x8xf32>
    %cst_40 = arith.constant dense<0.000000e+00> : vector<8x8xf32>
    %86 = tpu.matmul %85, %71, %cst_40 {dimension_numbers = #tpu.dot_dimension_numbers<[1], [0], [0], [1], [0, 0, 1, 1], [], []>} : vector<8x8xf32>, vector<8x8xf32>, vector<8x8xf32> -> vector<8x8xf32>
    %87 = vector.extract_strided_slice %12 {offsets = [0, 24], sizes = [8, 8], strides = [1, 1]} : vector<8x32xf32> to vector<8x8xf32>
    %88 = vector.extract_strided_slice %19 {offsets = [0, 24], sizes = [8, 8], strides = [1, 1]} : vector<8x32xf32> to vector<8x8xf32>
    %89 = vector.extract_strided_slice %26 {offsets = [0, 24], sizes = [8, 8], strides = [1, 1]} : vector<8x32xf32> to vector<8x8xf32>
    %cst_41 = arith.constant dense<0.000000e+00> : vector<8x8xf32>
    %90 = tpu.matmul %87, %88, %cst_41 {dimension_numbers = #tpu.dot_dimension_numbers<[1], [1], [0], [0], [0, 0, 1, 0], [], []>} : vector<8x8xf32>, vector<8x8xf32>, vector<8x8xf32> -> vector<8x8xf32>
    %cst_42 = arith.constant 0.353553385 : f32
    %91 = vector.broadcast %cst_42 : f32 to vector<8x8xf32>
    %92 = arith.mulf %90, %91 : vector<8x8xf32>
    %cst_43 = arith.constant -1.000000e+30 : f32
    %93 = vector.broadcast %cst_43 : f32 to vector<8x8xf32>
    %94 = arith.select %32, %93, %92 : vector<8x8xi1>, vector<8x8xf32>
    %cst_44 = arith.constant dense<0xFF800000> : vector<8xf32>
    %95 = vector.multi_reduction <maximumf>, %94, %cst_44 [1] : vector<8x8xf32> to vector<8xf32>
    %96 = vector.shape_cast %95 : vector<8xf32> to vector<8x1xf32>
    %97 = vector.broadcast %96 : vector<8x1xf32> to vector<8x8xf32>
    %98 = arith.subf %94, %97 : vector<8x8xf32>
    %99 = math.exp %98 : vector<8x8xf32>
    %cst_45 = arith.constant dense<0.000000e+00> : vector<8xf32>
    %100 = vector.multi_reduction <add>, %99, %cst_45 [1] : vector<8x8xf32> to vector<8xf32>
    %101 = vector.shape_cast %100 : vector<8xf32> to vector<8x1xf32>
    %102 = vector.broadcast %101 : vector<8x1xf32> to vector<8x8xf32>
    %103 = arith.divf %99, %102 : vector<8x8xf32>
    %cst_46 = arith.constant dense<0.000000e+00> : vector<8x8xf32>
    %104 = tpu.matmul %103, %89, %cst_46 {dimension_numbers = #tpu.dot_dimension_numbers<[1], [0], [0], [1], [0, 0, 1, 1], [], []>} : vector<8x8xf32>, vector<8x8xf32>, vector<8x8xf32> -> vector<8x8xf32>
    %105 = tpu.concatenate %50, %68, %86, %104 in 1 : vector<8x8xf32>, vector<8x8xf32>, vector<8x8xf32>, vector<8x8xf32> -> vector<8x32xf32>
    %c0_47 = arith.constant 0 : index
    %c0_48 = arith.constant 0 : index
    %106 = vector.load %arg6[%c0_47, %c0_48] : memref<32x32xf32, #tpu.memory_space<vmem>>, vector<32x32xf32>
    %cst_49 = arith.constant dense<0.000000e+00> : vector<8x32xf32>
    %107 = tpu.matmul %105, %106, %cst_49 {dimension_numbers = #tpu.dot_dimension_numbers<[1], [0], [0], [1], [0, 0, 1, 1], [], []>} : vector<8x32xf32>, vector<32x32xf32>, vector<8x32xf32> -> vector<8x32xf32>
    %c0_50 = arith.constant 0 : index
    %c0_51 = arith.constant 0 : index
    %108 = vector.load %arg7[%c0_50, %c0_51] : memref<1x32xf32, #tpu.memory_space<vmem>>, vector<1x32xf32>
    %109 = vector.broadcast %108 : vector<1x32xf32> to vector<8x32xf32>
    %110 = arith.addf %107, %109 : vector<8x32xf32>
    %111 = arith.addf %110, %3 : vector<8x32xf32>
    %cst_52 = arith.constant dense<0.000000e+00> : vector<8xf32>
    %112 = vector.multi_reduction <add>, %111, %cst_52 [1] : vector<8x32xf32> to vector<8xf32>
    %113 = vector.shape_cast %112 : vector<8xf32> to vector<8x1xf32>
    %cst_53 = arith.constant 3.200000e+01 : f32
    %114 = vector.broadcast %cst_53 : f32 to vector<8x1xf32>
    %115 = arith.divf %113, %114 : vector<8x1xf32>
    %116 = vector.broadcast %115 : vector<8x1xf32> to vector<8x32xf32>
    %117 = arith.subf %111, %116 : vector<8x32xf32>
    %118 = arith.mulf %117, %117 : vector<8x32xf32>
    %cst_54 = arith.constant dense<0.000000e+00> : vector<8xf32>
    %119 = vector.multi_reduction <add>, %118, %cst_54 [1] : vector<8x32xf32> to vector<8xf32>
    %120 = vector.shape_cast %119 : vector<8xf32> to vector<8x1xf32>
    %cst_55 = arith.constant 3.200000e+01 : f32
    %121 = vector.broadcast %cst_55 : f32 to vector<8x1xf32>
    %122 = arith.divf %120, %121 : vector<8x1xf32>
    %123 = vector.broadcast %115 : vector<8x1xf32> to vector<8x32xf32>
    %124 = arith.subf %111, %123 : vector<8x32xf32>
    %cst_56 = arith.constant 9.99999974E-6 : f32
    %125 = vector.broadcast %cst_56 : f32 to vector<8x1xf32>
    %126 = arith.addf %122, %125 : vector<8x1xf32>
    %127 = math.rsqrt %126 : vector<8x1xf32>
    %128 = vector.broadcast %127 : vector<8x1xf32> to vector<8x32xf32>
    %129 = arith.mulf %124, %128 : vector<8x32xf32>
    %c0_57 = arith.constant 0 : index
    %c0_58 = arith.constant 0 : index
    %c0_59 = arith.constant 0 : index
    %130 = vector.load %arg8[%c0_57, %c0_58, %c0_59] : memref<2x1x32xf32, #tpu.memory_space<vmem>>, vector<1x1x32xf32>
    %131 = vector.shape_cast %130 : vector<1x1x32xf32> to vector<1x32xf32>
    %132 = vector.broadcast %131 : vector<1x32xf32> to vector<8x32xf32>
    %133 = arith.mulf %129, %132 : vector<8x32xf32>
    %c1_60 = arith.constant 1 : index
    %c0_61 = arith.constant 0 : index
    %c0_62 = arith.constant 0 : index
    %134 = vector.load %arg8[%c1_60, %c0_61, %c0_62] : memref<2x1x32xf32, #tpu.memory_space<vmem>>, vector<1x1x32xf32>
    %135 = vector.shape_cast %134 : vector<1x1x32xf32> to vector<1x32xf32>
    %136 = vector.broadcast %135 : vector<1x32xf32> to vector<8x32xf32>
    %137 = arith.addf %133, %136 : vector<8x32xf32>
    %c0_63 = arith.constant 0 : index
    %c0_64 = arith.constant 0 : index
    %138 = vector.load %arg9[%c0_63, %c0_64] : memref<32x64xf32, #tpu.memory_space<vmem>>, vector<32x64xf32>
    %cst_65 = arith.constant dense<0.000000e+00> : vector<8x64xf32>
    %139 = tpu.matmul %137, %138, %cst_65 {dimension_numbers = #tpu.dot_dimension_numbers<[1], [0], [0], [1], [0, 0, 1, 1], [], []>} : vector<8x32xf32>, vector<32x64xf32>, vector<8x64xf32> -> vector<8x64xf32>
    %c0_66 = arith.constant 0 : index
    %c0_67 = arith.constant 0 : index
    %140 = vector.load %arg10[%c0_66, %c0_67] : memref<1x64xf32, #tpu.memory_space<vmem>>, vector<1x64xf32>
    %141 = vector.broadcast %140 : vector<1x64xf32> to vector<8x64xf32>
    %142 = arith.addf %139, %141 : vector<8x64xf32>
    %cst_68 = arith.constant 0.000000e+00 : f32
    %143 = vector.broadcast %cst_68 : f32 to vector<8x64xf32>
    %144 = arith.maximumf %142, %143 : vector<8x64xf32>
    %c0_69 = arith.constant 0 : index
    %c0_70 = arith.constant 0 : index
    %145 = vector.load %arg11[%c0_69, %c0_70] : memref<64x32xf32, #tpu.memory_space<vmem>>, vector<64x32xf32>
    %cst_71 = arith.constant dense<0.000000e+00> : vector<8x32xf32>
    %146 = tpu.matmul %144, %145, %cst_71 {dimension_numbers = #tpu.dot_dimension_numbers<[1], [0], [0], [1], [0, 0, 1, 1], [], []>} : vector<8x64xf32>, vector<64x32xf32>, vector<8x32xf32> -> vector<8x32xf32>
    %c0_72 = arith.constant 0 : index
    %c0_73 = arith.constant 0 : index
    %147 = vector.load %arg12[%c0_72, %c0_73] : memref<1x32xf32, #tpu.memory_space<vmem>>, vector<1x32xf32>
    %148 = vector.broadcast %147 : vector<1x32xf32> to vector<8x32xf32>
    %149 = arith.addf %146, %148 : vector<8x32xf32>
    %150 = arith.addf %149, %137 : vector<8x32xf32>
    %cst_74 = arith.constant dense<0.000000e+00> : vector<8xf32>
    %151 = vector.multi_reduction <add>, %150, %cst_74 [1] : vector<8x32xf32> to vector<8xf32>
    %152 = vector.shape_cast %151 : vector<8xf32> to vector<8x1xf32>
    %cst_75 = arith.constant 3.200000e+01 : f32
    %153 = vector.broadcast %cst_75 : f32 to vector<8x1xf32>
    %154 = arith.divf %152, %153 : vector<8x1xf32>
    %155 = vector.broadcast %154 : vector<8x1xf32> to vector<8x32xf32>
    %156 = arith.subf %150, %155 : vector<8x32xf32>
    %157 = arith.mulf %156, %156 : vector<8x32xf32>
    %cst_76 = arith.constant dense<0.000000e+00> : vector<8xf32>
    %158 = vector.multi_reduction <add>, %157, %cst_76 [1] : vector<8x32xf32> to vector<8xf32>
    %159 = vector.shape_cast %158 : vector<8xf32> to vector<8x1xf32>
    %cst_77 = arith.constant 3.200000e+01 : f32
    %160 = vector.broadcast %cst_77 : f32 to vector<8x1xf32>
    %161 = arith.divf %159, %160 : vector<8x1xf32>
    %162 = vector.broadcast %154 : vector<8x1xf32> to vector<8x32xf32>
    %163 = arith.subf %150, %162 : vector<8x32xf32>
    %cst_78 = arith.constant 9.99999974E-6 : f32
    %164 = vector.broadcast %cst_78 : f32 to vector<8x1xf32>
    %165 = arith.addf %161, %164 : vector<8x1xf32>
    %166 = math.rsqrt %165 : vector<8x1xf32>
    %167 = vector.broadcast %166 : vector<8x1xf32> to vector<8x32xf32>
    %168 = arith.mulf %163, %167 : vector<8x32xf32>
    %c0_79 = arith.constant 0 : index
    %c0_80 = arith.constant 0 : index
    %c0_81 = arith.constant 0 : index
    %169 = vector.load %arg13[%c0_79, %c0_80, %c0_81] : memref<2x1x32xf32, #tpu.memory_space<vmem>>, vector<1x1x32xf32>
    %170 = vector.shape_cast %169 : vector<1x1x32xf32> to vector<1x32xf32>
    %171 = vector.broadcast %170 : vector<1x32xf32> to vector<8x32xf32>
    %172 = arith.mulf %168, %171 : vector<8x32xf32>
    %c1_82 = arith.constant 1 : index
    %c0_83 = arith.constant 0 : index
    %c0_84 = arith.constant 0 : index
    %173 = vector.load %arg13[%c1_82, %c0_83, %c0_84] : memref<2x1x32xf32, #tpu.memory_space<vmem>>, vector<1x1x32xf32>
    %174 = vector.shape_cast %173 : vector<1x1x32xf32> to vector<1x32xf32>
    %175 = vector.broadcast %174 : vector<1x32xf32> to vector<8x32xf32>
    %176 = arith.addf %172, %175 : vector<8x32xf32>
    %c0_85 = arith.constant 0 : index
    %c0_86 = arith.constant 0 : index
    %c0_87 = arith.constant 0 : index
    %177 = vector.load %arg14[%c0_85, %c0_86, %c0_87] : memref<1x8x32xf32, #tpu.memory_space<vmem>>, vector<1x8x32xf32>
    %178 = vector.shape_cast %177 : vector<1x8x32xf32> to vector<8x32xf32>
    %179 = vector.shape_cast %176 : vector<8x32xf32> to vector<1x8x32xf32>
    tpu.vector_store %arg14[%c0_85, %c0_86, %c0_87], %179 {strides = array<i32>} : memref<1x8x32xf32, #tpu.memory_space<vmem>>, vector<1x8x32xf32>,
    return
  }
  func.func @transform_0(%arg0: i32, %arg1: memref<2xi32, #tpu.memory_space<smem>>) -> (i32, i32, i32) {
    %c0_i32 = arith.constant 0 : i32
    %c0_i32_0 = arith.constant 0 : i32
    %c0_i32_1 = arith.constant 0 : i32
    return %arg0, %c0_i32, %c0_i32_0 : i32, i32, i32
  }
  func.func @transform_1(%arg0: i32, %arg1: memref<2xi32, #tpu.memory_space<smem>>) -> (i32, i32, i32) {
    %c0_i32 = arith.constant 0 : i32
    %c0_i32_0 = arith.constant 0 : i32
    %c0_i32_1 = arith.constant 0 : i32
    return %arg0, %c0_i32, %c0_i32_0 : i32, i32, i32
  }
  func.func @transform_2(%arg0: i32, %arg1: memref<2xi32, #tpu.memory_space<smem>>) -> (i32, i32, i32) {
    %c0_i32 = arith.constant 0 : i32
    %c0_i32_0 = arith.constant 0 : i32
    %c0_i32_1 = arith.constant 0 : i32
    %c0_i32_2 = arith.constant 0 : i32
    return %c0_i32, %c0_i32_0, %c0_i32_1 : i32, i32, i32
  }
  func.func @transform_3(%arg0: i32, %arg1: memref<2xi32, #tpu.memory_space<smem>>) -> (i32, i32, i32) {
    %c0_i32 = arith.constant 0 : i32
    %c0_i32_0 = arith.constant 0 : i32
    %c0_i32_1 = arith.constant 0 : i32
    %c0_i32_2 = arith.constant 0 : i32
    return %c0_i32, %c0_i32_0, %c0_i32_1 : i32, i32, i32
  }
  func.func @transform_4(%arg0: i32, %arg1: memref<2xi32, #tpu.memory_space<smem>>) -> (i32, i32) {
    %c0_i32 = arith.constant 0 : i32
    %c0_i32_0 = arith.constant 0 : i32
    %c0_i32_1 = arith.constant 0 : i32
    return %c0_i32, %c0_i32_0 : i32, i32
  }
  func.func @transform_5(%arg0: i32, %arg1: memref<2xi32, #tpu.memory_space<smem>>) -> (i32, i32) {
    %c0_i32 = arith.constant 0 : i32
    %c0_i32_0 = arith.constant 0 : i32
    %c0_i32_1 = arith.constant 0 : i32
    return %c0_i32, %c0_i32_0 : i32, i32
  }
  func.func @transform_6(%arg0: i32, %arg1: memref<2xi32, #tpu.memory_space<smem>>) -> (i32, i32, i32) {
    %c0_i32 = arith.constant 0 : i32
    %c0_i32_0 = arith.constant 0 : i32
    %c0_i32_1 = arith.constant 0 : i32
    %c0_i32_2 = arith.constant 0 : i32
    return %c0_i32, %c0_i32_0, %c0_i32_1 : i32, i32, i32
  }
  func.func @transform_7(%arg0: i32, %arg1: memref<2xi32, #tpu.memory_space<smem>>) -> (i32, i32) {
    %c0_i32 = arith.constant 0 : i32
    %c0_i32_0 = arith.constant 0 : i32
    %c0_i32_1 = arith.constant 0 : i32
    return %c0_i32, %c0_i32_0 : i32, i32
  }
  func.func @transform_8(%arg0: i32, %arg1: memref<2xi32, #tpu.memory_space<smem>>) -> (i32, i32) {
    %c0_i32 = arith.constant 0 : i32
    %c0_i32_0 = arith.constant 0 : i32
    %c0_i32_1 = arith.constant 0 : i32
    return %c0_i32, %c0_i32_0 : i32, i32
  }
  func.func @transform_9(%arg0: i32, %arg1: memref<2xi32, #tpu.memory_space<smem>>) -> (i32, i32) {
    %c0_i32 = arith.constant 0 : i32
    %c0_i32_0 = arith.constant 0 : i32
    %c0_i32_1 = arith.constant 0 : i32
    return %c0_i32, %c0_i32_0 : i32, i32
  }
  func.func @transform_10(%arg0: i32, %arg1: memref<2xi32, #tpu.memory_space<smem>>) -> (i32, i32) {
    %c0_i32 = arith.constant 0 : i32
    %c0_i32_0 = arith.constant 0 : i32
    %c0_i32_1 = arith.constant 0 : i32
    return %c0_i32, %c0_i32_0 : i32, i32
  }
  func.func @transform_11(%arg0: i32, %arg1: memref<2xi32, #tpu.memory_space<smem>>) -> (i32, i32, i32) {
    %c0_i32 = arith.constant 0 : i32
    %c0_i32_0 = arith.constant 0 : i32
    %c0_i32_1 = arith.constant 0 : i32
    %c0_i32_2 = arith.constant 0 : i32
    return %c0_i32, %c0_i32_0, %c0_i32_1 : i32, i32, i32
  }
  func.func @transform_12(%arg0: i32, %arg1: memref<2xi32, #tpu.memory_space<smem>>) -> (i32, i32, i32) {
    %c0_i32 = arith.constant 0 : i32
    %c0_i32_0 = arith.constant 0 : i32
    %c0_i32_1 = arith.constant 0 : i32
    return %arg0, %c0_i32, %c0_i32_0 : i32, i32, i32
  }
}

</mosaic_0001>

<bundles_post_ra>
// kernel: position_aware_forward.18
= control target key start
LH: loop header
LB: loop body
LE: loop exit
PB: predicated region body
PF: predicated region fallthrough
CT: control target
= control target key end

     0   :  { %s581_s12 = smov 0   ;;  %s653_s0 = inlined_call_operand.vmem [shape: bf16[2,128,27], index: 0, kind: input, shape index: {}]   ;;  %s654_s1 = inlined_call_operand.vmem [shape: bf16[27,32], index: 1, kind: input, shape index: {}]   ;;  %s655_s2 = inlined_call_operand.vmem [shape: f32[1,32], index: 2, kind: input, shape index: {}]   ;;  %s656_s3 = inlined_call_operand.vmem [shape: f32[2,128,32], index: 3, kind: output, shape index: {}]  }
   0x1 LB: > { %s467_s13 = sadd.s32 4294967295, %s558_s12   ;;  %p471_p0 = scmp.ge.s32.totalorder %s558_s12, 1  ;;  %s558_s12 = sphi %s581_s12, %s13_s12  }
   0x2   : > { %p137_p1 = scmp.lt.s32.totalorder %s558_s12, 3 }
   0x4   : > { %p138_p2 = pnand %p471_p0, %p137_p1 }
   0x5   : > { %v542_v0 = vld [vmem:[%s654_s1] sm:$0xff] (!%p138_p2)   ;;  %vm275_vm0 = vcmask (!%p138_p2), 1044480   ;;  %v543_v1 = vld [vmem:[%s654_s1 + $0x8] sm:$0x3f] (!%p138_p2)   ;;  %vm276_vm1 = vcmask (!%p138_p2), 1045504   ;;  %p161_p3 = scmp.lt.s32.totalorder (!%p138_p2), %s467_s13, 1 }
   0x6   : > { %141 = sbr.rel (%p138_p2) target bundleno = 247 (0xf7), region = 32  ;;  %509 = vmatprep.subr.bf16.mxu0 (!%p138_p2), %v542_v0  ;;  %529 = vmatprep.subr.bf16.mxu1 (!%p138_p2), %v542_v0  ;;  %v560_v2 = vmov (!%p138_p2), 65535   ;;  %vm250_vm2 = vcmask (!%p138_p2), 220160   ;;  %v476_v14 = vld [vmem:[%s655_s2] ss:$0 sm:$0xff] (!%p138_p2)  ;;  %vm395_vm3 = vcmask (!%p138_p2), 261120  }
   0x7   : > { %510 = vmatpush3.bf16.msra.mxu0 (!%p138_p2), %v542_v0  ;;  %531 = vmatpush3.bf16.msra.mxu1 (!%p138_p2), %v542_v0  ;;  %v277_v3 = vsel (!%p138_p2), %vm275_vm0, 4294967295, %v560_v2 }
   0x8   : > { %v278_v4 = vsel (!%p138_p2), %vm276_vm1, %v277_v3, 0 }
   0x9   : > { %v280_v5 = vand.u32 (!%p138_p2), %v543_v1, %v278_v4 }
   0xb   : > { %511 = vmatprep.subr.bf16.mxu0 (!%p138_p2), %v280_v5  ;;  %530 = vmatprep.subr.bf16.mxu1 (!%p138_p2), %v280_v5 }
   0xc   : > { %512 = vmatpush3.bf16.msra.mxu0 (!%p138_p2), %v280_v5  ;;  %532 = vmatpush3.bf16.msra.mxu1 (!%p138_p2), %v280_v5 }
   0xd   : > { %s658_s13 = smov (!%p161_p3, %s467_s13), 1 }
   0xe   : > { %s497_s18 = sshll.u32 %s658_s13, 6  ;;  %s498_s24 = sshll.u32 %s658_s13, 7 }
   0xf   : > { %s165_s21 = scalar_lea.vmem %s653_s0, %s497_s18  ;;  %s616_s27 = scalar_lea.vmem %s656_s3, %s498_s24 }
  0x10   : > { %v544_v6 = vld [vmem:[%s165_s21] sm:$0xff]   ;;  %v546_v8 = vld [vmem:[%s165_s21 + $0x8] sm:$0xff]   ;;  %v548_v10 = vld [vmem:[%s165_s21 + $0x10] sm:$0xff]  }
  0x11   : > { %v545_v7 = vld [vmem:[%s165_s21 + $0x20] sm:$0xff]   ;;  %513 = vmatprep.mubr.msk.bf16.mxu0 %vm250_vm2, %v544_v6  ;;  %v547_v9 = vld [vmem:[%s165_s21 + $0x28] sm:$0xff]   ;;  %v549_v11 = vld [vmem:[%s165_s21 + $0x30] sm:$0xff]  }
  0x12   : > { %521 = vmatprep.mubr.msk.bf16.mxu1 %vm250_vm2, %v545_v7  ;;  %514 = vmatmul.mubr.msk.bf16.vlgmr.msra.gmra.mrb[0].mxu0 %vm250_vm2, %v546_v8  ;;  %v550_v12 = vld [vmem:[%s165_s21 + $0x18] sm:$0xff]  }
  0x13   : > { %522 = vmatmul.mubr.msk.bf16.vlgmr.msra.gmra.mrb[0].mxu1 %vm250_vm2, %v547_v9  ;;  %517 = vmatprep.mubr.msk.bf16.mxu0 %vm250_vm2, %v548_v10  ;;  %v551_v13 = vld [vmem:[%s165_s21 + $0x38] sm:$0xff]  }
  0x14   : > { %525 = vmatprep.mubr.msk.bf16.mxu1 %vm250_vm2, %v549_v11 }
  0x1a   : > { %518 = vmatmul.mubr.msk.bf16.gmra.mrb[4].mxu0 %vm250_vm2, %v550_v12 }
  0x1b   : > { %526 = vmatmul.mubr.msk.bf16.gmra.mrb[4].mxu1 %vm250_vm2, %v551_v13 }
  0xe5   : > { %v515_v15 = vpop.f32.mrb[0].mxu0 }
  0xe6   : > { %v325_v16 = vadd.f32 %v515_v15, %v476_v14  ;;  %v523_v17 = vpop.f32.mrb[0].mxu1  ;;  %v316_v18 = vpop.f32.mrb[1].mxu0 }
  0xe7   : > { %v357_v19 = vadd.f32 %v523_v17, %v476_v14  ;;  %v317_v20 = vadd.f32 %v476_v14, %v316_v18  ;;  %v348_v21 = vpop.f32.mrb[1].mxu1  ;;  %v516_v22 = vpop.f32.mrb[2].mxu0 }
  0xe8   : > { %v381_v23 = vmax.f32 %v325_v16, 0.0  ;;  %v349_v24 = vadd.f32 %v476_v14, %v348_v21  ;;  %v328_v25 = vadd.f32 %v516_v22, %v476_v14  ;;  %v524_v26 = vpop.f32.mrb[2].mxu1  ;;  %v319_v27 = vpop.f32.mrb[3].mxu0 }
  0xe9   : > { %v389_v28 = vmax.f32 %v357_v19, 0.0  ;;  %v379_v29 = vmax.f32 %v317_v20, 0.0  ;;  %v360_v30 = vadd.f32 %v524_v26, %v476_v14  ;;  %v320_v31 = vadd.f32 %v476_v14, %v319_v27  ;;  %v351_v32 = vpop.f32.mrb[3].mxu1 }
  0xea   : > { %398 = vst.msk [vmem:[%s616_s27 + $0x10] sm:$0xff] %vm395_vm3, %v381_v23  ;;  %v387_v33 = vmax.f32 %v349_v24, 0.0  ;;  %v382_v34 = vmax.f32 %v328_v25, 0.0  ;;  %v352_v35 = vadd.f32 %v476_v14, %v351_v32 }
  0xeb   : > { %406 = vst.msk [vmem:[%s616_s27 + $0x50] sm:$0xff] %vm395_vm3, %v389_v28  ;;  %396 = vst.msk [vmem:[%s616_s27] sm:$0xff] %vm395_vm3, %v379_v29  ;;  %v390_v36 = vmax.f32 %v360_v30, 0.0  ;;  %v380_v37 = vmax.f32 %v320_v31, 0.0 }
  0xec   : > { %404 = vst.msk [vmem:[%s616_s27 + $0x40] sm:$0xff] %vm395_vm3, %v387_v33  ;;  %399 = vst.msk [vmem:[%s616_s27 + $0x18] sm:$0xff] %vm395_vm3, %v382_v34  ;;  %v388_v38 = vmax.f32 %v352_v35, 0.0 }
  0xed   : > { %407 = vst.msk [vmem:[%s616_s27 + $0x58] sm:$0xff] %vm395_vm3, %v390_v36  ;;  %397 = vst.msk [vmem:[%s616_s27 + $0x8] sm:$0xff] %vm395_vm3, %v380_v37  ;;  %v519_v39 = vpop.f32.mrb[4].mxu0 }
  0xee   : > { %405 = vst.msk [vmem:[%s616_s27 + $0x48] sm:$0xff] %vm395_vm3, %v388_v38  ;;  %v341_v40 = vadd.f32 %v519_v39, %v476_v14  ;;  %v527_v41 = vpop.f32.mrb[4].mxu1  ;;  %v332_v42 = vpop.f32.mrb[5].mxu0 }
  0xef   : > { %v373_v43 = vadd.f32 %v527_v41, %v476_v14  ;;  %v333_v44 = vadd.f32 %v476_v14, %v332_v42  ;;  %v364_v45 = vpop.f32.mrb[5].mxu1  ;;  %v520_v46 = vpop.f32.mrb[6].mxu0 }
  0xf0   : > { %v385_v47 = vmax.f32 %v341_v40, 0.0  ;;  %v365_v48 = vadd.f32 %v476_v14, %v364_v45  ;;  %v344_v49 = vadd.f32 %v520_v46, %v476_v14  ;;  %v528_v50 = vpop.f32.mrb[6].mxu1  ;;  %v335_v51 = vpop.f32.mrb[7].mxu0 }
  0xf1   : > { %v393_v52 = vmax.f32 %v373_v43, 0.0  ;;  %v383_v53 = vmax.f32 %v333_v44, 0.0  ;;  %v376_v54 = vadd.f32 %v528_v50, %v476_v14  ;;  %v336_v55 = vadd.f32 %v476_v14, %v335_v51  ;;  %v367_v56 = vpop.f32.mrb[7].mxu1 }
  0xf2   : > { %402 = vst.msk [vmem:[%s616_s27 + $0x30] sm:$0xff] %vm395_vm3, %v385_v47  ;;  %v391_v57 = vmax.f32 %v365_v48, 0.0  ;;  %v386_v58 = vmax.f32 %v344_v49, 0.0  ;;  %v368_v59 = vadd.f32 %v476_v14, %v367_v56 }
  0xf3   : > { %410 = vst.msk [vmem:[%s616_s27 + $0x70] sm:$0xff] %vm395_vm3, %v393_v52  ;;  %400 = vst.msk [vmem:[%s616_s27 + $0x20] sm:$0xff] %vm395_vm3, %v383_v53  ;;  %v394_v60 = vmax.f32 %v376_v54, 0.0  ;;  %v384_v61 = vmax.f32 %v336_v55, 0.0 }
  0xf4   : > { %408 = vst.msk [vmem:[%s616_s27 + $0x60] sm:$0xff] %vm395_vm3, %v391_v57  ;;  %403 = vst.msk [vmem:[%s616_s27 + $0x38] sm:$0xff] %vm395_vm3, %v386_v58  ;;  %v392_v62 = vmax.f32 %v368_v59, 0.0 }
  0xf5   : > { %411 = vst.msk [vmem:[%s616_s27 + $0x78] sm:$0xff] %vm395_vm3, %v394_v60  ;;  %401 = vst.msk [vmem:[%s616_s27 + $0x28] sm:$0xff] %vm395_vm3, %v384_v61 }
  0xf6   : > { %409 = vst.msk [vmem:[%s616_s27 + $0x68] sm:$0xff] %vm395_vm3, %v392_v62 }
  0xf7 PF: > { %s13_s12 = sadd.s32 1, %s558_s12  }
  0xf8   : > { %p10_p4 = scmp.ge.s32.totalorder %s13_s12, 4  }
  0xfa   :  { %12 = sbr.rel (!%p10_p4) target bundleno = 1 (0x1), region = 62 }

// kernel: position_aware_forward.19
= control target key start
LH: loop header
LB: loop body
LE: loop exit
PB: predicated region body
PF: predicated region fallthrough
CT: control target
= control target key end

     0   :  { %s805_s12 = smov 0   ;;  %s919_s0 = inlined_call_operand.vmem [shape: bf16[2,64,288], index: 0, kind: input, shape index: {}]   ;;  %s920_s1 = inlined_call_operand.vmem [shape: bf16[288,8], index: 1, kind: input, shape index: {}]   ;;  %s921_s2 = inlined_call_operand.vmem [shape: f32[1,8], index: 2, kind: input, shape index: {}]   ;;  %s922_s3 = inlined_call_operand.vmem [shape: f32[2,64,8], index: 3, kind: output, shape index: {}]  }
   0x1 LB: > { %s614_s13 = sadd.s32 4294967295, %s783_s12   ;;  %p618_p0 = scmp.ge.s32.totalorder %s783_s12, 1  ;;  %s783_s12 = sphi %s805_s12, %s13_s12  }
   0x2   : > { %p137_p1 = scmp.lt.s32.totalorder %s783_s12, 3 }
   0x4   : > { %p138_p2 = pnand %p618_p0, %p137_p1 }
   0x5   : > { %v743_v0 = vld [vmem:[%s920_s1 + $0x40] sm:$0xff] (!%p138_p2)   ;;  %v745_v2 = vld [vmem:[%s920_s1 + $0x48] sm:$0xff] (!%p138_p2)   ;;  %p161_p3 = scmp.lt.s32.totalorder (!%p138_p2), %s614_s13, 1  ;;  %v747_v4 = vld [vmem:[%s920_s1 + $0x50] sm:$0xff] (!%p138_p2)   ;;  %vm399_vm0 = vcmask (!%p138_p2), 261120   ;;  %vm550_vm1 = vcmask (!%p138_p2), 64512  }
   0x6   : > { %141 = sbr.rel (%p138_p2) target bundleno = 278 (0x116), region = 32  ;;  %v744_v1 = vld [vmem:[%s920_s1] sm:$0xff] (!%p138_p2)   ;;  %660 = vmatprep.subr.bf16.mxu0 (!%p138_p2), %v743_v0  ;;  %718 = vmatprep.subr.bf16.mxu1 (!%p138_p2), %v743_v0  ;;  %v746_v3 = vld [vmem:[%s920_s1 + $0x8] sm:$0xff] (!%p138_p2)   ;;  %v748_v5 = vld [vmem:[%s920_s1 + $0x10] sm:$0xff] (!%p138_p2)  }
   0x7   : > { %661 = vmatpush3.bf16.msra.mxu0 (!%p138_p2), %v744_v1  ;;  %726 = vmatpush3.bf16.msra.mxu1 (!%p138_p2), %v744_v1  ;;  %v749_v6 = vld [vmem:[%s920_s1 + $0x58] sm:$0xff] (!%p138_p2)   ;;  %v751_v8 = vld [vmem:[%s920_s1 + $0x60] sm:$0xff] (!%p138_p2)   ;;  %v753_v10 = vld [vmem:[%s920_s1 + $0x68] sm:$0xff] (!%p138_p2)  }
   0x8   : > { %662 = vmatprep.subr.bf16.mxu0 (!%p138_p2), %v745_v2  ;;  %719 = vmatprep.subr.bf16.mxu1 (!%p138_p2), %v745_v2  ;;  %v750_v7 = vld [vmem:[%s920_s1 + $0x18] sm:$0xff] (!%p138_p2)   ;;  %v752_v9 = vld [vmem:[%s920_s1 + $0x20] sm:$0xff] (!%p138_p2)   ;;  %v754_v13 = vld [vmem:[%s920_s1 + $0x28] sm:$0xff] (!%p138_p2)  }
   0x9   : > { %v755_v14 = vld [vmem:[%s920_s1 + $0x70] sm:$0xff] (!%p138_p2)   ;;  %v757_v16 = vld [vmem:[%s920_s1 + $0x78] sm:$0xff] (!%p138_p2)   ;;  %v765_v18 = vld [vmem:[%s920_s1 + $0x80] sm:$0xff] (!%p138_p2)  }
   0xa   : > { %v756_v15 = vld [vmem:[%s920_s1 + $0x30] sm:$0xff] (!%p138_p2)   ;;  %v758_v17 = vld [vmem:[%s920_s1 + $0x38] sm:$0xff] (!%p138_p2)   ;;  %v766_v22 = vld [vmem:[%s920_s1 + $0x88] sm:$0xff] (!%p138_p2)  }
   0xb   : > { %663 = vmatpush3.bf16.msra.mxu0 (!%p138_p2), %v746_v3  ;;  %727 = vmatpush3.bf16.msra.mxu1 (!%p138_p2), %v746_v3  ;;  %v622_v42 = vld [vmem:[%s921_s2] ss:$0 sm:$0xff] (!%p138_p2) }
   0xc   : > { %664 = vmatprep.subr.bf16.mxu0 (!%p138_p2), %v747_v4  ;;  %720 = vmatprep.subr.bf16.mxu1 (!%p138_p2), %v747_v4 }
   0xd   : > { %s924_s13 = smov (!%p161_p3, %s614_s13), 1 }
   0xe   : > { %s734_s28 = smul.u32 96, %s924_s13  ;;  %s659_s4 = sshll.u32 %s924_s13, 6 }
   0xf   : > { %665 = vmatpush3.bf16.msra.mxu0 %v748_v5  ;;  %728 = vmatpush3.bf16.msra.mxu1 %v748_v5  ;;  %s898_s7 = scalar_lea.vmem %s922_s3, %s659_s4 }
  0x10   : > { %666 = vmatprep.subr.bf16.mxu0 %v749_v6  ;;  %721 = vmatprep.subr.bf16.mxu1 %v749_v6  ;;  %s846_s8 = scalar_lea.vmem %s919_s0, %s734_s28 }
  0x11   : > { %v761_v11 = vld [vmem:[%s846_s8 + $0x4] ss:$12 sps:$4 sm:$0xff]   ;;  %v764_v12 = vld [vmem:[%s846_s8 + $0x4c] ss:$12 sps:$4 sm:$0xff]   ;;  %v762_v20 = vld [vmem:[%s846_s8 + $0x48] ss:$12 sps:$4 sm:$0xff]  }
  0x12   : > { %444 = vmatprep.mubr.bf16.mxu0 %v761_v11  ;;  %468 = vmatprep.mubr.bf16.mxu1 %v764_v12  ;;  %v759_v19 = vld [vmem:[%s846_s8] ss:$12 sps:$4 sm:$0xff]   ;;  %v767_v21 = vld [vmem:[%s846_s8 + $0x1c] ss:$12 sps:$4 sm:$0xff]   ;;  %v770_v24 = vld [vmem:[%s846_s8 + $0x18] ss:$12 sps:$4 sm:$0xff]  }
  0x13   : > { %667 = vmatpush3.bf16.msra.mxu0 %v750_v7  ;;  %729 = vmatpush3.bf16.msra.mxu1 %v750_v7  ;;  %v769_v23 = vld [vmem:[%s846_s8 + $0x8] ss:$12 sps:$4 sm:$0xff]   ;;  %v771_v25 = vld [vmem:[%s846_s8 + $0x20] ss:$12 sps:$4 sm:$0xff]   ;;  %v774_v27 = vld [vmem:[%s846_s8 + $0x38] ss:$12 sps:$4 sm:$0xff]  }
  0x14   : > { %668 = vmatprep.subr.bf16.mxu0 %v751_v8  ;;  %722 = vmatprep.subr.bf16.mxu1 %v751_v8  ;;  %v772_v26 = vld [vmem:[%s846_s8 + $0x34] ss:$12 sps:$4 sm:$0xff]   ;;  %v775_v28 = vld [vmem:[%s846_s8 + $0x30] ss:$12 sps:$4 sm:$0xff]  }
  0x15   : > { %v776_v29 = vld [vmem:[%s846_s8 + $0x50] ss:$12 sps:$4 sm:$0xff]  }
  0x17   : > { %669 = vmatpush3.bf16.msra.mxu0 %v752_v9  ;;  %730 = vmatpush3.bf16.msra.mxu1 %v752_v9 }
  0x18   : > { %670 = vmatprep.subr.bf16.mxu0 %v753_v10  ;;  %723 = vmatprep.subr.bf16.mxu1 %v753_v10 }
  0x1b   : > { %671 = vmatpush3.bf16.msra.mxu0 %v754_v13  ;;  %731 = vmatpush3.bf16.msra.mxu1 %v754_v13 }
  0x1c   : > { %672 = vmatprep.subr.bf16.mxu0 %v755_v14  ;;  %724 = vmatprep.subr.bf16.mxu1 %v755_v14 }
  0x1f   : > { %673 = vmatpush3.bf16.msra.mxu0 %v756_v15  ;;  %732 = vmatpush3.bf16.msra.mxu1 %v756_v15 }
  0x20   : > { %674 = vmatprep.subr.bf16.mxu0 %v757_v16  ;;  %725 = vmatprep.subr.bf16.mxu1 %v757_v16 }
  0x23   : > { %675 = vmatpush3.bf16.msra.mxu0 %v758_v17  ;;  %733 = vmatpush3.bf16.msra.mxu1 %v758_v17 }
  0x24   : > { %706 = vmatprep.subr.bf16.mxu1 %v765_v18 }
  0x26   : > { %445 = vmatmul.mubr.bf16.vlgmr.msra.gmra.mrb[0].mxu0 %v759_v19  ;;  %469 = vmatmul.mubr.bf16.vlgmr.msra.gmra.mrb[0].mxu1 %v762_v20 }
  0x27   : > { %707 = vmatpush3.bf16.msra.mxu1 %v765_v18  ;;  %452 = vmatprep.mubr.bf16.mxu0 %v767_v21 }
  0x28   : > { %708 = vmatprep.subr.bf16.mxu1 %v766_v22  ;;  %710 = vmatprep.mubr.msk.bf16.mxu1 %vm399_vm0, %v769_v23 }
  0x2b   : > { %709 = vmatpush3.bf16.msra.mxu1 %v766_v22 }
  0x2e   : > { %453 = vmatmul.mubr.bf16.gmra.mrb[4].mxu0 %v770_v24  ;;  %711 = vmatmul.mubr.msk.bf16.vlgmr.msra.gmra.mrb[4].mxu1 %vm399_vm0, %v771_v25 }
  0x2f   : > { %460 = vmatprep.mubr.bf16.mxu0 %v772_v26  ;;  %714 = vmatprep.mubr.msk.bf16.mxu1 %vm399_vm0, %v774_v27 }
  0x36   : > { %461 = vmatmul.mubr.bf16.gmra.mrb[8].mxu0 %v775_v28  ;;  %715 = vmatmul.mubr.msk.bf16.gmra.mrb[8].mxu1 %vm399_vm0, %v776_v29 }
  0xf9   : > { %v676_v30 = vpop.f32.mrb[0].mxu0  ;;  %v694_v31 = vpop.f32.mrb[0].mxu1 }
  0xfa   : > { %v677_v32 = vpop.f32.mrb[1].mxu0  ;;  %v695_v33 = vpop.f32.mrb[1].mxu1 }
  0xfb   : > { %v678_v34 = vadd.f32 %v677_v32, %v676_v30  ;;  %v679_v35 = vpop.f32.mrb[2].mxu0  ;;  %v696_v36 = vadd.f32 %v695_v33, %v694_v31  ;;  %v697_v37 = vpop.f32.mrb[2].mxu1 }
  0xfc   : > { %v680_v38 = vpop.f32.mrb[3].mxu0  ;;  %v698_v39 = vpop.f32.mrb[3].mxu1 }
  0xfd   : > { %v681_v40 = vadd.f32 %v680_v38, %v679_v35  ;;  %v699_v41 = vadd.f32 %v698_v39, %v697_v37  ;;  %v447_v45 = vadd.f32 %v678_v34, %v622_v42  ;;  %v471_v62 = vadd.f32 %v696_v36, %v622_v42 }
  0xff   : > { %v450_v52 = vadd.f32 %v681_v40, %v622_v42  ;;  %v474_v6 = vadd.f32 %v699_v41, %v622_v42 }
 0x101   : > { %v682_v43 = vpop.f32.mrb[4].mxu0  ;;  %v712_v44 = vpop.f32.mrb[4].mxu1 }
 0x102   : > { %v683_v46 = vpop.f32.mrb[5].mxu0  ;;  %v511_v47 = vpop.f32.mrb[5].mxu1 }
 0x103   : > { %v684_v48 = vadd.f32 %v683_v46, %v682_v43  ;;  %v512_v49 = vadd.f32 %v511_v47, %v447_v45  ;;  %v685_v50 = vpop.f32.mrb[6].mxu0  ;;  %v713_v51 = vpop.f32.mrb[6].mxu1 }
 0x104   : > { %v686_v53 = vpop.f32.mrb[7].mxu0  ;;  %v514_v54 = vpop.f32.mrb[7].mxu1 }
 0x105   : > { %v455_v55 = vadd.f32 %v684_v48, %v622_v42  ;;  %v542_v56 = vmax.f32 %v512_v49, 0.0  ;;  %v687_v57 = vadd.f32 %v686_v53, %v685_v50  ;;  %v515_v58 = vadd.f32 %v514_v54, %v450_v52 }
 0x107   : > { %v520_v59 = vadd.f32 %v712_v44, %v455_v55  ;;  %551 = vst.msk [vmem:[%s898_s7] sm:$0xff] %vm550_vm1, %v542_v56  ;;  %v458_v60 = vadd.f32 %v687_v57, %v622_v42  ;;  %v543_v61 = vmax.f32 %v515_v58, 0.0 }
 0x109   : > { %v544_v63 = vmax.f32 %v520_v59, 0.0  ;;  %v523_v0 = vadd.f32 %v713_v51, %v458_v60  ;;  %552 = vst.msk [vmem:[%s898_s7 + $0x8] sm:$0xff] %vm550_vm1, %v543_v61  ;;  %v688_v1 = vpop.f32.mrb[8].mxu0  ;;  %v716_v2 = vpop.f32.mrb[8].mxu1 }
 0x10a   : > { %v536_v3 = vadd.f32 %v716_v2, %v471_v62  ;;  %v689_v4 = vpop.f32.mrb[9].mxu0  ;;  %v527_v5 = vpop.f32.mrb[9].mxu1 }
 0x10b   : > { %553 = vst.msk [vmem:[%s898_s7 + $0x10] sm:$0xff] %vm550_vm1, %v544_v63  ;;  %v545_v7 = vmax.f32 %v523_v0, 0.0  ;;  %v690_v8 = vadd.f32 %v689_v4, %v688_v1  ;;  %v691_v9 = vpop.f32.mrb[10].mxu0  ;;  %v717_v10 = vpop.f32.mrb[10].mxu1 }
 0x10c   : > { %v548_v11 = vmax.f32 %v536_v3, 0.0  ;;  %v539_v12 = vadd.f32 %v717_v10, %v474_v6  ;;  %v692_v13 = vpop.f32.mrb[11].mxu0  ;;  %v530_v14 = vpop.f32.mrb[11].mxu1 }
 0x10d   : > { %554 = vst.msk [vmem:[%s898_s7 + $0x18] sm:$0xff] %vm550_vm1, %v545_v7  ;;  %v463_v15 = vadd.f32 %v690_v8, %v622_v42  ;;  %v693_v16 = vadd.f32 %v692_v13, %v691_v9 }
 0x10e   : > { %557 = vst.msk [vmem:[%s898_s7 + $0x30] sm:$0xff] %vm550_vm1, %v548_v11  ;;  %v549_v17 = vmax.f32 %v539_v12, 0.0 }
 0x10f   : > { %v528_v18 = vadd.f32 %v527_v5, %v463_v15  ;;  %v466_v19 = vadd.f32 %v693_v16, %v622_v42 }
 0x110   : > { %558 = vst.msk [vmem:[%s898_s7 + $0x38] sm:$0xff] %vm550_vm1, %v549_v17 }
 0x111   : > { %v546_v20 = vmax.f32 %v528_v18, 0.0  ;;  %v531_v21 = vadd.f32 %v530_v14, %v466_v19 }
 0x113   : > { %555 = vst.msk [vmem:[%s898_s7 + $0x20] sm:$0xff] %vm550_vm1, %v546_v20  ;;  %v547_v22 = vmax.f32 %v531_v21, 0.0 }
 0x115   : > { %556 = vst.msk [vmem:[%s898_s7 + $0x28] sm:$0xff] %vm550_vm1, %v547_v22 }
 0x116 PF: > { %s13_s12 = sadd.s32 1, %s783_s12  }
 0x117   : > { %p10_p4 = scmp.ge.s32.totalorder %s13_s12, 4  }
 0x119   :  { %12 = sbr.rel (!%p10_p4) target bundleno = 1 (0x1), region = 62 }

// kernel: position_aware_forward.20
= control target key start
LH: loop header
LB: loop body
LE: loop exit
PB: predicated region body
PF: predicated region fallthrough
CT: control target
= control target key end

     0   :  { %s418_s12 = smov 0   ;;  %s453_s0 = inlined_call_operand.vmem [shape: bf16[2,16,72], index: 0, kind: input, shape index: {}]   ;;  %s454_s1 = inlined_call_operand.vmem [shape: bf16[72,8], index: 1, kind: input, shape index: {}]   ;;  %s455_s2 = inlined_call_operand.vmem [shape: f32[1,8], index: 2, kind: input, shape index: {}]   ;;  %s456_s3 = inlined_call_operand.vmem [shape: f32[2,16,8], index: 3, kind: output, shape index: {}]  }
   0x1 LB: > { %s331_s13 = sadd.s32 4294967295, %s394_s12   ;;  %p335_p0 = scmp.ge.s32.totalorder %s394_s12, 1  ;;  %s394_s12 = sphi %s418_s12, %s13_s12  }
   0x2   : > { %p137_p1 = scmp.lt.s32.totalorder %s394_s12, 3 }
   0x4   : > { %p138_p2 = pnand %p335_p0, %p137_p1 }
   0x5   : > { %v382_v0 = vld [vmem:[%s454_s1] sm:$0xff] (!%p138_p2)   ;;  %v396_v1 = vmov (!%p138_p2), 0.0   ;;  %v383_v2 = vld [vmem:[%s454_s1 + $0x8] sm:$0xff] (!%p138_p2)   ;;  %vm397_vm0 = vmmov (!%p138_p2), 0   ;;  %p161_p3 = scmp.lt.s32.totalorder (!%p138_p2), %s331_s13, 1  ;;  %v384_v3 = vld [vmem:[%s454_s1 + $0x10] sm:$0xff] (!%p138_p2)  }
   0x6   : > { %141 = sbr.rel (%p138_p2) target bundleno = 245 (0xf5), region = 32  ;;  %358 = vmatprep.subr.bf16.mxu0 (!%p138_p2), %v396_v1  ;;  %368 = vmatprep.mubr.msk.bf16.mxu0 (!%p138_p2), %vm397_vm0, %v396_v1  ;;  %v385_v4 = vld [vmem:[%s454_s1 + $0x18] sm:$0xff] (!%p138_p2)   ;;  %v386_v5 = vld [vmem:[%s454_s1 + $0x20] ss:$0 sps:$4 sm:$0xff] (!%p138_p2)   ;;  %vm226_vm1 = vcmask (!%p138_p2), 1043456   ;;  %vm222_vm2 = vcmask (!%p138_p2), 588800  }
   0x7   : > { %359 = vmatpush3.bf16.msra.mxu0 (!%p138_p2), %v382_v0  ;;  %v228_v6 = vsel (!%p138_p2), %vm226_vm1, %v386_v5, 0  ;;  %v340_v8 = vld [vmem:[%s455_s2] ss:$0 sm:$0xff] (!%p138_p2)  ;;  %vm273_vm3 = vcmask (!%p138_p2), 64512  }
   0x8   : > { %360 = vmatprep.subr.bf16.mxu0 (!%p138_p2), %v396_v1 }
   0xb   : > { %361 = vmatpush3.bf16.msra.mxu0 (!%p138_p2), %v383_v2 }
   0xc   : > { %362 = vmatprep.subr.bf16.mxu0 (!%p138_p2), %v396_v1 }
   0xd   : > { %s458_s13 = smov (!%p161_p3, %s331_s13), 1 }
   0xe   : > { %s350_s20 = sshll.u32 %s458_s13, 3  ;;  %s351_s30 = sshll.u32 %s458_s13, 4 }
   0xf   : > { %s165_s23 = scalar_lea.vmem %s453_s0, %s350_s20  ;;  %363 = vmatpush3.bf16.msra.mxu0 %v384_v3  ;;  %s170_s6 = scalar_lea.vmem %s456_s3, %s351_s30 }
  0x10   : > { %364 = vmatprep.subr.bf16.mxu0 %v396_v1  ;;  %v387_v7 = vld [vmem:[%s165_s23] sm:$0xff]  }
  0x13   : > { %365 = vmatpush3.bf16.msra.mxu0 %v385_v4 }
  0x14   : > { %366 = vmatprep.subr.bf16.mxu0 %v396_v1 }
  0x17   : > { %367 = vmatpush3.bf16.msra.mxu0 %v228_v6 }
  0x1a   : > { %369 = vmatmul.mubr.msk.bf16.vlgmr.msra.gmra.mrb[0].mxu0 %vm222_vm2, %v387_v7 }
  0xed   : > { %v264_v9 = vpop.f32.mrb[0].mxu0 }
  0xee   : > { %v265_v10 = vadd.f32 %v340_v8, %v264_v9  ;;  %v370_v11 = vpop.f32.mrb[1].mxu0 }
  0xef   : > { %v267_v12 = vpop.f32.mrb[2].mxu0 }
  0xf0   : > { %v271_v13 = vmax.f32 %v265_v10, 0.0  ;;  %v268_v14 = vadd.f32 %v340_v8, %v267_v12  ;;  %v371_v15 = vpop.f32.mrb[3].mxu0 }
  0xf2   : > { %274 = vst.msk [vmem:[%s170_s6] sm:$0xff] %vm273_vm3, %v271_v13  ;;  %v272_v16 = vmax.f32 %v268_v14, 0.0 }
  0xf4   : > { %275 = vst.msk [vmem:[%s170_s6 + $0x8] sm:$0xff] %vm273_vm3, %v272_v16 }
  0xf5 PF: > { %s13_s12 = sadd.s32 1, %s394_s12  }
  0xf6   : > { %p10_p4 = scmp.ge.s32.totalorder %s13_s12, 4  }
  0xf8   :  { %12 = sbr.rel (!%p10_p4) target bundleno = 1 (0x1), region = 62 }

// kernel: position_aware_forward.21
= control target key start
LH: loop header
LB: loop body
LE: loop exit
PB: predicated region body
PF: predicated region fallthrough
CT: control target
= control target key end

     0   :  { %s396_s12 = smov 0   ;;  %s431_s0 = inlined_call_operand.vmem [shape: bf16[2,4,72], index: 0, kind: input, shape index: {}]   ;;  %s432_s1 = inlined_call_operand.vmem [shape: bf16[72,8], index: 1, kind: input, shape index: {}]   ;;  %s433_s2 = inlined_call_operand.vmem [shape: f32[1,8], index: 2, kind: input, shape index: {}]   ;;  %s434_s3 = inlined_call_operand.vmem [shape: f32[2,4,8], index: 3, kind: output, shape index: {}]  }
   0x1 LB: > { %s315_s13 = sadd.s32 4294967295, %s372_s12   ;;  %p319_p0 = scmp.ge.s32.totalorder %s372_s12, 1  ;;  %s372_s12 = sphi %s396_s12, %s13_s12  }
   0x2   : > { %p136_p1 = scmp.lt.s32.totalorder %s372_s12, 3 }
   0x4   : > { %p137_p2 = pnand %p319_p0, %p136_p1 }
   0x5   : > { %v361_v0 = vld [vmem:[%s432_s1] sm:$0xff] (!%p137_p2)   ;;  %v374_v1 = vmov (!%p137_p2), 0.0   ;;  %v362_v2 = vld [vmem:[%s432_s1 + $0x8] sm:$0xff] (!%p137_p2)   ;;  %vm375_vm0 = vmmov (!%p137_p2), 0   ;;  %p158_p3 = scmp.lt.s32.totalorder (!%p137_p2), %s315_s13, 1  ;;  %v363_v3 = vld [vmem:[%s432_s1 + $0x10] sm:$0xff] (!%p137_p2)  }
   0x6   : > { %140 = sbr.rel (%p137_p2) target bundleno = 243 (0xf3), region = 32  ;;  %337 = vmatprep.subr.bf16.mxu0 (!%p137_p2), %v374_v1  ;;  %347 = vmatprep.mubr.msk.bf16.mxu0 (!%p137_p2), %vm375_vm0, %v374_v1  ;;  %v364_v4 = vld [vmem:[%s432_s1 + $0x18] sm:$0xff] (!%p137_p2)   ;;  %v365_v5 = vld [vmem:[%s432_s1 + $0x20] ss:$0 sps:$4 sm:$0xff] (!%p137_p2)   ;;  %vm215_vm1 = vcmask (!%p137_p2), 1043456   ;;  %vm211_vm2 = vcmask (!%p137_p2), 588800  }
   0x7   : > { %338 = vmatpush3.bf16.msra.mxu0 (!%p137_p2), %v361_v0  ;;  %v217_v6 = vsel (!%p137_p2), %vm215_vm1, %v365_v5, 0  ;;  %v322_v8 = vld [vmem:[%s433_s2] ss:$0 sm:$0xff] (!%p137_p2)  ;;  %vm260_vm3 = vcmask (!%p137_p2), 60416  }
   0x8   : > { %339 = vmatprep.subr.bf16.mxu0 (!%p137_p2), %v374_v1 }
   0xb   : > { %340 = vmatpush3.bf16.msra.mxu0 (!%p137_p2), %v362_v2 }
   0xc   : > { %341 = vmatprep.subr.bf16.mxu0 (!%p137_p2), %v374_v1 }
   0xd   : > { %s436_s13 = smov (!%p158_p3, %s315_s13), 1 }
   0xe   : > { %s320_s24 = sshll.u32 %s436_s13, 1  ;;  %s321_s30 = sshll.u32 %s436_s13, 2 }
   0xf   : > { %342 = vmatpush3.bf16.msra.mxu0 %v363_v3  ;;  %s161_s27 = scalar_lea.vmem %s431_s0, %s320_s24  ;;  %s165_s6 = scalar_lea.vmem %s434_s3, %s321_s30 }
  0x10   : > { %343 = vmatprep.subr.bf16.mxu0 %v374_v1  ;;  %v167_v7 = vld [vmem:[%s161_s27] sm:$0x3] }
  0x13   : > { %344 = vmatpush3.bf16.msra.mxu0 %v364_v4 }
  0x14   : > { %345 = vmatprep.subr.bf16.mxu0 %v374_v1 }
  0x17   : > { %346 = vmatpush3.bf16.msra.mxu0 %v217_v6 }
  0x1a   : > { %348 = vmatmul.mubr.msk.bf16.vlgmr.msra.gmra.mrb[0].mxu0 %vm211_vm2, %v167_v7 }
  0xed   : > { %v253_v9 = vpop.f32.mrb[0].mxu0 }
  0xee   : > { %v254_v10 = vadd.f32 %v322_v8, %v253_v9  ;;  %v349_v11 = vpop.f32.mrb[1].mxu0 }
  0xef   : > { %v256_v12 = vpop.f32.mrb[2].mxu0 }
  0xf0   : > { %v259_v13 = vmax.f32 %v254_v10, 0.0  ;;  %v350_v14 = vpop.f32.mrb[3].mxu0 }
  0xf2   : > { %261 = vst.msk [vmem:[%s165_s6] sm:$0xf] %vm260_vm3, %v259_v13 }
  0xf3 PF: > { %s13_s12 = sadd.s32 1, %s372_s12  }
  0xf4   : > { %p10_p4 = scmp.ge.s32.totalorder %s13_s12, 4  }
  0xf6   :  { %12 = sbr.rel (!%p10_p4) target bundleno = 1 (0x1), region = 62 }

// kernel: position_aware_forward.22
= control target key start
LH: loop header
LB: loop body
LE: loop exit
PB: predicated region body
PF: predicated region fallthrough
CT: control target
= control target key end

     0   :  { %s373_s12 = smov 0   ;;  %s408_s0 = inlined_call_operand.vmem [shape: bf16[2,1,72], index: 0, kind: input, shape index: {}]   ;;  %s409_s1 = inlined_call_operand.vmem [shape: bf16[72,8], index: 1, kind: input, shape index: {}]   ;;  %s410_s2 = inlined_call_operand.vmem [shape: f32[1,8], index: 2, kind: input, shape index: {}]   ;;  %s411_s3 = inlined_call_operand.vmem [shape: f32[2,1,8], index: 3, kind: output, shape index: {}]  }
   0x1 LB: > { %s295_s13 = sadd.s32 4294967295, %s349_s12   ;;  %p299_p0 = scmp.ge.s32.totalorder %s349_s12, 1  ;;  %s349_s12 = sphi %s373_s12, %s13_s12  }
   0x2   : > { %p135_p1 = scmp.lt.s32.totalorder %s349_s12, 3 }
   0x4   : > { %p136_p2 = pnand %p299_p0, %p135_p1 }
   0x5   : > { %v338_v0 = vld [vmem:[%s409_s1] sm:$0xff] (!%p136_p2)   ;;  %v351_v1 = vmov (!%p136_p2), 0.0   ;;  %v339_v2 = vld [vmem:[%s409_s1 + $0x8] sm:$0xff] (!%p136_p2)   ;;  %vm352_vm0 = vmmov (!%p136_p2), 0   ;;  %v340_v3 = vld [vmem:[%s409_s1 + $0x10] sm:$0xff] (!%p136_p2)   ;;  %p155_p3 = scmp.lt.s32.totalorder (!%p136_p2), %s295_s13, 1 }
   0x6   : > { %139 = sbr.rel (%p136_p2) target bundleno = 243 (0xf3), region = 32  ;;  %314 = vmatprep.subr.bf16.mxu0 (!%p136_p2), %v351_v1  ;;  %324 = vmatprep.mubr.msk.bf16.mxu0 (!%p136_p2), %vm352_vm0, %v351_v1  ;;  %v341_v4 = vld [vmem:[%s409_s1 + $0x18] sm:$0xff] (!%p136_p2)   ;;  %v342_v5 = vld [vmem:[%s409_s1 + $0x20] ss:$0 sps:$4 sm:$0xff] (!%p136_p2)   ;;  %vm204_vm1 = vcmask (!%p136_p2), 1043456   ;;  %vm200_vm2 = vcmask (!%p136_p2), 588800  }
   0x7   : > { %315 = vmatpush3.bf16.msra.mxu0 (!%p136_p2), %v338_v0  ;;  %v206_v6 = vsel (!%p136_p2), %vm204_vm1, %v342_v5, 0  ;;  %v172_v8 = vld [vmem:[%s410_s2] sm:$0x1] (!%p136_p2)  ;;  %vm249_vm3 = vcmask (!%p136_p2), 57344  }
   0x8   : > { %316 = vmatprep.subr.bf16.mxu0 (!%p136_p2), %v351_v1 }
   0xb   : > { %317 = vmatpush3.bf16.msra.mxu0 (!%p136_p2), %v339_v2 }
   0xc   : > { %318 = vmatprep.subr.bf16.mxu0 (!%p136_p2), %v351_v1 }
   0xd   : > { %s413_s13 = smov (!%p155_p3, %s295_s13), 1 }
   0xe   : > { %s157_s26 = scalar_lea.vmem %s408_s0, %s413_s13  ;;  %s160_s4 = scalar_lea.vmem %s411_s3, %s413_s13 }
   0xf   : > { %319 = vmatpush3.bf16.msra.mxu0 %v340_v3  ;;  %v162_v7 = vld [vmem:[%s157_s26] sm:$0x1] }
  0x10   : > { %320 = vmatprep.subr.bf16.mxu0 %v351_v1 }
  0x13   : > { %321 = vmatpush3.bf16.msra.mxu0 %v341_v4 }
  0x14   : > { %322 = vmatprep.subr.bf16.mxu0 %v351_v1 }
  0x17   : > { %323 = vmatpush3.bf16.msra.mxu0 %v206_v6 }
  0x1a   : > { %325 = vmatmul.mubr.msk.bf16.vlgmr.msra.gmra.mrb[0].mxu0 %vm200_vm2, %v162_v7 }
  0xed   : > { %v242_v9 = vpop.f32.mrb[0].mxu0 }
  0xee   : > { %v243_v10 = vadd.f32 %v242_v9, %v172_v8  ;;  %v326_v11 = vpop.f32.mrb[1].mxu0 }
  0xef   : > { %v245_v12 = vpop.f32.mrb[2].mxu0 }
  0xf0   : > { %v248_v13 = vmax.f32 %v243_v10, 0.0  ;;  %v327_v14 = vpop.f32.mrb[3].mxu0 }
  0xf2   : > { %250 = vst.msk [vmem:[%s160_s4] sm:$0x1] %vm249_vm3, %v248_v13 }
  0xf3 PF: > { %s13_s12 = sadd.s32 1, %s349_s12  }
  0xf4   : > { %p10_p4 = scmp.ge.s32.totalorder %s13_s12, 4  }
  0xf6   :  { %12 = sbr.rel (!%p10_p4) target bundleno = 1 (0x1), region = 62 }

// kernel: position_aware_forward.25
= control target key start
LH: loop header
LB: loop body
LE: loop exit
PB: predicated region body
PF: predicated region fallthrough
CT: control target
= control target key end

     0   :  { %s508_s12 = smov 0   ;;  %s559_s0 = inlined_call_operand.vmem [shape: bf16[2,64,72], index: 0, kind: input, shape index: {}]   ;;  %s560_s1 = inlined_call_operand.vmem [shape: bf16[72,8], index: 1, kind: input, shape index: {}]   ;;  %s561_s2 = inlined_call_operand.vmem [shape: f32[1,8], index: 2, kind: input, shape index: {}]   ;;  %s562_s3 = inlined_call_operand.vmem [shape: f32[2,64,8], index: 3, kind: output, shape index: {}]  }
   0x1 LB: > { %s397_s13 = sadd.s32 4294967295, %s486_s12   ;;  %p401_p0 = scmp.ge.s32.totalorder %s486_s12, 1  ;;  %s486_s12 = sphi %s508_s12, %s13_s12  }
   0x2   : > { %p137_p1 = scmp.lt.s32.totalorder %s486_s12, 3 }
   0x4   : > { %p138_p2 = pnand %p401_p0, %p137_p1 }
   0x5   : > { %v471_v0 = vld [vmem:[%s560_s1] sm:$0xff] (!%p138_p2)   ;;  %v472_v1 = vld [vmem:[%s560_s1 + $0x8] sm:$0xff] (!%p138_p2)   ;;  %p161_p3 = scmp.lt.s32.totalorder (!%p138_p2), %s397_s13, 1  ;;  %v473_v2 = vld [vmem:[%s560_s1 + $0x10] sm:$0xff] (!%p138_p2)   ;;  %vm243_vm0 = vcmask (!%p138_p2), 588800   ;;  %vm256_vm1 = vcmask (!%p138_p2), 1043456  }
   0x6   : > { %141 = sbr.rel (%p138_p2) target bundleno = 246 (0xf6), region = 32  ;;  %433 = vmatprep.subr.bf16.mxu0 (!%p138_p2), %v471_v0  ;;  %451 = vmatprep.subr.bf16.mxu1 (!%p138_p2), %v471_v0  ;;  %v474_v3 = vld [vmem:[%s560_s1 + $0x18] sm:$0xff] (!%p138_p2)   ;;  %v475_v6 = vld [vmem:[%s560_s1 + $0x20] ss:$0 sps:$4 sm:$0xff] (!%p138_p2)   ;;  %vm333_vm2 = vcmask (!%p138_p2), 64512  }
   0x7   : > { %434 = vmatpush3.bf16.msra.mxu0 (!%p138_p2), %v471_v0  ;;  %456 = vmatpush3.bf16.msra.mxu1 (!%p138_p2), %v471_v0  ;;  %v258_v7 = vsel (!%p138_p2), %vm256_vm1, %v475_v6, 0  ;;  %v406_v10 = vld [vmem:[%s561_s2] ss:$0 sm:$0xff] (!%p138_p2) }
   0x8   : > { %435 = vmatprep.subr.bf16.mxu0 (!%p138_p2), %v472_v1  ;;  %452 = vmatprep.subr.bf16.mxu1 (!%p138_p2), %v472_v1 }
   0xb   : > { %436 = vmatpush3.bf16.msra.mxu0 (!%p138_p2), %v472_v1  ;;  %457 = vmatpush3.bf16.msra.mxu1 (!%p138_p2), %v472_v1 }
   0xc   : > { %437 = vmatprep.subr.bf16.mxu0 (!%p138_p2), %v473_v2  ;;  %453 = vmatprep.subr.bf16.mxu1 (!%p138_p2), %v473_v2 }
   0xd   : > { %s564_s13 = smov (!%p161_p3, %s397_s13), 1 }
   0xe   : > { %s422_s20 = sshll.u32 %s564_s13, 5  ;;  %s423_s30 = sshll.u32 %s564_s13, 6 }
   0xf   : > { %s165_s25 = scalar_lea.vmem %s559_s0, %s422_s20  ;;  %438 = vmatpush3.bf16.msra.mxu0 %v473_v2  ;;  %458 = vmatpush3.bf16.msra.mxu1 %v473_v2  ;;  %s170_s6 = scalar_lea.vmem %s562_s3, %s423_s30 }
  0x10   : > { %v476_v4 = vld [vmem:[%s165_s25] sm:$0xff]   ;;  %v477_v5 = vld [vmem:[%s165_s25 + $0x10] sm:$0xff]   ;;  %439 = vmatprep.subr.bf16.mxu0 %v474_v3  ;;  %454 = vmatprep.subr.bf16.mxu1 %v474_v3  ;;  %v478_v8 = vld [vmem:[%s165_s25 + $0x8] sm:$0xff]  }
  0x11   : > { %443 = vmatprep.mubr.msk.bf16.mxu0 %vm243_vm0, %v476_v4  ;;  %447 = vmatprep.mubr.msk.bf16.mxu1 %vm243_vm0, %v477_v5  ;;  %v479_v9 = vld [vmem:[%s165_s25 + $0x18] sm:$0xff]  }
  0x13   : > { %440 = vmatpush3.bf16.msra.mxu0 %v474_v3  ;;  %459 = vmatpush3.bf16.msra.mxu1 %v474_v3 }
  0x14   : > { %461 = vmatprep.subr.msk.bf16.mxu0 %vm256_vm1, %v475_v6  ;;  %462 = vmatprep.subr.msk.bf16.mxu1 %vm256_vm1, %v475_v6 }
  0x17   : > { %442 = vmatpush3.bf16.msra.mxu0 %v258_v7  ;;  %460 = vmatpush3.bf16.msra.mxu1 %v258_v7 }
  0x1a   : > { %444 = vmatmul.mubr.msk.bf16.vlgmr.msra.gmra.mrb[0].mxu0 %vm243_vm0, %v478_v8  ;;  %448 = vmatmul.mubr.msk.bf16.vlgmr.msra.gmra.mrb[0].mxu1 %vm243_vm0, %v479_v9 }
  0xed   : > { %v445_v11 = vpop.f32.mrb[0].mxu0  ;;  %v449_v12 = vpop.f32.mrb[0].mxu1 }
  0xee   : > { %v303_v13 = vadd.f32 %v445_v11, %v406_v10  ;;  %v319_v14 = vadd.f32 %v449_v12, %v406_v10  ;;  %v294_v15 = vpop.f32.mrb[1].mxu0  ;;  %v310_v16 = vpop.f32.mrb[1].mxu1 }
  0xef   : > { %v295_v17 = vadd.f32 %v406_v10, %v294_v15  ;;  %v311_v18 = vadd.f32 %v406_v10, %v310_v16  ;;  %v446_v19 = vpop.f32.mrb[2].mxu0  ;;  %v450_v20 = vpop.f32.mrb[2].mxu1 }
  0xf0   : > { %v327_v21 = vmax.f32 %v303_v13, 0.0  ;;  %v331_v22 = vmax.f32 %v319_v14, 0.0  ;;  %v306_v23 = vadd.f32 %v446_v19, %v406_v10  ;;  %v322_v24 = vadd.f32 %v450_v20, %v406_v10  ;;  %v297_v25 = vpop.f32.mrb[3].mxu0  ;;  %v313_v26 = vpop.f32.mrb[3].mxu1 }
  0xf1   : > { %v325_v27 = vmax.f32 %v295_v17, 0.0  ;;  %v329_v28 = vmax.f32 %v311_v18, 0.0  ;;  %v298_v29 = vadd.f32 %v406_v10, %v297_v25  ;;  %v314_v30 = vadd.f32 %v406_v10, %v313_v26 }
  0xf2   : > { %336 = vst.msk [vmem:[%s170_s6 + $0x10] sm:$0xff] %vm333_vm2, %v327_v21  ;;  %340 = vst.msk [vmem:[%s170_s6 + $0x30] sm:$0xff] %vm333_vm2, %v331_v22  ;;  %v328_v31 = vmax.f32 %v306_v23, 0.0  ;;  %v332_v32 = vmax.f32 %v322_v24, 0.0 }
  0xf3   : > { %334 = vst.msk [vmem:[%s170_s6] sm:$0xff] %vm333_vm2, %v325_v27  ;;  %338 = vst.msk [vmem:[%s170_s6 + $0x20] sm:$0xff] %vm333_vm2, %v329_v28  ;;  %v326_v33 = vmax.f32 %v298_v29, 0.0  ;;  %v330_v34 = vmax.f32 %v314_v30, 0.0 }
  0xf4   : > { %337 = vst.msk [vmem:[%s170_s6 + $0x18] sm:$0xff] %vm333_vm2, %v328_v31  ;;  %341 = vst.msk [vmem:[%s170_s6 + $0x38] sm:$0xff] %vm333_vm2, %v332_v32 }
  0xf5   : > { %335 = vst.msk [vmem:[%s170_s6 + $0x8] sm:$0xff] %vm333_vm2, %v326_v33  ;;  %339 = vst.msk [vmem:[%s170_s6 + $0x28] sm:$0xff] %vm333_vm2, %v330_v34 }
  0xf6 PF: > { %s13_s12 = sadd.s32 1, %s486_s12  }
  0xf7   : > { %p10_p4 = scmp.ge.s32.totalorder %s13_s12, 4  }
  0xf9   :  { %12 = sbr.rel (!%p10_p4) target bundleno = 1 (0x1), region = 62 }

// kernel: position_aware_forward.27
= control target key start
LH: loop header
LB: loop body
LE: loop exit
PB: predicated region body
PF: predicated region fallthrough
CT: control target
= control target key end

     0   :  { %v180_v0 = vmov 0.0   ;;  %vm181_vm0 = vmmov 0   ;;  %s235_s1 = inlined_call_operand.vmem [shape: bf16[128,128], index: 1, kind: input, shape index: {}]   ;;  %s236_s0 = inlined_call_operand.vmem [shape: bf16[8,128], index: 0, kind: input, shape index: {}]   ;;  %s237_s2 = inlined_call_operand.vmem [shape: f32[1,128], index: 2, kind: input, shape index: {}]   ;;  %s238_s3 = inlined_call_operand.vmem [shape: f32[8,128], index: 3, kind: output, shape index: {}]  }
   0x1   :  { %150 = vmatprep.subr.bf16.mxu0 %v180_v0  ;;  %v172_v1 = vld [vmem:[%s235_s1] sm:$0xff]   ;;  %166 = vmatprep.mubr.msk.bf16.mxu0 %vm181_vm0, %v180_v0  ;;  %v173_v2 = vld [vmem:[%s235_s1 + $0x8] sm:$0xff]   ;;  %v174_v3 = vld [vmem:[%s235_s1 + $0x10] sm:$0xff]  }
   0x2   :  { %151 = vmatpush3.bf16.msra.mxu0 %v172_v1  ;;  %v175_v4 = vld [vmem:[%s235_s1 + $0x18] sm:$0xff]   ;;  %v176_v5 = vld [vmem:[%s235_s1 + $0x20] sm:$0xff]   ;;  %v177_v6 = vld [vmem:[%s235_s1 + $0x28] sm:$0xff]  }
   0x3   :  { %152 = vmatprep.subr.bf16.mxu0 %v180_v0  ;;  %v178_v7 = vld [vmem:[%s235_s1 + $0x30] sm:$0xff]   ;;  %v179_v8 = vld [vmem:[%s235_s1 + $0x38] sm:$0xff]   ;;  %v15_v9 = vld [vmem:[%s236_s0] sm:$0xf] }
   0x4   :  { %v132_v10 = vld [vmem:[%s237_s2] ss:$0 sm:$0xff] }
   0x6   :  { %153 = vmatpush3.bf16.msra.mxu0 %v173_v2 }
   0x7   :  { %154 = vmatprep.subr.bf16.mxu0 %v180_v0 }
   0xa   :  { %155 = vmatpush3.bf16.msra.mxu0 %v174_v3 }
   0xb   :  { %156 = vmatprep.subr.bf16.mxu0 %v180_v0 }
   0xe   :  { %157 = vmatpush3.bf16.msra.mxu0 %v175_v4 }
   0xf   :  { %158 = vmatprep.subr.bf16.mxu0 %v180_v0 }
  0x12   :  { %159 = vmatpush3.bf16.msra.mxu0 %v176_v5 }
  0x13   :  { %160 = vmatprep.subr.bf16.mxu0 %v180_v0 }
  0x16   :  { %161 = vmatpush3.bf16.msra.mxu0 %v177_v6 }
  0x17   :  { %162 = vmatprep.subr.bf16.mxu0 %v180_v0 }
  0x1a   :  { %163 = vmatpush3.bf16.msra.mxu0 %v178_v7 }
  0x1b   :  { %164 = vmatprep.subr.bf16.mxu0 %v180_v0 }
  0x1e   :  { %165 = vmatpush3.bf16.msra.mxu0 %v179_v8 }
  0x21   :  { %167 = vmatmul.mubr.bf16.vlgmr.msra.gmra.mrb[0].mxu0 %v15_v9 }
  0xf4   :  { %v121_v11 = vpop.f32.mrb[0].mxu0 }
  0xf5   :  { %v122_v12 = vadd.f32 %v132_v10, %v121_v11  ;;  %v168_v13 = vpop.f32.mrb[1].mxu0 }
  0xf6   :  { %v124_v14 = vpop.f32.mrb[2].mxu0 }
  0xf7   :  { %127 = vst [vmem:[%s238_s3] sm:$0xff] %v122_v12  ;;  %v169_v15 = vpop.f32.mrb[3].mxu0 }

// kernel: position_aware_forward.26
= control target key start
LH: loop header
LB: loop body
LE: loop exit
PB: predicated region body
PF: predicated region fallthrough
CT: control target
= control target key end

     0   :  { %s620_s12 = smov 0   ;;  %s711_s0 = inlined_call_operand.vmem [shape: bf16[2,128,72], index: 0, kind: input, shape index: {}]   ;;  %s712_s1 = inlined_call_operand.vmem [shape: bf16[72,32], index: 1, kind: input, shape index: {}]   ;;  %s713_s2 = inlined_call_operand.vmem [shape: f32[1,32], index: 2, kind: input, shape index: {}]   ;;  %s714_s3 = inlined_call_operand.vmem [shape: f32[2,128,32], index: 3, kind: output, shape index: {}]  }
   0x1 LB: > { %s485_s13 = sadd.s32 4294967295, %s598_s12   ;;  %p489_p0 = scmp.ge.s32.totalorder %s598_s12, 1  ;;  %s598_s12 = sphi %s620_s12, %s13_s12  }
   0x2   : > { %p137_p1 = scmp.lt.s32.totalorder %s598_s12, 3 }
   0x4   : > { %p138_p2 = pnand %p489_p0, %p137_p1 }
   0x5   : > { %v579_v0 = vld [vmem:[%s712_s1] sm:$0xff] (!%p138_p2)   ;;  %v580_v1 = vld [vmem:[%s712_s1 + $0x8] sm:$0xff] (!%p138_p2)   ;;  %p161_p3 = scmp.lt.s32.totalorder (!%p138_p2), %s485_s13, 1  ;;  %v581_v2 = vld [vmem:[%s712_s1 + $0x10] sm:$0xff] (!%p138_p2)   ;;  %vm271_vm0 = vcmask (!%p138_p2), 588800   ;;  %vm296_vm1 = vcmask (!%p138_p2), 1043456  }
   0x6   : > { %141 = sbr.rel (%p138_p2) target bundleno = 254 (0xfe), region = 32  ;;  %533 = vmatprep.subr.bf16.mxu0 (!%p138_p2), %v579_v0  ;;  %559 = vmatprep.subr.bf16.mxu1 (!%p138_p2), %v579_v0  ;;  %v582_v3 = vld [vmem:[%s712_s1 + $0x18] sm:$0xff] (!%p138_p2)   ;;  %v583_v6 = vld [vmem:[%s712_s1 + $0x20] ss:$0 sps:$4 sm:$0xff] (!%p138_p2)   ;;  %vm413_vm2 = vcmask (!%p138_p2), 261120  }
   0x7   : > { %534 = vmatpush3.bf16.msra.mxu0 (!%p138_p2), %v579_v0  ;;  %564 = vmatpush3.bf16.msra.mxu1 (!%p138_p2), %v579_v0  ;;  %v298_v7 = vsel (!%p138_p2), %vm296_vm1, %v583_v6, 0  ;;  %v494_v14 = vld [vmem:[%s713_s2] ss:$0 sm:$0xff] (!%p138_p2) }
   0x8   : > { %535 = vmatprep.subr.bf16.mxu0 (!%p138_p2), %v580_v1  ;;  %560 = vmatprep.subr.bf16.mxu1 (!%p138_p2), %v580_v1 }
   0xb   : > { %536 = vmatpush3.bf16.msra.mxu0 (!%p138_p2), %v580_v1  ;;  %565 = vmatpush3.bf16.msra.mxu1 (!%p138_p2), %v580_v1 }
   0xc   : > { %537 = vmatprep.subr.bf16.mxu0 (!%p138_p2), %v581_v2  ;;  %561 = vmatprep.subr.bf16.mxu1 (!%p138_p2), %v581_v2 }
   0xd   : > { %s716_s13 = smov (!%p161_p3, %s485_s13), 1 }
   0xe   : > { %s518_s20 = sshll.u32 %s716_s13, 6  ;;  %s519_s30 = sshll.u32 %s716_s13, 7 }
   0xf   : > { %s646_s25 = scalar_lea.vmem %s711_s0, %s518_s20  ;;  %538 = vmatpush3.bf16.msra.mxu0 %v581_v2  ;;  %566 = vmatpush3.bf16.msra.mxu1 %v581_v2  ;;  %s674_s6 = scalar_lea.vmem %s714_s3, %s519_s30 }
  0x10   : > { %v584_v4 = vld [vmem:[%s646_s25] sm:$0xff]   ;;  %539 = vmatprep.subr.bf16.mxu0 %v582_v3  ;;  %562 = vmatprep.subr.bf16.mxu1 %v582_v3  ;;  %v586_v8 = vld [vmem:[%s646_s25 + $0x8] sm:$0xff]   ;;  %v588_v10 = vld [vmem:[%s646_s25 + $0x10] sm:$0xff]  }
  0x11   : > { %v585_v5 = vld [vmem:[%s646_s25 + $0x20] sm:$0xff]   ;;  %543 = vmatprep.mubr.msk.bf16.mxu0 %vm271_vm0, %v584_v4  ;;  %v587_v9 = vld [vmem:[%s646_s25 + $0x28] sm:$0xff]   ;;  %v589_v11 = vld [vmem:[%s646_s25 + $0x30] sm:$0xff]  }
  0x12   : > { %551 = vmatprep.mubr.msk.bf16.mxu1 %vm271_vm0, %v585_v5  ;;  %v590_v12 = vld [vmem:[%s646_s25 + $0x18] sm:$0xff]  }
  0x13   : > { %540 = vmatpush3.bf16.msra.mxu0 %v582_v3  ;;  %567 = vmatpush3.bf16.msra.mxu1 %v582_v3  ;;  %v591_v13 = vld [vmem:[%s646_s25 + $0x38] sm:$0xff]  }
  0x14   : > { %569 = vmatprep.subr.msk.bf16.mxu0 %vm296_vm1, %v583_v6  ;;  %570 = vmatprep.subr.msk.bf16.mxu1 %vm296_vm1, %v583_v6 }
  0x17   : > { %542 = vmatpush3.bf16.msra.mxu0 %v298_v7  ;;  %568 = vmatpush3.bf16.msra.mxu1 %v298_v7 }
  0x1a   : > { %544 = vmatmul.mubr.msk.bf16.vlgmr.msra.gmra.mrb[0].mxu0 %vm271_vm0, %v586_v8  ;;  %552 = vmatmul.mubr.msk.bf16.vlgmr.msra.gmra.mrb[0].mxu1 %vm271_vm0, %v587_v9 }
  0x1b   : > { %547 = vmatprep.mubr.msk.bf16.mxu0 %vm271_vm0, %v588_v10  ;;  %555 = vmatprep.mubr.msk.bf16.mxu1 %vm271_vm0, %v589_v11 }
  0x22   : > { %548 = vmatmul.mubr.msk.bf16.gmra.mrb[4].mxu0 %vm271_vm0, %v590_v12  ;;  %556 = vmatmul.mubr.msk.bf16.gmra.mrb[4].mxu1 %vm271_vm0, %v591_v13 }
  0xed   : > { %v545_v15 = vpop.f32.mrb[0].mxu0  ;;  %v553_v16 = vpop.f32.mrb[0].mxu1 }
  0xee   : > { %v343_v17 = vadd.f32 %v545_v15, %v494_v14  ;;  %v375_v18 = vadd.f32 %v553_v16, %v494_v14  ;;  %v334_v19 = vpop.f32.mrb[1].mxu0  ;;  %v366_v20 = vpop.f32.mrb[1].mxu1 }
  0xef   : > { %v335_v21 = vadd.f32 %v494_v14, %v334_v19  ;;  %v367_v22 = vadd.f32 %v494_v14, %v366_v20  ;;  %v546_v23 = vpop.f32.mrb[2].mxu0  ;;  %v554_v24 = vpop.f32.mrb[2].mxu1 }
  0xf0   : > { %v399_v25 = vmax.f32 %v343_v17, 0.0  ;;  %v407_v26 = vmax.f32 %v375_v18, 0.0  ;;  %v346_v27 = vadd.f32 %v546_v23, %v494_v14  ;;  %v378_v28 = vadd.f32 %v554_v24, %v494_v14  ;;  %v337_v29 = vpop.f32.mrb[3].mxu0  ;;  %v369_v30 = vpop.f32.mrb[3].mxu1 }
  0xf1   : > { %v397_v31 = vmax.f32 %v335_v21, 0.0  ;;  %v405_v32 = vmax.f32 %v367_v22, 0.0  ;;  %v338_v33 = vadd.f32 %v494_v14, %v337_v29  ;;  %v370_v34 = vadd.f32 %v494_v14, %v369_v30 }
  0xf2   : > { %416 = vst.msk [vmem:[%s674_s6 + $0x10] sm:$0xff] %vm413_vm2, %v399_v25  ;;  %424 = vst.msk [vmem:[%s674_s6 + $0x50] sm:$0xff] %vm413_vm2, %v407_v26  ;;  %v400_v35 = vmax.f32 %v346_v27, 0.0  ;;  %v408_v36 = vmax.f32 %v378_v28, 0.0 }
  0xf3   : > { %414 = vst.msk [vmem:[%s674_s6] sm:$0xff] %vm413_vm2, %v397_v31  ;;  %422 = vst.msk [vmem:[%s674_s6 + $0x40] sm:$0xff] %vm413_vm2, %v405_v32  ;;  %v398_v37 = vmax.f32 %v338_v33, 0.0  ;;  %v406_v38 = vmax.f32 %v370_v34, 0.0 }
  0xf4   : > { %417 = vst.msk [vmem:[%s674_s6 + $0x18] sm:$0xff] %vm413_vm2, %v400_v35  ;;  %425 = vst.msk [vmem:[%s674_s6 + $0x58] sm:$0xff] %vm413_vm2, %v408_v36 }
  0xf5   : > { %415 = vst.msk [vmem:[%s674_s6 + $0x8] sm:$0xff] %vm413_vm2, %v398_v37  ;;  %423 = vst.msk [vmem:[%s674_s6 + $0x48] sm:$0xff] %vm413_vm2, %v406_v38  ;;  %v549_v39 = vpop.f32.mrb[4].mxu0  ;;  %v557_v40 = vpop.f32.mrb[4].mxu1 }
  0xf6   : > { %v359_v41 = vadd.f32 %v549_v39, %v494_v14  ;;  %v391_v42 = vadd.f32 %v557_v40, %v494_v14  ;;  %v350_v43 = vpop.f32.mrb[5].mxu0  ;;  %v382_v44 = vpop.f32.mrb[5].mxu1 }
  0xf7   : > { %v351_v45 = vadd.f32 %v494_v14, %v350_v43  ;;  %v383_v46 = vadd.f32 %v494_v14, %v382_v44  ;;  %v550_v47 = vpop.f32.mrb[6].mxu0  ;;  %v558_v48 = vpop.f32.mrb[6].mxu1 }
  0xf8   : > { %v403_v49 = vmax.f32 %v359_v41, 0.0  ;;  %v411_v50 = vmax.f32 %v391_v42, 0.0  ;;  %v362_v51 = vadd.f32 %v550_v47, %v494_v14  ;;  %v394_v52 = vadd.f32 %v558_v48, %v494_v14  ;;  %v353_v53 = vpop.f32.mrb[7].mxu0  ;;  %v385_v54 = vpop.f32.mrb[7].mxu1 }
  0xf9   : > { %v401_v55 = vmax.f32 %v351_v45, 0.0  ;;  %v409_v56 = vmax.f32 %v383_v46, 0.0  ;;  %v354_v57 = vadd.f32 %v494_v14, %v353_v53  ;;  %v386_v58 = vadd.f32 %v494_v14, %v385_v54 }
  0xfa   : > { %420 = vst.msk [vmem:[%s674_s6 + $0x30] sm:$0xff] %vm413_vm2, %v403_v49  ;;  %428 = vst.msk [vmem:[%s674_s6 + $0x70] sm:$0xff] %vm413_vm2, %v411_v50  ;;  %v404_v59 = vmax.f32 %v362_v51, 0.0  ;;  %v412_v60 = vmax.f32 %v394_v52, 0.0 }
  0xfb   : > { %418 = vst.msk [vmem:[%s674_s6 + $0x20] sm:$0xff] %vm413_vm2, %v401_v55  ;;  %426 = vst.msk [vmem:[%s674_s6 + $0x60] sm:$0xff] %vm413_vm2, %v409_v56  ;;  %v402_v61 = vmax.f32 %v354_v57, 0.0  ;;  %v410_v62 = vmax.f32 %v386_v58, 0.0 }
  0xfc   : > { %421 = vst.msk [vmem:[%s674_s6 + $0x38] sm:$0xff] %vm413_vm2, %v404_v59  ;;  %429 = vst.msk [vmem:[%s674_s6 + $0x78] sm:$0xff] %vm413_vm2, %v412_v60 }
  0xfd   : > { %419 = vst.msk [vmem:[%s674_s6 + $0x28] sm:$0xff] %vm413_vm2, %v402_v61  ;;  %427 = vst.msk [vmem:[%s674_s6 + $0x68] sm:$0xff] %vm413_vm2, %v410_v62 }
  0xfe PF: > { %s13_s12 = sadd.s32 1, %s598_s12  }
  0xff   : > { %p10_p4 = scmp.ge.s32.totalorder %s13_s12, 4  }
 0x101   :  { %12 = sbr.rel (!%p10_p4) target bundleno = 1 (0x1), region = 62 }

// kernel: position_aware_forward.29
= control target key start
LH: loop header
LB: loop body
LE: loop exit
PB: predicated region body
PF: predicated region fallthrough
CT: control target
= control target key end

     0   :  { %v191_v0 = vmov 0.0   ;;  %vm192_vm0 = vmmov 0   ;;  %s249_s1 = inlined_call_operand.vmem [shape: bf16[128,128], index: 1, kind: input, shape index: {}]   ;;  %s250_s0 = inlined_call_operand.vmem [shape: bf16[16,128], index: 0, kind: input, shape index: {}]   ;;  %s251_s2 = inlined_call_operand.vmem [shape: f32[1,128], index: 2, kind: input, shape index: {}]   ;;  %s252_s3 = inlined_call_operand.vmem [shape: f32[16,128], index: 3, kind: output, shape index: {}]  }
   0x1   :  { %160 = vmatprep.subr.bf16.mxu0 %v191_v0  ;;  %v182_v1 = vld [vmem:[%s249_s1] sm:$0xff]   ;;  %176 = vmatprep.mubr.msk.bf16.mxu0 %vm192_vm0, %v191_v0  ;;  %v183_v2 = vld [vmem:[%s249_s1 + $0x8] sm:$0xff]   ;;  %v184_v3 = vld [vmem:[%s249_s1 + $0x10] sm:$0xff]  }
   0x2   :  { %161 = vmatpush3.bf16.msra.mxu0 %v182_v1  ;;  %v185_v4 = vld [vmem:[%s249_s1 + $0x18] sm:$0xff]   ;;  %v186_v5 = vld [vmem:[%s249_s1 + $0x20] sm:$0xff]   ;;  %v187_v6 = vld [vmem:[%s249_s1 + $0x28] sm:$0xff]  }
   0x3   :  { %162 = vmatprep.subr.bf16.mxu0 %v191_v0  ;;  %v188_v7 = vld [vmem:[%s249_s1 + $0x30] sm:$0xff]   ;;  %v189_v8 = vld [vmem:[%s249_s1 + $0x38] sm:$0xff]   ;;  %v190_v9 = vld [vmem:[%s250_s0] sm:$0xff]  }
   0x4   :  { %v141_v10 = vld [vmem:[%s251_s2] ss:$0 sm:$0xff] }
   0x6   :  { %163 = vmatpush3.bf16.msra.mxu0 %v183_v2 }
   0x7   :  { %164 = vmatprep.subr.bf16.mxu0 %v191_v0 }
   0xa   :  { %165 = vmatpush3.bf16.msra.mxu0 %v184_v3 }
   0xb   :  { %166 = vmatprep.subr.bf16.mxu0 %v191_v0 }
   0xe   :  { %167 = vmatpush3.bf16.msra.mxu0 %v185_v4 }
   0xf   :  { %168 = vmatprep.subr.bf16.mxu0 %v191_v0 }
  0x12   :  { %169 = vmatpush3.bf16.msra.mxu0 %v186_v5 }
  0x13   :  { %170 = vmatprep.subr.bf16.mxu0 %v191_v0 }
  0x16   :  { %171 = vmatpush3.bf16.msra.mxu0 %v187_v6 }
  0x17   :  { %172 = vmatprep.subr.bf16.mxu0 %v191_v0 }
  0x1a   :  { %173 = vmatpush3.bf16.msra.mxu0 %v188_v7 }
  0x1b   :  { %174 = vmatprep.subr.bf16.mxu0 %v191_v0 }
  0x1e   :  { %175 = vmatpush3.bf16.msra.mxu0 %v189_v8 }
  0x21   :  { %177 = vmatmul.mubr.bf16.vlgmr.msra.gmra.mrb[0].mxu0 %v190_v9 }
  0xf4   :  { %v128_v11 = vpop.f32.mrb[0].mxu0 }
  0xf5   :  { %v129_v12 = vadd.f32 %v141_v10, %v128_v11  ;;  %v178_v13 = vpop.f32.mrb[1].mxu0 }
  0xf6   :  { %v131_v14 = vpop.f32.mrb[2].mxu0 }
  0xf7   :  { %135 = vst [vmem:[%s252_s3] sm:$0xff] %v129_v12  ;;  %v132_v15 = vadd.f32 %v141_v10, %v131_v14  ;;  %v179_v16 = vpop.f32.mrb[3].mxu0 }
  0xf9   :  { %136 = vst [vmem:[%s252_s3 + $0x8] sm:$0xff] %v132_v15 }

// kernel: position_aware_forward.28
= control target key start
LH: loop header
LB: loop body
LE: loop exit
PB: predicated region body
PF: predicated region fallthrough
CT: control target
= control target key end

     0   :  { %s1114_s18 = smov 0   ;;  %s1425_s0 = inlined_call_operand.vmem [shape: f32[8,32], index: 0, kind: input, shape index: {}]   ;;  %s1426_s1 = inlined_call_operand.vmem [shape: f32[2,128,32], index: 1, kind: input, shape index: {}]   ;;  %s1427_s2 = inlined_call_operand.vmem [shape: f32[2,128,32], index: 2, kind: input, shape index: {}]   ;;  %s1428_s3 = inlined_call_operand.vmem [shape: f32[128,512], index: 3, kind: input, shape index: {}]   ;;  %s1429_s4 = inlined_call_operand.vmem [shape: f32[2,8,32], index: 4, kind: output, shape index: {0}]   ;;  %s1430_s5 = inlined_call_operand.vmem [shape: f32[2,8,512], index: 5, kind: output, shape index: {1}]  }
   0x1 LB: > { %s800_s19 = sadd.s32 4294967295, %s1079_s18   ;;  %p804_p0 = scmp.ge.s32.totalorder %s1079_s18, 1  ;;  %s1079_s18 = sphi %s1114_s18, %s16_s18  }
   0x2   : > { %p200_p1 = scmp.lt.s32.totalorder %s1079_s18, 3 }
   0x4   : > { %p201_p2 = pnand %p804_p0, %p200_p1 }
   0x5   : > { %p237_p3 = scmp.lt.s32.totalorder (!%p201_p2), %s800_s19, 1  ;;  %v1081_v0 = vmov (!%p201_p2), 0.0|0.0   ;;  %vm1082_vm0 = vmmov (!%p201_p2), 0   ;;  %v1083_v1 = vmov (!%p201_p2), 0.0   ;;  %vm273_vm1 = vcmask (!%p201_p2), 261120   ;;  %v256_v27 = vld [vmem:[%s1425_s0] sm:$0xff] (!%p201_p2) }
   0x6   : > { %204 = sbr.rel (%p201_p2) target bundleno = 854 (0x356), region = 36  ;;  %938 = vmatprep.subr.bf16.mxu0 (!%p201_p2), %v1081_v0  ;;  %900 = vmatprep.mubr.msk.f32.mxu0 (!%p201_p2), %vm1082_vm0, %v1083_v1  ;;  %vm1140_vm2 = vmpackc.low (!%p201_p2), %vm273_vm1, %vm273_vm1  ;;  %v495_v31 = vld [vmem:[%s1428_s3 + $0x18] sm:$0xff] (!%p201_p2)  ;;  %v494_v33 = vld [vmem:[%s1428_s3 + $0x10] sm:$0xff] (!%p201_p2) }
   0x7   : > { %970 = vmatprep.subr.bf16.mxu1 (!%p201_p2), %v1081_v0  ;;  %935 = vmatprep.mubr.msk.f32.mxu1 (!%p201_p2), %vm1082_vm0, %v1083_v1  ;;  %v499_v32 = vld [vmem:[%s1428_s3 + $0x38] sm:$0xff] (!%p201_p2)  ;;  %v498_v37 = vld [vmem:[%s1428_s3 + $0x30] sm:$0xff] (!%p201_p2) }
   0x8   : > { %v1026_v36 = vpack.c.bf16 (!%p201_p2), %v499_v32, %v495_v31  ;;  %v1028_v39 = vpack.c.bf16 (!%p201_p2), %v498_v37, %v494_v33  ;;  %v503_v42 = vld [vmem:[%s1428_s3 + $0x58] sm:$0xff] (!%p201_p2)  ;;  %v502_v44 = vld [vmem:[%s1428_s3 + $0x50] sm:$0xff] (!%p201_p2) }
   0x9   : > { %v507_v43 = vld [vmem:[%s1428_s3 + $0x78] sm:$0xff] (!%p201_p2)  ;;  %v506_v45 = vld [vmem:[%s1428_s3 + $0x70] sm:$0xff] (!%p201_p2) }
   0xa   : > { %v1030_v47 = vpack.c.bf16 (!%p201_p2), %v507_v43, %v503_v42  ;;  %v1032_v48 = vpack.c.bf16 (!%p201_p2), %v506_v45, %v502_v44  ;;  %v511_v51 = vld [vmem:[%s1428_s3 + $0x98] sm:$0xff] (!%p201_p2)  ;;  %v510_v53 = vld [vmem:[%s1428_s3 + $0x90] sm:$0xff] (!%p201_p2)  ;;  %v493_v43 = vld [vmem:[%s1428_s3 + $0x8] sm:$0xff] (!%p201_p2) }
   0xb   : > { %v515_v52 = vld [vmem:[%s1428_s3 + $0xb8] sm:$0xff] (!%p201_p2)  ;;  %v514_v54 = vld [vmem:[%s1428_s3 + $0xb0] sm:$0xff] (!%p201_p2)  ;;  %v497_v44 = vld [vmem:[%s1428_s3 + $0x28] sm:$0xff] (!%p201_p2) }
   0xc   : > { %v1034_v55 = vpack.c.bf16 (!%p201_p2), %v515_v52, %v511_v51  ;;  %v519_v56 = vld [vmem:[%s1428_s3 + $0xd8] sm:$0xff] (!%p201_p2)  ;;  %v1036_v59 = vpack.c.bf16 (!%p201_p2), %v514_v54, %v510_v53  ;;  %v518_v63 = vld [vmem:[%s1428_s3 + $0xd0] sm:$0xff] (!%p201_p2)  ;;  %v505_v51 = vld [vmem:[%s1428_s3 + $0x68] sm:$0xff] (!%p201_p2) }
   0xd   : > { %s1434_s19 = smov (!%p237_p3, %s800_s19), 1  ;;  %v523_v57 = vld [vmem:[%s1428_s3 + $0xf8] sm:$0xff]  ;;  %v542_v32 = vld [vmem:[%s1428_s3 + $0x190] sm:$0xff] }
   0xe   : > { %s831_s20 = sshll.u32 %s1434_s19, 7  ;;  %v1038_v62 = vpack.c.bf16 %v523_v57, %v519_v56  ;;  %v531_v4 = vld [vmem:[%s1428_s3 + $0x138] sm:$0xff]  ;;  %v546_v33 = vld [vmem:[%s1428_s3 + $0x1b0] sm:$0xff]  ;;  %v500_v56 = vld [vmem:[%s1428_s3 + $0x40] sm:$0xff]  ;;  %s809_s21 = sshll.u32 %s1434_s19, 3 }
   0xf   : > { %s1134_s23 = scalar_lea.vmem %s1426_s1, %s831_s20  ;;  %s1194_s28 = scalar_lea.vmem %s1427_s2, %s831_s20  ;;  %v547_v31 = vld [vmem:[%s1428_s3 + $0x1b8] sm:$0xff]  ;;  %v554_v42 = vld [vmem:[%s1428_s3 + $0x1f0] sm:$0xff]  ;;  %v504_v57 = vld [vmem:[%s1428_s3 + $0x60] sm:$0xff] }
  0x10   : > { %v257_v2 = vld [vmem:[%s1134_s23] sm:$0xff]  ;;  %v258_v3 = vld [vmem:[%s1134_s23 + $0x8] sm:$0xff]  ;;  %v259_v6 = vld [vmem:[%s1134_s23 + $0x10] sm:$0xff]  ;;  %s833_s22 = sshll.u32 %s1434_s19, 5  ;;  %s250_s25 = scalar_lea.vmem %s1429_s4, %s809_s21 }
  0x11   : > { %v939_v5 = vpack.c.bf16 %v258_v3, %v257_v2  ;;  %v260_v7 = vld [vmem:[%s1134_s23 + $0x18] sm:$0xff]  ;;  %v261_v9 = vld [vmem:[%s1134_s23 + $0x20] sm:$0xff]  ;;  %v262_v10 = vld [vmem:[%s1134_s23 + $0x28] sm:$0xff]  ;;  %s255_s27 = scalar_lea.vmem %s1430_s5, %s833_s22 }
  0x12   : > { %v943_v8 = vpack.c.bf16 %v260_v7, %v259_v6  ;;  %v947_v11 = vpack.c.bf16 %v262_v10, %v261_v9  ;;  %v263_v12 = vld [vmem:[%s1134_s23 + $0x30] sm:$0xff]  ;;  %v264_v13 = vld [vmem:[%s1134_s23 + $0x38] sm:$0xff]  ;;  %v265_v15 = vld [vmem:[%s1134_s23 + $0x40] sm:$0xff] }
  0x13   : > { %941 = vmatpush3.bf16.xpose.msk.msra.mxu0 %vm1140_vm2, %v939_v5  ;;  %v951_v14 = vpack.c.bf16 %v264_v13, %v263_v12  ;;  %v266_v16 = vld [vmem:[%s1134_s23 + $0x48] sm:$0xff]  ;;  %v267_v18 = vld [vmem:[%s1134_s23 + $0x50] sm:$0xff]  ;;  %v268_v19 = vld [vmem:[%s1134_s23 + $0x58] sm:$0xff] }
  0x14   : > { %942 = vmatprep.subr.bf16.mxu0 %v1081_v0  ;;  %v955_v17 = vpack.c.bf16 %v266_v16, %v265_v15  ;;  %v959_v20 = vpack.c.bf16 %v268_v19, %v267_v18  ;;  %v269_v21 = vld [vmem:[%s1134_s23 + $0x60] sm:$0xff]  ;;  %v270_v22 = vld [vmem:[%s1134_s23 + $0x68] sm:$0xff]  ;;  %v271_v24 = vld [vmem:[%s1134_s23 + $0x70] sm:$0xff] }
  0x15   : > { %v963_v23 = vpack.c.bf16 %v270_v22, %v269_v21  ;;  %v272_v25 = vld [vmem:[%s1134_s23 + $0x78] sm:$0xff]  ;;  %v405_v34 = vld [vmem:[%s1194_s28] sm:$0xff]  ;;  %v406_v35 = vld [vmem:[%s1194_s28 + $0x8] sm:$0xff] }
  0x16   : > { %v967_v26 = vpack.c.bf16 %v272_v25, %v271_v24  ;;  %v971_v38 = vpack.c.bf16 %v406_v35, %v405_v34  ;;  %v407_v40 = vld [vmem:[%s1194_s28 + $0x10] sm:$0xff]  ;;  %v408_v41 = vld [vmem:[%s1194_s28 + $0x18] sm:$0xff]  ;;  %v409_v49 = vld [vmem:[%s1194_s28 + $0x20] sm:$0xff] }
  0x17   : > { %v974_v46 = vpack.c.bf16 %v408_v41, %v407_v40  ;;  %v410_v50 = vld [vmem:[%s1194_s28 + $0x28] sm:$0xff]  ;;  %v411_v60 = vld [vmem:[%s1194_s28 + $0x30] sm:$0xff]  ;;  %v412_v61 = vld [vmem:[%s1194_s28 + $0x38] sm:$0xff] }
  0x18   : > { %972 = vmatpush3.bf16.msra.mxu1 %v971_v38  ;;  %v977_v58 = vpack.c.bf16 %v410_v50, %v409_v49  ;;  %v522_v2 = vld [vmem:[%s1428_s3 + $0xf0] sm:$0xff]  ;;  %v527_v3 = vld [vmem:[%s1428_s3 + $0x118] sm:$0xff]  ;;  %v980_v5 = vpack.c.bf16 %v412_v61, %v411_v60  ;;  %v413_v7 = vld [vmem:[%s1194_s28 + $0x40] sm:$0xff]  ;;  %v1052_v38 = vpack.c.bf16 %v546_v33, %v542_v32  ;;  %v1000_v60 = vpack.c.bf16 %v504_v57, %v500_v56 }
  0x19   : > { %973 = vmatprep.subr.bf16.mxu1 %v1081_v0  ;;  %v1040_v6 = vpack.c.bf16 %v522_v2, %v518_v63  ;;  %v1042_v9 = vpack.c.bf16 %v531_v4, %v527_v3  ;;  %v526_v10 = vld [vmem:[%s1428_s3 + $0x110] sm:$0xff]  ;;  %v416_v19 = vld [vmem:[%s1194_s28 + $0x58] sm:$0xff]  ;;  %v492_v49 = vld [vmem:[%s1428_s3] sm:$0xff] }
  0x1a   : > { %v415_v18 = vld [vmem:[%s1194_s28 + $0x50] sm:$0xff]  ;;  %v539_v22 = vld [vmem:[%s1428_s3 + $0x178] sm:$0xff]  ;;  %v496_v50 = vld [vmem:[%s1428_s3 + $0x20] sm:$0xff] }
  0x1b   : > { %945 = vmatpush3.bf16.xpose.msk.msra.mxu0 %vm1140_vm2, %v943_v8  ;;  %v414_v8 = vld [vmem:[%s1194_s28 + $0x48] sm:$0xff]  ;;  %v986_v21 = vpack.c.bf16 %v416_v19, %v415_v18  ;;  %v538_v24 = vld [vmem:[%s1428_s3 + $0x170] sm:$0xff]  ;;  %v551_v37 = vld [vmem:[%s1428_s3 + $0x1d8] sm:$0xff]  ;;  %v996_v53 = vpack.c.bf16 %v496_v50, %v492_v49 }
  0x1c   : > { %946 = vmatprep.subr.bf16.mxu0 %v1081_v0  ;;  %975 = vmatpush3.bf16.msra.mxu1 %v974_v46  ;;  %v983_v12 = vpack.c.bf16 %v414_v8, %v413_v7  ;;  %v419_v35 = vld [vmem:[%s1194_s28 + $0x70] sm:$0xff]  ;;  %v994_v46 = vpack.c.bf16 %v497_v44, %v493_v43  ;;  %v512_v63 = vld [vmem:[%s1428_s3 + $0xa0] sm:$0xff]  ;;  %v517_v2 = vld [vmem:[%s1428_s3 + $0xc8] sm:$0xff] }
  0x1d   : > { %976 = vmatprep.subr.bf16.mxu1 %v1081_v0  ;;  %v550_v40 = vld [vmem:[%s1428_s3 + $0x1d0] sm:$0xff]  ;;  %v521_v3 = vld [vmem:[%s1428_s3 + $0xe8] sm:$0xff]  ;;  %v536_v18 = vld [vmem:[%s1428_s3 + $0x160] sm:$0xff] }
  0x1e   : > { %v1006_v4 = vpack.c.bf16 %v521_v3, %v517_v2  ;;  %v525_v7 = vld [vmem:[%s1428_s3 + $0x108] sm:$0xff] }
  0x1f   : > { %v529_v8 = vld [vmem:[%s1428_s3 + $0x128] sm:$0xff] }
  0x20   : > { %978 = vmatpush3.bf16.msra.mxu1 %v977_v58  ;;  %v509_v58 = vld [vmem:[%s1428_s3 + $0x88] sm:$0xff] }
  0x21   : > { %979 = vmatprep.subr.bf16.mxu1 %v1081_v0  ;;  %v541_v19 = vld [vmem:[%s1428_s3 + $0x188] sm:$0xff] }
  0x23   : > { %949 = vmatpush3.bf16.xpose.msk.msra.mxu0 %vm1140_vm2, %v947_v11  ;;  %v530_v11 = vld [vmem:[%s1428_s3 + $0x130] sm:$0xff] }
  0x24   : > { %950 = vmatprep.subr.bf16.mxu0 %v1081_v0  ;;  %981 = vmatpush3.bf16.msra.mxu1 %v980_v5  ;;  %v1044_v13 = vpack.c.bf16 %v530_v11, %v526_v10  ;;  %v516_v5 = vld [vmem:[%s1428_s3 + $0xc0] sm:$0xff]  ;;  %v1010_v10 = vpack.c.bf16 %v529_v8, %v525_v7 }
  0x25   : > { %982 = vmatprep.subr.bf16.mxu1 %v1081_v0  ;;  %v524_v11 = vld [vmem:[%s1428_s3 + $0x100] sm:$0xff] }
  0x28   : > { %984 = vmatpush3.bf16.msra.mxu1 %v983_v12  ;;  %v528_v12 = vld [vmem:[%s1428_s3 + $0x120] sm:$0xff] }
  0x29   : > { %985 = vmatprep.subr.bf16.mxu1 %v1081_v0 }
  0x2b   : > { %953 = vmatpush3.bf16.xpose.msk.msra.mxu0 %vm1140_vm2, %v951_v14 }
  0x2c   : > { %954 = vmatprep.subr.bf16.mxu0 %v1081_v0  ;;  %987 = vmatpush3.bf16.msra.mxu1 %v986_v21 }
  0x2d   : > { %988 = vmatprep.subr.bf16.mxu1 %v1081_v0 }
  0x33   : > { %957 = vmatpush3.bf16.xpose.msk.msra.mxu0 %vm1140_vm2, %v955_v17 }
  0x34   : > { %958 = vmatprep.subr.bf16.mxu0 %v1081_v0 }
  0x3b   : > { %961 = vmatpush3.bf16.xpose.msk.msra.mxu0 %vm1140_vm2, %v959_v20  ;;  %v535_v20 = vld [vmem:[%s1428_s3 + $0x158] sm:$0xff] }
  0x3c   : > { %962 = vmatprep.subr.bf16.mxu0 %v1081_v0  ;;  %v1046_v25 = vpack.c.bf16 %v539_v22, %v535_v20  ;;  %v545_v20 = vld [vmem:[%s1428_s3 + $0x1a8] sm:$0xff] }
  0x3d   : > { %v1018_v22 = vpack.c.bf16 %v545_v20, %v541_v19 }
  0x43   : > { %965 = vmatpush3.bf16.xpose.msk.msra.mxu0 %vm1140_vm2, %v963_v23  ;;  %v534_v23 = vld [vmem:[%s1428_s3 + $0x150] sm:$0xff] }
  0x44   : > { %966 = vmatprep.subr.bf16.mxu0 %v1081_v0 }
  0x4b   : > { %969 = vmatpush3.bf16.xpose.msk.msra.mxu0 %vm1140_vm2, %v967_v26  ;;  %v1048_v26 = vpack.c.bf16 %v538_v24, %v534_v23  ;;  %v540_v23 = vld [vmem:[%s1428_s3 + $0x180] sm:$0xff] }
  0x4c   : > { %1027 = vmatprep.subr.bf16.mxu0 %v1026_v36  ;;  %v420_v36 = vld [vmem:[%s1194_s28 + $0x78] sm:$0xff]  ;;  %v544_v24 = vld [vmem:[%s1428_s3 + $0x1a0] sm:$0xff] }
  0x4d   : > { %v992_v45 = vpack.c.bf16 %v420_v36, %v419_v35 }
  0x52   : > { %901 = vmatmul.mubr.msk.f32.vlgmr.msra.gmra.mrb[0].mxu0 %vm273_vm1, %v256_v27  ;;  %v417_v27 = vld [vmem:[%s1194_s28 + $0x60] sm:$0xff] }
  0x53   : > { %691 = vmatprep.mubr.f32.mxu0 %v1083_v1  ;;  %1029 = vmatpush1.bf16.msra.mxu0 %v1028_v39  ;;  %v555_v39 = vld [vmem:[%s1428_s3 + $0x1f8] sm:$0xff] }
  0x54   : > { %1031 = vmatprep.subr.bf16.mxu0 %v1030_v47  ;;  %v1054_v41 = vpack.c.bf16 %v555_v39, %v551_v37  ;;  %v1056_v47 = vpack.c.bf16 %v554_v42, %v550_v40 }
  0x57   : > { %1033 = vmatpush1.bf16.msra.mxu0 %v1032_v48 }
  0x58   : > { %1035 = vmatprep.subr.bf16.mxu0 %v1034_v55 }
  0x5b   : > { %1037 = vmatpush1.bf16.msra.mxu0 %v1036_v59  ;;  %v513_v59 = vld [vmem:[%s1428_s3 + $0xa8] sm:$0xff] }
  0x5c   : > { %1039 = vmatprep.subr.bf16.mxu0 %v1038_v62  ;;  %v1002_v61 = vpack.c.bf16 %v513_v59, %v509_v58  ;;  %v508_v62 = vld [vmem:[%s1428_s3 + $0x80] sm:$0xff] }
  0x5f   : > { %1041 = vmatpush1.bf16.msra.mxu0 %v1040_v6  ;;  %v520_v6 = vld [vmem:[%s1428_s3 + $0xe0] sm:$0xff] }
  0x60   : > { %1043 = vmatprep.subr.bf16.mxu0 %v1042_v9  ;;  %v1008_v9 = vpack.c.bf16 %v520_v6, %v516_v5 }
  0x63   : > { %1045 = vmatpush1.bf16.msra.mxu0 %v1044_v13  ;;  %v533_v13 = vld [vmem:[%s1428_s3 + $0x148] sm:$0xff] }
  0x64   : > { %1047 = vmatprep.subr.bf16.mxu0 %v1046_v25  ;;  %v549_v25 = vld [vmem:[%s1428_s3 + $0x1c8] sm:$0xff] }
  0x67   : > { %1049 = vmatpush1.bf16.msra.mxu0 %v1048_v26  ;;  %v553_v26 = vld [vmem:[%s1428_s3 + $0x1e8] sm:$0xff] }
 0x125   : > { %v391_v28 = vpop.f32.mrb[0].mxu0 }
 0x126   : > { %v1186_v29 = vmul.f32 0.17677669, %v391_v28  ;;  %v902_v30 = vpop.f32.mrb[1].mxu0  ;;  %v418_v28 = vld [vmem:[%s1194_s28 + $0x68] sm:$0xff] }
 0x127   : > { %v989_v30 = vpack.c.bf16 %v418_v28, %v417_v27  ;;  %v1020_v27 = vpack.c.bf16 %v544_v24, %v540_v23  ;;  %v1022_v28 = vpack.c.bf16 %v553_v26, %v549_v25 }
 0x128   : > { %396 = vmax.xlane.f32.xlu0 %v1186_v29 }
 0x129   : > { %990 = vmatpush3.bf16.msra.mxu1 %v989_v30  ;;  %v552_v30 = vld [vmem:[%s1428_s3 + $0x1e0] sm:$0xff] }
 0x12a   : > { %991 = vmatprep.subr.bf16.mxu1 %v1081_v0  ;;  %v501_v0 = vld [vmem:[%s1428_s3 + $0x48] sm:$0xff] }
 0x12b   : > { %v998_v55 = vpack.c.bf16 %v505_v51, %v501_v0 }
 0x12d   : > { %993 = vmatpush3.bf16.msra.mxu1 %v992_v45 }
 0x12e   : > { %995 = vmatprep.subr.bf16.mxu1 %v994_v46 }
 0x1b5   : > { %v397_v14 = vpop.xlane.xlu0 %396 }
 0x1b6   : > { %v398_v15 = vsub.f32 %v1186_v29, %v397_v14  ;;  %v543_v29 = vld [vmem:[%s1428_s3 + $0x198] sm:$0xff]  ;;  %v537_v14 = vld [vmem:[%s1428_s3 + $0x168] sm:$0xff] }
 0x1b7   : > { %v1050_v34 = vpack.c.bf16 %v547_v31, %v543_v29  ;;  %v548_v29 = vld [vmem:[%s1428_s3 + $0x1c0] sm:$0xff] }
 0x1b8   : > { %v399_v16 = vmul.f32 1.442695, %v398_v15  ;;  %v1012_v15 = vpack.c.bf16 %v528_v12, %v524_v11  ;;  %v1024_v31 = vpack.c.bf16 %v552_v30, %v548_v29 }
 0x1b9   : > { %1051 = vmatprep.subr.bf16.mxu0 %v1050_v34 }
 0x1ba   : > { %1069 = vpow2.f32 %v399_v16  ;;  %1053 = vmatpush1.bf16.msra.mxu0 %v1052_v38  ;;  %v1014_v16 = vpack.c.bf16 %v537_v14, %v533_v13 }
 0x1bb   : > { %1055 = vmatprep.subr.bf16.mxu0 %v1054_v41 }
 0x1be   : > { %1057 = vmatpush1.bf16.msra.mxu0 %v1056_v47 }
 0x1c4   : > { %v1070_v17 = vpop.eup %1069 }
 0x1c5   : > { %401 = vadd.xlane.f32.xlu0 %v1070_v17 }
 0x252   : > { %v402_v48 = vpop.xlane.xlu0 %401 }
 0x253   : > { %1071 = vrcp.f32 %v402_v48 }
 0x25d   : > { %v1072_v52 = vpop.eup %1071 }
 0x25e   : > { %v404_v54 = vmul.f32 %v1072_v52, %v1070_v17  ;;  %v532_v17 = vld [vmem:[%s1428_s3 + $0x140] sm:$0xff] }
 0x25f   : > { %v1016_v21 = vpack.c.bf16 %v536_v18, %v532_v17 }
 0x260   : > { %936 = vmatmul.mubr.f32.vlgmr.msra.gmra.mrb[0].mxu1 %v404_v54  ;;  %692 = vmatmul.mubr.f32.vlgmr.msra.gmra.mrb[2].mxu0 %v404_v54 }
 0x261   : > { %997 = vmatpush1.bf16.msra.mxu1 %v996_v53  ;;  %620 = vmatprep.mubr.f32.mxu1 %v1083_v1  ;;  %v1004_v1 = vpack.c.bf16 %v512_v63, %v508_v62 }
 0x262   : > { %999 = vmatprep.subr.bf16.mxu1 %v998_v55 }
 0x265   : > { %1001 = vmatpush1.bf16.msra.mxu1 %v1000_v60 }
 0x266   : > { %1003 = vmatprep.subr.bf16.mxu1 %v1002_v61 }
 0x269   : > { %1005 = vmatpush1.bf16.msra.mxu1 %v1004_v1 }
 0x26a   : > { %1007 = vmatprep.subr.bf16.mxu1 %v1006_v4 }
 0x26d   : > { %1009 = vmatpush1.bf16.msra.mxu1 %v1008_v9 }
 0x26e   : > { %1011 = vmatprep.subr.bf16.mxu1 %v1010_v10 }
 0x271   : > { %1013 = vmatpush1.bf16.msra.mxu1 %v1012_v15 }
 0x272   : > { %1015 = vmatprep.subr.bf16.mxu1 %v1014_v16 }
 0x275   : > { %1017 = vmatpush1.bf16.msra.mxu1 %v1016_v21 }
 0x276   : > { %1019 = vmatprep.subr.bf16.mxu1 %v1018_v22 }
 0x279   : > { %1021 = vmatpush1.bf16.msra.mxu1 %v1020_v27 }
 0x27a   : > { %1023 = vmatprep.subr.bf16.mxu1 %v1022_v28 }
 0x27d   : > { %1025 = vmatpush1.bf16.msra.mxu1 %v1024_v31 }
 0x280   : > { %621 = vmatmul.mubr.f32.vlgmr.msra.gmra.mrb[2].mxu1 %v404_v54 }
 0x333   : > { %v487_v32 = vpop.f32.mrb[0].mxu1  ;;  %v693_v33 = vpop.f32.mrb[2].mxu0 }
 0x334   : > { %491 = vst.msk [vmem:[%s250_s25] sm:$0xff] %vm273_vm1, %v487_v32  ;;  %700 = vst [vmem:[%s255_s27 + $0x10] sm:$0xff] %v693_v33  ;;  %v937_v34 = vpop.f32.mrb[1].mxu1  ;;  %v695_v35 = vpop.f32.mrb[3].mxu0 }
 0x335   : > { %701 = vst [vmem:[%s255_s27 + $0x18] sm:$0xff] %v695_v35 }
 0x353   : > { %v622_v36 = vpop.f32.mrb[2].mxu1 }
 0x354   : > { %698 = vst [vmem:[%s255_s27] sm:$0xff] %v622_v36  ;;  %v624_v37 = vpop.f32.mrb[3].mxu1 }
 0x355   : > { %699 = vst [vmem:[%s255_s27 + $0x8] sm:$0xff] %v624_v37 }
 0x356 PF: > { %s16_s18 = sadd.s32 1, %s1079_s18  }
 0x357   : > { %p13_p4 = scmp.ge.s32.totalorder %s16_s18, 4  }
 0x359   :  { %15 = sbr.rel (!%p13_p4) target bundleno = 1 (0x1), region = 81 }

// kernel: position_aware_forward.30
= control target key start
LH: loop header
LB: loop body
LE: loop exit
PB: predicated region body
PF: predicated region fallthrough
CT: control target
= control target key end

     0   :  { %s449_s12 = smov 0   ;;  %s524_s0 = inlined_call_operand.vmem [shape: f32[2,8,128], index: 0, kind: input, shape index: {}]   ;;  %s525_s1 = inlined_call_operand.vmem [shape: f32[128,32], index: 1, kind: input, shape index: {}]   ;;  %s526_s2 = inlined_call_operand.vmem [shape: f32[8,32], index: 2, kind: input, shape index: {}]   ;;  %s527_s3 = inlined_call_operand.vmem [shape: f32[2,8,32], index: 3, kind: output, shape index: {}]  }
   0x1 LB: > { %s318_s13 = sadd.s32 4294967295, %s424_s12   ;;  %p322_p0 = scmp.ge.s32.totalorder %s424_s12, 1  ;;  %s424_s12 = sphi %s449_s12, %s13_s12  }
   0x2   : > { %p136_p1 = scmp.lt.s32.totalorder %s424_s12, 3 }
   0x4   : > { %p137_p2 = pnand %p322_p0, %p136_p1 }
   0x5   : > { %p158_p3 = scmp.lt.s32.totalorder (!%p137_p2), %s318_s13, 1  ;;  %v176_v1 = vld [vmem:[%s525_s1] sm:$0xff] (!%p137_p2)  ;;  %v177_v2 = vld [vmem:[%s525_s1 + $0x8] sm:$0xff] (!%p137_p2)  ;;  %v178_v3 = vld [vmem:[%s525_s1 + $0x10] sm:$0xff] (!%p137_p2)  ;;  %v426_v4 = vmov (!%p137_p2), 0.0|0.0   ;;  %vm427_vm0 = vmmov (!%p137_p2), 0  }
   0x6   : > { %140 = sbr.rel (%p137_p2) target bundleno = 544 (0x220), region = 32  ;;  %379 = vmatprep.subr.bf16.mxu0 (!%p137_p2), %v426_v4  ;;  %v380_v5 = vpack.c.bf16 (!%p137_p2), %v177_v2, %v176_v1  ;;  %v179_v6 = vld [vmem:[%s525_s1 + $0x18] sm:$0xff] (!%p137_p2)  ;;  %v180_v8 = vld [vmem:[%s525_s1 + $0x20] sm:$0xff] (!%p137_p2)  ;;  %v181_v9 = vld [vmem:[%s525_s1 + $0x28] sm:$0xff] (!%p137_p2)  ;;  %v428_v26 = vmov (!%p137_p2), 0.0   ;;  %vm263_vm1 = vcmask (!%p137_p2), 261120  }
   0x7   : > { %v383_v7 = vpack.c.bf16 (!%p137_p2), %v179_v6, %v178_v3  ;;  %v386_v10 = vpack.c.bf16 (!%p137_p2), %v181_v9, %v180_v8  ;;  %v182_v11 = vld [vmem:[%s525_s1 + $0x30] sm:$0xff] (!%p137_p2)  ;;  %v183_v12 = vld [vmem:[%s525_s1 + $0x38] sm:$0xff] (!%p137_p2)  ;;  %v184_v14 = vld [vmem:[%s525_s1 + $0x40] sm:$0xff] (!%p137_p2)  ;;  %376 = vmatprep.mubr.msk.f32.mxu0 (!%p137_p2), %vm427_vm0, %v428_v26 }
   0x8   : > { %381 = vmatpush3.bf16.msra.mxu0 (!%p137_p2), %v380_v5  ;;  %v389_v13 = vpack.c.bf16 (!%p137_p2), %v183_v12, %v182_v11  ;;  %v185_v15 = vld [vmem:[%s525_s1 + $0x48] sm:$0xff] (!%p137_p2)  ;;  %v186_v21 = vld [vmem:[%s525_s1 + $0x50] sm:$0xff] (!%p137_p2)  ;;  %v187_v22 = vld [vmem:[%s525_s1 + $0x58] sm:$0xff] (!%p137_p2) }
   0x9   : > { %382 = vmatprep.subr.bf16.mxu0 (!%p137_p2), %v426_v4  ;;  %v392_v16 = vpack.c.bf16 (!%p137_p2), %v185_v15, %v184_v14  ;;  %v395_v23 = vpack.c.bf16 (!%p137_p2), %v187_v22, %v186_v21  ;;  %v188_v24 = vld [vmem:[%s525_s1 + $0x60] sm:$0xff] (!%p137_p2)  ;;  %v189_v25 = vld [vmem:[%s525_s1 + $0x68] sm:$0xff] (!%p137_p2)  ;;  %v190_v28 = vld [vmem:[%s525_s1 + $0x70] sm:$0xff] (!%p137_p2) }
   0xa   : > { %v398_v27 = vpack.c.bf16 (!%p137_p2), %v189_v25, %v188_v24  ;;  %v191_v29 = vld [vmem:[%s525_s1 + $0x78] sm:$0xff] (!%p137_p2)  ;;  %v192_v34 = vld [vmem:[%s526_s2] sm:$0xff] (!%p137_p2) }
   0xb   : > { %v401_v30 = vpack.c.bf16 (!%p137_p2), %v191_v29, %v190_v28 }
   0xc   : > { %384 = vmatpush3.bf16.msra.mxu0 (!%p137_p2), %v383_v7 }
   0xd   : > { %s529_s13 = smov (!%p158_p3, %s318_s13), 1  ;;  %385 = vmatprep.subr.bf16.mxu0 %v426_v4 }
   0xe   : > { %s323_s14 = sshll.u32 %s529_s13, 3 }
   0xf   : > { %s161_s17 = scalar_lea.vmem %s524_s0, %s323_s14  ;;  %s165_s30 = scalar_lea.vmem %s527_s3, %s323_s14 }
  0x10   : > { %v166_v0 = vld [vmem:[%s161_s17] sm:$0xff]  ;;  %387 = vmatpush3.bf16.msra.mxu0 %v386_v10 }
  0x11   : > { %167 = vmax.xlane.f32.xlu0 %v166_v0  ;;  %388 = vmatprep.subr.bf16.mxu0 %v426_v4 }
  0x14   : > { %390 = vmatpush3.bf16.msra.mxu0 %v389_v13 }
  0x15   : > { %391 = vmatprep.subr.bf16.mxu0 %v426_v4 }
  0x18   : > { %393 = vmatpush3.bf16.msra.mxu0 %v392_v16 }
  0x19   : > { %394 = vmatprep.subr.bf16.mxu0 %v426_v4 }
  0x1c   : > { %396 = vmatpush3.bf16.msra.mxu0 %v395_v23 }
  0x1d   : > { %397 = vmatprep.subr.bf16.mxu0 %v426_v4 }
  0x20   : > { %399 = vmatpush3.bf16.msra.mxu0 %v398_v27 }
  0x21   : > { %400 = vmatprep.subr.bf16.mxu0 %v426_v4 }
  0x24   : > { %402 = vmatpush3.bf16.msra.mxu0 %v401_v30 }
  0x9e   : > { %v168_v17 = vpop.xlane.xlu0 %167 }
  0x9f   : > { %v169_v18 = vsub.f32 %v166_v0, %v168_v17 }
  0xa1   : > { %v170_v19 = vmul.f32 1.442695, %v169_v18 }
  0xa3   : > { %414 = vpow2.f32 %v170_v19 }
  0xad   : > { %v415_v20 = vpop.eup %414 }
  0xae   : > { %172 = vadd.xlane.f32.xlu0 %v415_v20 }
 0x13b   : > { %v173_v31 = vpop.xlane.xlu0 %172 }
 0x13c   : > { %416 = vrcp.f32 %v173_v31 }
 0x146   : > { %v417_v32 = vpop.eup %416 }
 0x147   : > { %v175_v33 = vmul.f32 %v417_v32, %v415_v20 }
 0x149   : > { %377 = vmatmul.mubr.f32.vlgmr.msra.gmra.mrb[0].mxu0 %v175_v33 }
 0x21c   : > { %v259_v35 = vpop.f32.mrb[0].mxu0 }
 0x21d   : > { %v260_v36 = vadd.f32 %v259_v35, %v192_v34  ;;  %v378_v37 = vpop.f32.mrb[1].mxu0 }
 0x21f   : > { %264 = vst.msk [vmem:[%s165_s30] sm:$0xff] %vm263_vm1, %v260_v36 }
 0x220 PF: > { %s13_s12 = sadd.s32 1, %s424_s12  }
 0x221   : > { %p10_p4 = scmp.ge.s32.totalorder %s13_s12, 4  }
 0x223   :  { %12 = sbr.rel (!%p10_p4) target bundleno = 1 (0x1), region = 62 }

// kernel: position_aware_forward.31
= control target key start
LH: loop header
LB: loop body
LE: loop exit
PB: predicated region body
PF: predicated region fallthrough
CT: control target
= control target key end

     0   :  { %s2422_s0 = inlined_call_operand.vmem [shape: s32[2], index: 0, kind: input, shape index: {}]   ;;  %s2423_s1 = inlined_call_operand.vmem [shape: f32[2,8,32], index: 1, kind: input, shape index: {}]   ;;  %s2424_s2 = inlined_call_operand.vmem [shape: f32[2,8,32], index: 2, kind: input, shape index: {}]   ;;  %s2425_s3 = inlined_call_operand.vmem [shape: f32[3,32,32], index: 3, kind: input, shape index: {}]   ;;  %s2426_s4 = inlined_call_operand.vmem [shape: f32[3,1,32], index: 4, kind: input, shape index: {}]   ;;  %s2427_s5 = inlined_call_operand.vmem [shape: f32[32,32], index: 5, kind: input, shape index: {}]   ;;  %s2428_s6 = inlined_call_operand.vmem [shape: f32[1,32], index: 6, kind: input, shape index: {}, may-alias: {6,11}]   ;;  %s2429_s7 = inlined_call_operand.vmem [shape: f32[2,1,32], index: 7, kind: input, shape index: {}, may-alias: {7,12}]   ;;  %s2430_s8 = inlined_call_operand.vmem [shape: f32[32,64], index: 8, kind: input, shape index: {}]   ;;  %s2431_s9 = inlined_call_operand.vmem [shape: f32[1,64], index: 9, kind: input, shape index: {}]   ;;  %s2432_s10 = inlined_call_operand.vmem [shape: f32[64,32], index: 10, kind: input, shape index: {}]   ;;  %s2433_s11 = inlined_call_operand.vmem [shape: f32[1,32], index: 11, kind: input, shape index: {}, may-alias: {6,11}]   ;;  %s2434_s12 = inlined_call_operand.vmem [shape: f32[2,1,32], index: 12, kind: input, shape index: {}, may-alias: {7,12}]   ;;  %s2435_s13 = inlined_call_operand.vmem [shape: f32[2,8,32], index: 13, kind: output, shape index: {}]  }
   0x1   :  { %s18_s27 = sshll.u32 %s2422_s0, 4  ;;  %s19_s27 = int_to_ptr.vmem [resolvable:$true] %s18_s27 }
   0x2   :  { %s2061_s28 = scalar_lea.vmem %s19_s27, 16  ;;  %p2066_p1 = scmp.lt.s32.totalorder %s19_s27, %s19_s27 }
   0x3   :  { %p2062_p0 = scmp.ne.s32.totalorder %s19_s27, %s2061_s28  ;;  %p2067_p2 = scmp.lt.s32.totalorder %s2061_s28, %s2061_s28 }
   0x5   :  { %p2068_p3 = por %p2067_p2, %p2066_p1 }
   0x7   :  { %p2069_p4 = pnand %p2068_p3, %p2062_p0 }
   0x9   :  { %2072 = shalt.err (!%p2069_p4)  }
   0xa   :  { %s2083_s29 = smov [#allocation3]  }
   0xb   :  { %21 = dma.vmem_to_smem %s19_s27, 16, %s2083_s29, [#allocation2] }
   0xc   :  { %2077 = dma.done.wait [#allocation2], 16 }
   0xd   :  { %2078 = vsyncadd [#allocation2], 4294967280 }
   0xe   :  { %23 = sfence }
   0xf   :  { %s2166_s30 = smov 0  }
  0x10 LB: > { %s2172_s0 = sadd.s32 4294967295, %s2081_s30   ;;  %p1771_p5 = scmp.ge.s32.totalorder %s2081_s30, 1  ;;  %s2081_s30 = sphi %s2166_s30, %s29_s30  }
  0x11   : > { %p377_p6 = scmp.lt.s32.totalorder %s2081_s30, 3 }
  0x13   : > { %p378_p7 = pnand %p1771_p5, %p377_p6 }
  0x14   : > { %v436_v0 = vld [vmem:[%s2425_s3] sm:$0xff] (!%p378_p7)  ;;  %v437_v1 = vld [vmem:[%s2425_s3 + $0x8] sm:$0xff] (!%p378_p7)  ;;  %v438_v2 = vld [vmem:[%s2425_s3 + $0x10] sm:$0xff] (!%p378_p7)  ;;  %v2084_v3 = vmov (!%p378_p7), 0.0|0.0   ;;  %vm2085_vm0 = vmmov (!%p378_p7), 0   ;;  %v2086_v6 = vmov (!%p378_p7), 0.0   ;;  %v690_v40 = vlaneseq (!%p378_p7) }
  0x15   : > { %381 = sbr.rel (%p378_p7) target bundleno = 2515 (0x9d3), region = 68  ;;  %1981 = vmatprep.subr.bf16.mxu1 (!%p378_p7), %v2084_v3  ;;  %v1982_v4 = vpack.c.bf16 (!%p378_p7), %v437_v1, %v436_v0  ;;  %v439_v5 = vld [vmem:[%s2425_s3 + $0x18] sm:$0xff] (!%p378_p7)  ;;  %1875 = vmatprep.mubr.msk.f32.mxu1 (!%p378_p7), %vm2085_vm0, %v2086_v6  ;;  %p421_p8 = scmp.lt.s32.totalorder (!%p378_p7), %s2172_s0, 1  ;;  %v1777_v8 = vld [vmem:[%s2425_s3 + $0x20] sm:$0xff] (!%p378_p7)  ;;  %v1778_v9 = vld [vmem:[%s2425_s3 + $0x28] sm:$0xff] (!%p378_p7)  ;;  %vm447_vm1 = vcmask (!%p378_p7), 261120  }
  0x16   : > { %1993 = vmatprep.subr.bf16.mxu0 (!%p378_p7), %v2084_v3  ;;  %1897 = vmatprep.mubr.msk.f32.mxu0 (!%p378_p7), %vm2085_vm0, %v2086_v6  ;;  %v1985_v7 = vpack.c.bf16 (!%p378_p7), %v439_v5, %v438_v2  ;;  %v1988_v11 = vpack.c.bf16 (!%p378_p7), %v1778_v9, %v1777_v8  ;;  %v1779_v12 = vld [vmem:[%s2425_s3 + $0x30] sm:$0xff] (!%p378_p7)  ;;  %v1780_v13 = vld [vmem:[%s2425_s3 + $0x38] sm:$0xff] (!%p378_p7)  ;;  %v1784_v16 = vld [vmem:[%s2425_s3 + $0x40] sm:$0xff] (!%p378_p7)  ;;  %vm698_vm2 = vcmask (!%p378_p7), 64512   ;;  %s2087_s19 = smov (!%p378_p7), 112   ;;  %s2088_s20 = smov (!%p378_p7), 120  }
  0x17   : > { %1983 = vmatpush3.bf16.msra.mxu1 (!%p378_p7), %v1982_v4  ;;  %v1991_v14 = vpack.c.bf16 (!%p378_p7), %v1780_v13, %v1779_v12  ;;  %v1785_v17 = vld [vmem:[%s2425_s3 + $0x48] sm:$0xff] (!%p378_p7)  ;;  %v1786_v18 = vld [vmem:[%s2425_s3 + $0x50] sm:$0xff] (!%p378_p7)  ;;  %v1787_v20 = vld [vmem:[%s2425_s3 + $0x58] sm:$0xff] (!%p378_p7)  ;;  %s433_s24 = sld [smem:[#allocation3 + %s2172_s0]] (!%p378_p7)  ;;  %v691_v41 = vshrl.u32 (!%p378_p7), %v690_v40, 7  ;;  %v693_v42 = vand.u32 (!%p378_p7), 127, %v690_v40 }
  0x18   : > { %1984 = vmatprep.subr.bf16.mxu1 (!%p378_p7), %v2084_v3  ;;  %v1994_v19 = vpack.c.bf16 (!%p378_p7), %v1785_v17, %v1784_v16  ;;  %v1997_v21 = vpack.c.bf16 (!%p378_p7), %v1787_v20, %v1786_v18  ;;  %v1782_v24 = vld [vmem:[%s2426_s4 + $0x1] ss:$0 sm:$0xff] (!%p378_p7)  ;;  %v1775_v28 = vld [vmem:[%s2426_s4] ss:$0 sm:$0xff] (!%p378_p7)  ;;  %v1789_v30 = vld [vmem:[%s2426_s4 + $0x2] ss:$0 sm:$0xff] (!%p378_p7) }
  0x19   : > { %vm694_vm3 = vcmp.eq.s32.totalorder (!%p378_p7), %v693_v42, %v691_v41  ;;  %v1380_v41 = vld [vmem:[%s2427_s5] sm:$0xff] (!%p378_p7)  ;;  %v1383_v45 = vld [vmem:[%s2427_s5 + $0x18] sm:$0xff] (!%p378_p7)  ;;  %s2090_s17 = smov (!%p378_p7), 8   ;;  %s2091_s18 = smov (!%p378_p7), 16   ;;  %vm1376_vm6 = vcmask (!%p378_p7), 130048   ;;  %vm1378_vm7 = vcmask (!%p378_p7), 195584  }
  0x1a   : > { %1995 = vmatpush3.bf16.msra.mxu0 (!%p378_p7), %v1994_v19  ;;  %vm1596_vm8 = vcmask (!%p378_p7), 523264  }
  0x1b   : > { %1986 = vmatpush3.bf16.msra.mxu1 (!%p378_p7), %v1985_v7  ;;  %1996 = vmatprep.subr.bf16.mxu0 (!%p378_p7), %v2084_v3 }
  0x1c   : > { %s422_s22 = scalar_select %p421_p8, %s2172_s0, 1  ;;  %1987 = vmatprep.subr.bf16.mxu1 %v2084_v3 }
  0x1d   : > { %v695_v43 = vstv %s433_s24 }
  0x1e   : > { %s2203_s27 = sshll.u32 %s422_s22, 3  ;;  %1998 = vmatpush3.bf16.msra.mxu0 %v1997_v21  ;;  %vm696_vm4 = vcmp.ge.s32.totalorder %v693_v42, %v695_v43  ;;  %v1381_v42 = vld [vmem:[%s2427_s5 + $0x8] sm:$0xff] }
  0x1f   : > { %s424_s14 = scalar_lea.vmem %s2423_s1, %s2203_s27  ;;  %s428_s21 = scalar_lea.vmem %s2424_s2, %s2203_s27  ;;  %1910 = vmatprep.subr.mxu0 %v2086_v6  ;;  %vm2288_vm5 = vmor %vm694_vm3, %vm696_vm4  ;;  %v2000_v43 = vpack.c.bf16 %v1381_v42, %v1380_v41 }
  0x20   : > { %v2209_v10 = vld [vmem:[%s424_s14] sm:$0xff]  ;;  %s432_s28 = scalar_lea.vmem %s2435_s13, %s2203_s27 }
  0x21   : > { %1876 = vmatmul.mubr.msk.f32.vlgmr.msra.gmra.mrb[0].mxu1 %vm447_vm1, %v2209_v10  ;;  %v435_v15 = vld [vmem:[%s428_s21] sm:$0xff]  ;;  %s2089_s21 = smov 104  }
  0x22   : > { %1989 = vmatpush3.bf16.msra.mxu1 %v1988_v11  ;;  %1886 = vmatprep.mubr.msk.f32.mxu1 %vm2085_vm0, %v2086_v6 }
  0x23   : > { %1990 = vmatprep.subr.bf16.mxu1 %v2084_v3  ;;  %1898 = vmatmul.mubr.msk.f32.vlgmr.msra.gmra.mrb[0].mxu0 %vm447_vm1, %v435_v15 }
  0x24   : > { %1912 = vmatprep.mubr.msk.f32.mxu0 %vm2085_vm0, %v2086_v6 }
  0x26   : > { %1992 = vmatpush3.bf16.msra.mxu1 %v1991_v14 }
  0x27   : > { %1900 = vmatprep.subr.mxu1 %v2086_v6 }
  0x29   : > { %1887 = vmatmul.mubr.msk.f32.vlgmr.msra.gmra.mrb[2].mxu1 %vm447_vm1, %v435_v15 }
  0x2a   : > { %1902 = vmatprep.mubr.msk.f32.mxu1 %vm2085_vm0, %v2086_v6 }
  0xf4   : > { %v517_v22 = vpop.f32.mrb[0].mxu1 }
  0xf5   : > { %v1877_v23 = vpop.f32.mrb[1].mxu1  ;;  %v518_v29 = vadd.f32 %v1775_v28, %v517_v22 }
  0xf6   : > { %v686_v31 = vpop.f32.mrb[0].mxu0 }
  0xf7   : > { %v2268_v32 = vadd.f32 %v1789_v30, %v686_v31  ;;  %v1899_v33 = vpop.f32.mrb[1].mxu0 }
  0xfc   : > { %v603_v25 = vpop.f32.mrb[2].mxu1 }
  0xfd   : > { %v604_v26 = vadd.f32 %v1782_v24, %v603_v25  ;;  %v1888_v27 = vpop.f32.mrb[3].mxu1 }
  0xff   : > { %1031 = vrot.lane.b32.xlu1 %v604_v26, %s2087_s19  ;;  %863 = vrot.lane.b32.xlu0 %v604_v26, %s2088_s20 }
 0x100   : > { %1901 = vmatpush3.xpose.msk.msra.mxu1 %vm698_vm2, %v604_v26 }
 0x101   : > { %1905 = vmatprep.subr.mxu1 %v2086_v6 }
 0x103   : > { %1903 = vmatmul.mubr.msk.f32.vlgmr.msra.gmra.mrb[4].mxu1 %vm698_vm2, %v518_v29  ;;  %1029 = vrot.lane.b32.xlu1 %v518_v29, %s2087_s19 }
 0x104   : > { %861 = vrot.lane.b32.xlu0 %v518_v29, %s2088_s20  ;;  %1907 = vmatprep.mubr.msk.f32.mxu1 %vm2085_vm0, %v2086_v6 }
 0x105   : > { %1906 = vmatpush3.msra.mxu1 %v2268_v32 }
 0x106   : > { %1915 = vmatprep.subr.mxu1 %v2086_v6 }
 0x107   : > { %1196 = vrot.lane.b32.xlu1 %v518_v29, %s2089_s21 }
 0x108   : > { %1198 = vrot.lane.b32.xlu0 %v604_v26, %s2089_s21 }
 0x171   : > { %v864_v34 = vpop.permute.xlu0 %863  ;;  %v1032_v35 = vpop.permute.xlu1 %1031 }
 0x172   : > { %1911 = vmatpush3.xpose.msk.msra.mxu0 %vm698_vm2, %v864_v34 }
 0x173   : > { %1920 = vmatprep.subr.mxu0 %v2086_v6 }
 0x175   : > { %v1030_v37 = vpop.permute.xlu1 %1029 }
 0x176   : > { %v862_v36 = vpop.permute.xlu0 %861 }
 0x177   : > { %1913 = vmatmul.mubr.msk.f32.vlgmr.msra.gmra.mrb[2].mxu0 %vm698_vm2, %v862_v36 }
 0x178   : > { %1921 = vmatpush3.xpose.msk.msra.mxu0 %vm698_vm2, %v1032_v35  ;;  %1922 = vmatprep.mubr.msk.f32.mxu0 %vm2085_vm0, %v2086_v6 }
 0x179   : > { %1930 = vmatprep.subr.mxu0 %v2086_v6  ;;  %v1197_v39 = vpop.permute.xlu1 %1196 }
 0x17a   : > { %v1199_v38 = vpop.permute.xlu0 %1198 }
 0x17b   : > { %1923 = vmatmul.mubr.msk.f32.vlgmr.msra.gmra.mrb[4].mxu0 %vm698_vm2, %v1030_v37 }
 0x17c   : > { %1931 = vmatpush3.xpose.msk.msra.mxu0 %vm698_vm2, %v1199_v38  ;;  %1932 = vmatprep.mubr.msk.f32.mxu0 %vm2085_vm0, %v2086_v6 }
 0x17d   : > { %1999 = vmatprep.subr.bf16.mxu0 %v2084_v3 }
 0x17f   : > { %1933 = vmatmul.mubr.msk.f32.vlgmr.msra.gmra.mrb[6].mxu0 %vm698_vm2, %v1197_v39 }
 0x180   : > { %1948 = vmatprep.mubr.msk.f32.mxu0 %vm2085_vm0, %v2086_v6  ;;  %2001 = vmatpush3.bf16.msra.mxu0 %v2000_v43 }
 0x181   : > { %2002 = vmatprep.subr.bf16.mxu0 %v2084_v3 }
 0x1d6   : > { %v771_v44 = vpop.f32.mrb[4].mxu1 }
 0x1d7   : > { %v775_v46 = vmul.f32 0.35355338, %v771_v44  ;;  %v1904_v47 = vpop.f32.mrb[5].mxu1  ;;  %v1382_v44 = vld [vmem:[%s2427_s5 + $0x10] sm:$0xff] }
 0x1d9   : > { %v776_v48 = vsel %vm2288_vm5, -1e+30, %v775_v46  ;;  %v2003_v46 = vpack.c.bf16 %v1383_v45, %v1382_v44 }
 0x1da   : > { %v777_v49 = vsel %vm698_vm2, %v776_v48, -inf }
 0x1db   : > { %778 = vmax.xlane.f32.xlu0 %v777_v49  ;;  %2004 = vmatpush3.bf16.msra.mxu0 %v2003_v46 }
 0x1dc   : > { %2011 = vmatprep.subr.bf16.mxu0 %v2084_v3 }
 0x24a   : > { %v935_v50 = vpop.f32.mrb[2].mxu0 }
 0x24b   : > { %v939_v51 = vmul.f32 0.35355338, %v935_v50  ;;  %v1914_v52 = vpop.f32.mrb[3].mxu0 }
 0x24d   : > { %v940_v53 = vsel %vm2288_vm5, -1e+30, %v939_v51 }
 0x24e   : > { %v1103_v54 = vpop.f32.mrb[4].mxu0  ;;  %v941_v55 = vsel %vm698_vm2, %v940_v53, -inf }
 0x24f   : > { %v1107_v56 = vmul.f32 0.35355338, %v1103_v54  ;;  %942 = vmax.xlane.f32.xlu1 %v941_v55  ;;  %v1924_v57 = vpop.f32.mrb[5].mxu0 }
 0x251   : > { %v1108_v58 = vsel %vm2288_vm5, -1e+30, %v1107_v56 }
 0x252   : > { %v1270_v59 = vpop.f32.mrb[6].mxu0  ;;  %v1109_v60 = vsel %vm698_vm2, %v1108_v58, -inf }
 0x253   : > { %v1274_v61 = vmul.f32 0.35355338, %v1270_v59  ;;  %v1934_v62 = vpop.f32.mrb[7].mxu0  ;;  %1110 = vmax.xlane.f32.xlu0 %v1109_v60  ;;  %v1803_v59 = vld [vmem:[%s2428_s6] ss:$0 sm:$0xff] }
 0x255   : > { %v1275_v63 = vsel %vm2288_vm5, -1e+30, %v1274_v61 }
 0x256   : > { %v1276_v0 = vsel %vm698_vm2, %v1275_v63, -inf }
 0x257   : > { %1277 = vmax.xlane.f32.xlu0 %v1276_v0 }
 0x260   : > { %953 = vrot.lane.b32.xlu1 %v2268_v32, %s2088_s20 }
 0x268   : > { %v779_v1 = vpop.xlane.xlu0 %778 }
 0x269   : > { %v780_v2 = vsub.f32 %v776_v48, %v779_v1 }
 0x26b   : > { %v781_v4 = vmul.f32 1.442695, %v780_v2 }
 0x26d   : > { %2041 = vpow2.f32 %v781_v4 }
 0x277   : > { %v2042_v5 = vpop.eup %2041 }
 0x278   : > { %v783_v7 = vsel %vm698_vm2, %v2042_v5, 0.0 }
 0x284   : > { %784 = vadd.xlane.f32.xlu1 %v783_v7 }
 0x2dc   : > { %v943_v8 = vpop.xlane.xlu1 %942 }
 0x2dd   : > { %v944_v9 = vsub.f32 %v940_v53, %v943_v8  ;;  %v1497_v8 = vld [vmem:[%s2430_s8 + $0x8] sm:$0xff] }
 0x2df   : > { %v945_v11 = vmul.f32 1.442695, %v944_v9 }
 0x2e0   : > { %v1111_v12 = vpop.xlane.xlu0 %1110  ;;  %v954_v24 = vpop.permute.xlu1 %953 }
 0x2e1   : > { %2043 = vpow2.f32 %v945_v11  ;;  %v1112_v13 = vsub.f32 %v1108_v58, %v1111_v12  ;;  %v1499_v11 = vld [vmem:[%s2430_s8 + $0x18] sm:$0xff] }
 0x2e3   : > { %v1113_v14 = vmul.f32 1.442695, %v1112_v13  ;;  %v1581_v13 = vld [vmem:[%s2432_s10] sm:$0xff] }
 0x2e4   : > { %v1278_v15 = vpop.xlane.xlu0 %1277 }
 0x2e5   : > { %2045 = vpow2.f32 %v1113_v14  ;;  %v1279_v16 = vsub.f32 %v1275_v63, %v1278_v15  ;;  %v1582_v14 = vld [vmem:[%s2432_s10 + $0x8] sm:$0xff]  ;;  %v1583_v15 = vld [vmem:[%s2432_s10 + $0x10] sm:$0xff] }
 0x2e7   : > { %v1280_v17 = vmul.f32 1.442695, %v1279_v16  ;;  %v2012_v16 = vpack.c.bf16 %v1582_v14, %v1581_v13 }
 0x2e9   : > { %2047 = vpow2.f32 %v1280_v17  ;;  %v1584_v17 = vld [vmem:[%s2432_s10 + $0x18] sm:$0xff] }
 0x2eb   : > { %v2044_v18 = vpop.eup %2043 }
 0x2ec   : > { %v947_v19 = vsel %vm698_vm2, %v2044_v18, 0.0 }
 0x2ed   : > { %948 = vadd.xlane.f32.xlu0 %v947_v19  ;;  %v1585_v19 = vld [vmem:[%s2432_s10 + $0x20] sm:$0xff] }
 0x2ef   : > { %v2046_v20 = vpop.eup %2045 }
 0x2f0   : > { %v1115_v21 = vsel %vm698_vm2, %v2046_v20, 0.0 }
 0x2f1   : > { %1116 = vadd.xlane.f32.xlu1 %v1115_v21 }
 0x2f3   : > { %v2048_v22 = vpop.eup %2047 }
 0x2f4   : > { %v1282_v23 = vsel %vm698_vm2, %v2048_v22, 0.0 }
 0x2f5   : > { %1283 = vadd.xlane.f32.xlu0 %v1282_v23 }
 0x302   : > { %1287 = vrot.lane.b32.xlu1 %v2268_v32, %s2089_s21 }
 0x30b   : > { %1120 = vrot.lane.b32.xlu0 %v2268_v32, %s2087_s19  ;;  %s2092_s19 = smov 24  }
 0x311   : > { %v785_v25 = vpop.xlane.xlu1 %784 }
 0x312   : > { %2049 = vrcp.f32 %v785_v25 }
 0x31c   : > { %v2050_v26 = vpop.eup %2049 }
 0x31d   : > { %v787_v27 = vmul.f32 %v2050_v26, %v2042_v5  ;;  %v1805_v26 = vld [vmem:[%s2429_s7] ss:$0 sm:$0xff] }
 0x31f   : > { %1908 = vmatmul.mubr.msk.f32.vlgmr.msra.gmra.mrb[6].mxu1 %vm698_vm2, %v787_v27 }
 0x320   : > { %1916 = vmatpush3.msra.mxu1 %v954_v24  ;;  %1917 = vmatprep.mubr.msk.f32.mxu1 %vm2085_vm0, %v2086_v6 }
 0x321   : > { %1925 = vmatprep.subr.mxu1 %v2086_v6 }
 0x37a   : > { %v949_v28 = vpop.xlane.xlu0 %948 }
 0x37b   : > { %2051 = vrcp.f32 %v949_v28  ;;  %v1807_v28 = vld [vmem:[%s2429_s7 + $0x1] ss:$0 sm:$0xff] }
 0x37e   : > { %v1117_v29 = vpop.xlane.xlu1 %1116 }
 0x37f   : > { %2053 = vrcp.f32 %v1117_v29 }
 0x382   : > { %v1284_v30 = vpop.xlane.xlu0 %1283  ;;  %v1288_v36 = vpop.permute.xlu1 %1287 }
 0x383   : > { %2055 = vrcp.f32 %v1284_v30 }
 0x385   : > { %v2052_v31 = vpop.eup %2051 }
 0x386   : > { %v951_v32 = vmul.f32 %v2052_v31, %v2044_v18  ;;  %v1121_v33 = vpop.permute.xlu0 %1120  ;;  %v2015_v18 = vpack.c.bf16 %v1584_v17, %v1583_v15  ;;  %v1588_v31 = vld [vmem:[%s2432_s10 + $0x38] sm:$0xff] }
 0x388   : > { %1918 = vmatmul.mubr.msk.f32.vlgmr.msra.gmra.mrb[8].mxu1 %vm698_vm2, %v951_v32 }
 0x389   : > { %v2054_v34 = vpop.eup %2053  ;;  %1926 = vmatpush3.msra.mxu1 %v1121_v33  ;;  %1927 = vmatprep.mubr.msk.f32.mxu1 %vm2085_vm0, %v2086_v6  ;;  %v1808_v33 = vld [vmem:[%s2431_s9] ss:$0 sm:$0xff] }
 0x38a   : > { %v1119_v35 = vmul.f32 %v2054_v34, %v2046_v20  ;;  %1935 = vmatprep.subr.mxu1 %v2086_v6  ;;  %v1586_v20 = vld [vmem:[%s2432_s10 + $0x28] sm:$0xff] }
 0x38b   : > { %v2018_v21 = vpack.c.bf16 %v1586_v20, %v1585_v19 }
 0x38c   : > { %1928 = vmatmul.mubr.msk.f32.vlgmr.msra.gmra.mrb[10].mxu1 %vm698_vm2, %v1119_v35 }
 0x38d   : > { %v2056_v37 = vpop.eup %2055  ;;  %1936 = vmatpush3.msra.mxu1 %v1288_v36  ;;  %1937 = vmatprep.mubr.msk.f32.mxu1 %vm2085_vm0, %v2086_v6 }
 0x38e   : > { %v1286_v38 = vmul.f32 %v2056_v37, %v2048_v22  ;;  %2005 = vmatprep.subr.bf16.mxu1 %v2084_v3 }
 0x390   : > { %1938 = vmatmul.mubr.msk.f32.vlgmr.msra.gmra.mrb[12].mxu1 %vm698_vm2, %v1286_v38  ;;  %v1810_v38 = vld [vmem:[%s2433_s11] ss:$0 sm:$0xff] }
 0x391   : > { %1959 = vmatprep.mubr.msk.f32.mxu1 %vm2085_vm0, %v2086_v6 }
 0x3f2   : > { %v857_v39 = vpop.f32.mrb[6].mxu1 }
 0x3f3   : > { %v1909_v40 = vpop.f32.mrb[7].mxu1 }
 0x45b   : > { %v1025_v47 = vpop.f32.mrb[8].mxu1 }
 0x45c   : > { %1364 = vrot.lane.b32.xlu1 %v1025_v47, %s2090_s17  ;;  %v1919_v48 = vpop.f32.mrb[9].mxu1 }
 0x45f   : > { %v1192_v49 = vpop.f32.mrb[10].mxu1 }
 0x460   : > { %1368 = vrot.lane.b32.xlu0 %v1192_v49, %s2091_s18  ;;  %v1929_v50 = vpop.f32.mrb[11].mxu1 }
 0x463   : > { %v1359_v51 = vpop.f32.mrb[12].mxu1 }
 0x464   : > { %1372 = vrot.lane.b32.xlu1 %v1359_v51, %s2092_s19  ;;  %v1939_v52 = vpop.f32.mrb[13].mxu1 }
 0x4ce   : > { %v1365_v53 = vpop.permute.xlu1 %1364 }
 0x4cf   : > { %v1375_v55 = vsel %vm698_vm2, %v857_v39, %v1365_v53  ;;  %v1812_v53 = vld [vmem:[%s2434_s12] ss:$0 sm:$0xff] }
 0x4d2   : > { %v1369_v54 = vpop.permute.xlu0 %1368 }
 0x4d3   : > { %v1377_v56 = vsel %vm1376_vm6, %v1375_v55, %v1369_v54  ;;  %v1814_v55 = vld [vmem:[%s2434_s12 + $0x1] ss:$0 sm:$0xff] }
 0x4d6   : > { %v1373_v57 = vpop.permute.xlu1 %1372 }
 0x4d7   : > { %v1379_v58 = vsel %vm1378_vm7, %v1377_v56, %v1373_v57 }
 0x4d8   : > { %1949 = vmatmul.mubr.msk.f32.vlgmr.msra.gmra.mrb[8].mxu0 %vm447_vm1, %v1379_v58 }
 0x4d9   : > { %1978 = vmatprep.mubr.msk.f32.mxu0 %vm2085_vm0, %v2086_v6  ;;  %v1496_v6 = vld [vmem:[%s2430_s8] sm:$0xff]  ;;  %2013 = vmatpush3.bf16.msra.mxu0 %v2012_v16 }
 0x4da   : > { %v2006_v9 = vpack.c.bf16 %v1497_v8, %v1496_v6  ;;  %2014 = vmatprep.subr.bf16.mxu0 %v2084_v3 }
 0x4dc   : > { %2007 = vmatpush3.bf16.msra.mxu1 %v2006_v9 }
 0x4dd   : > { %2008 = vmatprep.subr.bf16.mxu1 %v2084_v3  ;;  %2016 = vmatpush3.bf16.msra.mxu0 %v2015_v18 }
 0x4de   : > { %2017 = vmatprep.subr.bf16.mxu0 %v2084_v3 }
 0x4e1   : > { %2019 = vmatpush3.bf16.msra.mxu0 %v2018_v21 }
 0x4e2   : > { %2020 = vmatprep.subr.bf16.mxu0 %v2084_v3  ;;  %v1587_v3 = vld [vmem:[%s2432_s10 + $0x30] sm:$0xff] }
 0x4e3   : > { %v2021_v32 = vpack.c.bf16 %v1588_v31, %v1587_v3 }
 0x4e5   : > { %2022 = vmatpush3.bf16.msra.mxu0 %v2021_v32 }
 0x5ab   : > { %v1460_v60 = vpop.f32.mrb[8].mxu0 }
 0x5ac   : > { %v1461_v61 = vadd.f32 %v1803_v59, %v1460_v60  ;;  %v1950_v62 = vpop.f32.mrb[9].mxu0 }
 0x5ae   : > { %v1464_v63 = vadd.f32 %v1461_v61, %v2209_v10  ;;  %v1498_v10 = vld [vmem:[%s2430_s8 + $0x10] sm:$0xff] }
 0x5af   : > { %v2009_v12 = vpack.c.bf16 %v1499_v11, %v1498_v10 }
 0x5b0   : > { %v1465_v0 = vsel %vm447_vm1, %v1464_v63, 0.0 }
 0x5b1   : > { %1466 = vadd.xlane.f32.xlu0 %v1465_v0  ;;  %2010 = vmatpush3.bf16.msra.mxu1 %v2009_v12 }
 0x63e   : > { %v1467_v1 = vpop.xlane.xlu0 %1466 }
 0x63f   : > { %v1469_v2 = vmul.f32 0.03125, %v1467_v1 }
 0x641   : > { %v1470_v4 = vsub.f32 %v1464_v63, %v1469_v2 }
 0x643   : > { %v1471_v5 = vmul.f32 %v1470_v4, %v1470_v4 }
 0x645   : > { %v1472_v7 = vsel %vm447_vm1, %v1471_v5, 0.0 }
 0x646   : > { %1473 = vadd.xlane.f32.xlu1 %v1472_v7 }
 0x6d3   : > { %v1474_v22 = vpop.xlane.xlu1 %1473 }
 0x6d4   : > { %v1475_v23 = vmul.f32 0.03125, %v1474_v22 }
 0x6d6   : > { %v1476_v24 = vadd.f32 1e-05, %v1475_v23 }
 0x6d8   : > { %2057 = vrsqrt.f32 %v1476_v24 }
 0x6e2   : > { %v2058_v25 = vpop.eup %2057 }
 0x6e3   : > { %v1478_v27 = vmul.f32 %v2058_v25, %v1470_v4 }
 0x6e5   : > { %v1486_v29 = vmul.f32 %v1805_v26, %v1478_v27 }
 0x6e7   : > { %v1495_v30 = vadd.f32 %v1807_v28, %v1486_v29 }
 0x6e9   : > { %1960 = vmatmul.mubr.msk.f32.vlgmr.msra.gmra.mrb[14].mxu1 %vm447_vm1, %v1495_v30 }
 0x7bc   : > { %v1576_v34 = vpop.f32.mrb[14].mxu1 }
 0x7bd   : > { %v1577_v35 = vadd.f32 %v1808_v33, %v1576_v34  ;;  %v1961_v36 = vpop.f32.mrb[15].mxu1 }
 0x7bf   : > { %v1580_v37 = vmax.f32 %v1577_v35, 0.0 }
 0x7c1   : > { %1979 = vmatmul.mubr.msk.f32.vlgmr.msra.gmra.mrb[10].mxu0 %vm1596_vm8, %v1580_v37 }
 0x894   : > { %v1666_v39 = vpop.f32.mrb[10].mxu0 }
 0x895   : > { %v1667_v40 = vadd.f32 %v1810_v38, %v1666_v39  ;;  %v1980_v41 = vpop.f32.mrb[11].mxu0 }
 0x897   : > { %v1670_v42 = vadd.f32 %v1667_v40, %v1495_v30 }
 0x899   : > { %v1671_v43 = vsel %vm447_vm1, %v1670_v42, 0.0 }
 0x89a   : > { %1672 = vadd.xlane.f32.xlu0 %v1671_v43 }
 0x927   : > { %v1673_v44 = vpop.xlane.xlu0 %1672 }
 0x928   : > { %v1674_v45 = vmul.f32 0.03125, %v1673_v44 }
 0x92a   : > { %v1675_v46 = vsub.f32 %v1670_v42, %v1674_v45 }
 0x92c   : > { %v1676_v47 = vmul.f32 %v1675_v46, %v1675_v46 }
 0x92e   : > { %v1677_v48 = vsel %vm447_vm1, %v1676_v47, 0.0 }
 0x92f   : > { %1678 = vadd.xlane.f32.xlu0 %v1677_v48 }
 0x9bc   : > { %v1679_v49 = vpop.xlane.xlu0 %1678 }
 0x9bd   : > { %v1680_v50 = vmul.f32 0.03125, %v1679_v49 }
 0x9bf   : > { %v1681_v51 = vadd.f32 1e-05, %v1680_v50 }
 0x9c1   : > { %2059 = vrsqrt.f32 %v1681_v51 }
 0x9cb   : > { %v2060_v52 = vpop.eup %2059 }
 0x9cc   : > { %v1683_v54 = vmul.f32 %v2060_v52, %v1675_v46 }
 0x9ce   : > { %v1691_v56 = vmul.f32 %v1812_v53, %v1683_v54 }
 0x9d0   : > { %v1700_v57 = vadd.f32 %v1814_v55, %v1691_v56 }
 0x9d2   : > { %1701 = vst.msk [vmem:[%s432_s28] sm:$0xff] %vm447_vm1, %v1700_v57 }
 0x9d3 PF: > { %s29_s30 = sadd.s32 1, %s2081_s30  }
 0x9d4   : > { %p26_p9 = scmp.ge.s32.totalorder %s29_s30, 4  }
 0x9d6   :  { %28 = sbr.rel (!%p26_p9) target bundleno = 16 (0x10), region = 107 }

</bundles_post_ra>
